<compile_context>
chip_gen: v7x
topology: tpu7x:2x2x1
jax: 0.10.0
libtpu: 0.0.40
codegen_flags: <defaults>
</compile_context>

<pallas_src>
import functools
import math

import jax
import jax.numpy as jnp
from jax.experimental import pallas as pl
from jax.experimental.pallas import tpu as pltpu


def _pick_key_chunk(T, max_kc=512):
    """Largest key-chunk <= max_kc that is a multiple of 128 and divides T."""
    if T <= max_kc:
        return T
    for kc in range(max_kc, 127, -128):
        if T % kc == 0:
            return kc
    # TODO(synk): pad/mask ragged key chunks instead of falling back to the
    # full (T, T) score matrix when T has no 128-multiple divisor <= 512.
    return T


# --------------------------------------------------------------------------
# Fused Pallas kernel: GroupNorm + qkv + attention + proj + residual
# --------------------------------------------------------------------------
def _attention_block_kernel(x_ref, gmat_ref, qkv_w_ref, qkv_b_ref,
                            proj_w_ref, proj_b_ref, o_ref, attn_ref,
                            *, num_heads, eps, new_order, key_chunk):
    x = x_ref[0].astype(jnp.float32)                   # (C, T), one batch elem
    C, T = x.shape
    inv_t = 1.0 / T

    # ---- GroupNorm statistics via a tiny precomputed group-averaging matmul.
    # gmat[i, j] = 1/group_size if channels i, j share a group else 0, so
    # gmat @ per-channel-stats == per-group stats (no in-kernel reshapes).
    ch_mean = jnp.sum(x, axis=1, keepdims=True) * inv_t             # (C, 1)
    mean_c = jnp.dot(gmat_ref[...], ch_mean,
                     preferred_element_type=jnp.float32)            # (C, 1)
    xc = x - mean_c
    ch_var = jnp.sum(xc * xc, axis=1, keepdims=True) * inv_t        # (C, 1)
    var_c = jnp.dot(gmat_ref[...], ch_var,
                    preferred_element_type=jnp.float32)             # (C, 1)
    # Affine (gamma/beta) is folded into qkv_w/qkv_b on the host, so only the
    # raw normalization happens here; cast once to bf16 for the MXU.
    xn = (xc * jax.lax.rsqrt(var_c + eps)).astype(jnp.bfloat16)     # (C, T)

    # ---- qkv 1x1 conv == (3C, C) @ (C, T): bf16 operands, f32 accumulate ---
    qkv = jnp.dot(qkv_w_ref[...], xn,
                  preferred_element_type=jnp.float32) + qkv_b_ref[...]  # (3C,T)

    # ---- multi-head attention (heads and key chunks statically unrolled) ---
    d = C // num_heads
    n_chunks = T // key_chunk
    for h in range(num_heads):
        if new_order:                       # QKVAttention: [q | k | v] blocks
            q0, k0, v0 = h * d, C + h * d, 2 * C + h * d
        else:                               # QKVAttentionLegacy: per-head qkv
            q0 = h * 3 * d
            k0, v0 = q0 + d, q0 + 2 * d
        # q rows of qkv_w were pre-scaled by 1/sqrt(d) on the host.
        q = qkv[q0:q0 + d, :].astype(jnp.bfloat16)     # (d, T)
        k = qkv[k0:k0 + d, :].astype(jnp.bfloat16)     # (d, T)
        v = qkv[v0:v0 + d, :].astype(jnp.bfloat16)     # (d, T)

        m_run = l_run = acc = None
        for j in range(n_chunks):
            sl = slice(j * key_chunk, (j + 1) * key_chunk)
            # scores^T: keys on sublanes, queries on lanes.  Only the tiny
            # (d, kc) operand needs a transpose; the PV matmul below is a
            # fully natural MXU matmul (no (T,T) transpose anywhere).
            s = jax.lax.dot_general(k[:, sl], q, (((0,), (0,)), ((), ())),
                                    preferred_element_type=jnp.float32)  # (kc,T)
            m_j = jnp.max(s, axis=0, keepdims=True)                      # (1, T)
            if j == 0:
                m_new = m_j
                p = jnp.exp(s - m_new)                                   # (kc,T)
                l_run = jnp.sum(p, axis=0, keepdims=True)                # (1, T)
                acc = jax.lax.dot_general(                               # (d, T)
                    v[:, sl], p.astype(jnp.bfloat16),
                    (((1,), (0,)), ((), ())),
                    preferred_element_type=jnp.float32)
            else:                            # online (flash) softmax update
                m_new = jnp.maximum(m_run, m_j)
                alpha = jnp.exp(m_run - m_new)
                p = jnp.exp(s - m_new)
                l_run = alpha * l_run + jnp.sum(p, axis=0, keepdims=True)
                acc = alpha * acc + jax.lax.dot_general(
                    v[:, sl], p.astype(jnp.bfloat16),
                    (((1,), (0,)), ((), ())),
                    preferred_element_type=jnp.float32)
            m_run = m_new
        # Deferred softmax normalization: one approx reciprocal per query
        # (EUP slot) + a (d, T) multiply instead of (kc, T) divides per chunk.
        attn_ref[h * d:(h + 1) * d, :] = acc * pl.reciprocal(l_run, approx=True)

    # ---- output projection (bf16 MXU) + f32 residual -----------------------
    hproj = jnp.dot(proj_w_ref[...], attn_ref[...].astype(jnp.bfloat16),
                    preferred_element_type=jnp.float32) + proj_b_ref[...]
    o_ref[0] = (x + hproj).astype(o_ref.dtype)


# --------------------------------------------------------------------------
# Module
# --------------------------------------------------------------------------
class SpatioTemporalAttentionBlock:
    """JAX/Pallas port of the PyTorch SpatioTemporalAttentionBlock."""

    def __init__(self, channels, num_heads=1, num_head_channels=-1,
                 use_checkpoint=False, use_new_attention_order=False,
                 num_groups=32, key=None):
        self.channels = channels
        if num_head_channels == -1:
            self.num_heads = num_heads
        else:
            assert channels % num_head_channels == 0
            self.num_heads = channels // num_head_channels
        assert channels % self.num_heads == 0
        assert channels % num_groups == 0
        self.num_groups = num_groups
        self.use_new_attention_order = use_new_attention_order
        self.eps = 1e-5
        # use_checkpoint only changes backward-pass rematerialization; the
        # forward computation is identical, so it is a no-op here.
        self.use_checkpoint = use_checkpoint

        key = key if key is not None else jax.random.PRNGKey(0)
        k1, k2 = jax.random.split(key)
        # normalization(channels) -> GroupNorm(32, channels), affine default.
        self.norm_weight = jnp.ones((channels,), jnp.float32)
        self.norm_bias = jnp.zeros((channels,), jnp.float32)
        # qkv = Conv1d(C, 3C, 1): torch default U(-1/sqrt(C), 1/sqrt(C)).
        bound = 1.0 / math.sqrt(channels)
        self.qkv_weight = jax.random.uniform(
            k1, (3 * channels, channels), jnp.float32, -bound, bound)
        self.qkv_bias = jax.random.uniform(
            k2, (3 * channels,), jnp.float32, -bound, bound)
        # proj_out = zero_module(Conv1d(C, C, 1)).
        self.proj_weight = jnp.zeros((channels, channels), jnp.float32)
        self.proj_bias = jnp.zeros((channels,), jnp.float32)
        # Precomputed group-averaging matrix for in-kernel GroupNorm stats.
        cg = channels // num_groups
        gid = jnp.arange(channels) // cg
        self.group_mat = ((gid[:, None] == gid[None, :])
                          .astype(jnp.float32) / float(cg))

    def __call__(self, x):
        b, c, t, h, w = x.shape
        assert c == self.channels
        C, T = c, t * h * w
        H = self.num_heads
        d = C // H
        # f32 sublane is 8: non-multiple head dims are correct but silently
        # insert relayout copies on the per-head qkv row slices.
        assert d % 8 == 0, "head dim should be a multiple of 8 (f32 sublane)"
        xf = x.reshape(b, C, T)                 # 'b c t h w -> b c (t h w)'

        # ---- host-side folding (exact, f32): GroupNorm affine and the
        # 1/sqrt(d) attention scale (applied to q rows only) go into qkv. ----
        qkv_w = self.qkv_weight * self.norm_weight[None, :]
        qkv_b = self.qkv_weight @ self.norm_bias + self.qkv_bias
        rows = jnp.arange(3 * C)
        if self.use_new_attention_order:        # [q | k | v] channel blocks
            is_q = rows < C
        else:                                   # per-head [q k v] interleave
            is_q = (rows % (3 * d)) < d
        row_scale = jnp.where(is_q, 1.0 / math.sqrt(d), 1.0).astype(jnp.float32)
        qkv_w = (qkv_w * row_scale[:, None]).astype(jnp.bfloat16)
        qkv_b = (qkv_b * row_scale).astype(jnp.float32)
        proj_w = self.proj_weight.astype(jnp.bfloat16)

        key_chunk = _pick_key_chunk(T)

        kern = functools.partial(
            _attention_block_kernel, num_heads=H, eps=self.eps,
            new_order=self.use_new_attention_order, key_chunk=key_chunk)

        itemsize = x.dtype.itemsize
        flops = b * (8 * C * C * T + 4 * C * T * T)
        bytes_acc = (2 * b * C * T * itemsize          # x in + out
                     + 4 * C * C + 2 * 3 * C * C + 2 * C * C   # gmat + bf16 W
                     + 4 * 4 * C)                              # biases
        # Scoped-VMEM request sized from actual residency (+50% headroom).
        est = (2 * 2 * C * T * itemsize                # double-buffered in/out
               + 2 * (4 * C * C + 2 * 3 * C * C + 2 * C * C
                      + 4 * 128 * 4 * C)               # weights + padded biases
               + 9 * C * T * 4 + C * T * 2             # x/xc/qkv/attn/hproj/xn
               + 3 * key_chunk * T * 4                 # score/exp/p chunk temps
               + 4 * d * T * 4)                        # q/k/v/acc per live head
        vmem_limit = int(min(max(est * 1.5, 32 * 2**20), 100 * 2**20))

        out = pl.pallas_call(
            kern,
            out_shape=jax.ShapeDtypeStruct((b, C, T), x.dtype),
            grid=(b,),
            in_specs=[
                pl.BlockSpec((1, C, T), lambda i: (i, 0, 0)),   # x
                pl.BlockSpec((C, C), lambda i: (0, 0)),         # group-avg mat
                pl.BlockSpec((3 * C, C), lambda i: (0, 0)),     # folded qkv W (bf16)
                pl.BlockSpec((3 * C, 1), lambda i: (0, 0)),     # folded qkv b
                pl.BlockSpec((C, C), lambda i: (0, 0)),         # proj W (bf16)
                pl.BlockSpec((C, 1), lambda i: (0, 0)),         # proj b
            ],
            out_specs=pl.BlockSpec((1, C, T), lambda i: (i, 0, 0)),
            scratch_shapes=[pltpu.VMEM((C, T), jnp.float32)],   # attn accumulator
            compiler_params=pltpu.CompilerParams(
                # TODO(synk): on v7x try pltpu.CORE_PARALLEL here (2 TCs/chip)
                # and add a query-tile grid axis when b == 1 so both cores work.
                dimension_semantics=("parallel",),
                vmem_limit_bytes=vmem_limit),
            cost_estimate=pl.CostEstimate(
                flops=flops,
                transcendentals=b * H * T * T,
                bytes_accessed=bytes_acc),
        )(xf, self.group_mat, qkv_w, qkv_b.reshape(3 * C, 1),
          proj_w, self.proj_bias.reshape(C, 1))

        return out.reshape(b, c, t, h, w)       # 'b c (t h w) -> b c t h w'


# --------------------------------------------------------------------------
# Pure-JAX reference (mirrors the PyTorch semantics, pure f32)
# --------------------------------------------------------------------------
def reference_forward(mod, x):
    b, c, t, h, w = x.shape
    T = t * h * w
    xf = x.reshape(b, c, T).astype(jnp.float32)
    G, cg = mod.num_groups, c // mod.num_groups
    xg = xf.reshape(b, G, cg, T)
    mean = xg.mean(axis=(2, 3), keepdims=True)
    var = jnp.square(xg - mean).mean(axis=(2, 3), keepdims=True)
    xn = ((xg - mean) / jnp.sqrt(var + mod.eps)).reshape(b, c, T)
    xn = xn * mod.norm_weight[None, :, None] + mod.norm_bias[None, :, None]
    qkv = jnp.einsum('oc,bct->bot', mod.qkv_weight, xn,
                     precision='highest') + mod.qkv_bias[None, :, None]
    H, d = mod.num_heads, c // mod.num_heads
    scale = 1.0 / math.sqrt(math.sqrt(d))
    if mod.use_new_attention_order:
        q, k, v = jnp.split(qkv, 3, axis=1)
        q = q.reshape(b * H, d, T)
        k = k.reshape(b * H, d, T)
        v = v.reshape(b * H, d, T)
    else:
        qkv_r = qkv.reshape(b * H, 3 * d, T)
        q, k, v = qkv_r[:, :d], qkv_r[:, d:2 * d], qkv_r[:, 2 * d:]
    wts = jnp.einsum('bct,bcs->bts', q * scale, k * scale, precision='highest')
    wts = jax.nn.softmax(wts, axis=-1)
    a = jnp.einsum('bts,bcs->bct', wts, v, precision='highest').reshape(b, c, T)
    hh = jnp.einsum('oc,bct->bot', mod.proj_weight, a,
                    precision='highest') + mod.proj_bias[None, :, None]
    return (xf + hh).reshape(b, c, t, h, w)


# --------------------------------------------------------------------------
if __name__ == "__main__":
    key = jax.random.PRNGKey(0)
    kx, kp, kn = jax.random.split(key, 3)
    B, C, Tt, Hh, Ww = 2, 32, 4, 8, 8          # T = t*h*w = 256 (lane-dense)
    x = jax.random.normal(kx, (B, C, Tt, Hh, Ww), jnp.float32)

    # ---- legacy attention order (module default) ----
    mod = SpatioTemporalAttentionBlock(channels=C, num_heads=4, key=kp)
    # proj_out is zero-initialized (block == identity at init); override with
    # random weights so the full attention path is actually exercised.
    kpw, kpb, knw, knb = jax.random.split(kn, 4)
    mod.proj_weight = 0.1 * jax.random.normal(kpw, (C, C), jnp.float32)
    mod.proj_bias = 0.1 * jax.random.normal(kpb, (C,), jnp.float32)
    mod.norm_weight = 1.0 + 0.1 * jax.random.normal(knw, (C,), jnp.float32)
    mod.norm_bias = 0.1 * jax.random.normal(knb, (C,), jnp.float32)

    # The kernel uses bf16 MXU operands and an approximate softmax reciprocal
    # (per the perf guidance); the reference is pure f32, so the tolerance is
    # slightly relaxed vs. an all-f32 kernel.
    TOL = 2e-2

    y = jax.block_until_ready(mod(x))
    y_ref = reference_forward(mod, x)
    assert y.shape == x.shape, y.shape
    assert jnp.allclose(y, y_ref, atol=TOL, rtol=TOL), \
        float(jnp.max(jnp.abs(y - y_ref)))

    # ---- new attention order (QKVAttention) ----
    mod2 = SpatioTemporalAttentionBlock(channels=C, num_heads=4,
                                        use_new_attention_order=True, key=kp)
    mod2.proj_weight = mod.proj_weight
    mod2.proj_bias = mod.proj_bias
    mod2.norm_weight = mod.norm_weight
    mod2.norm_bias = mod.norm_bias
    y2 = jax.block_until_ready(mod2(x))
    y2_ref = reference_forward(mod2, x)
    assert jnp.allclose(y2, y2_ref, atol=TOL, rtol=TOL), \
        float(jnp.max(jnp.abs(y2 - y2_ref)))

    print("KERNEL_OK")
</pallas_src>

<mosaic_0001>
module attributes {stable_mosaic.version = 11 : i64} {
  func.func @_attention_block_kernel(%arg0: i32, %arg1: memref<1x32x256xf32, #tpu.memory_space<vmem>>, %arg2: memref<32x32xf32, #tpu.memory_space<vmem>>, %arg3: memref<96x32xbf16, #tpu.memory_space<vmem>>, %arg4: memref<96x1xf32, #tpu.memory_space<vmem>>, %arg5: memref<32x32xbf16, #tpu.memory_space<vmem>>, %arg6: memref<32x1xf32, #tpu.memory_space<vmem>>, %arg7: memref<1x32x256xf32, #tpu.memory_space<vmem>>, %arg8: memref<32x256xf32, #tpu.memory_space<vmem>>) attributes {dimension_semantics = [#tpu.dimension_semantics<parallel>], iteration_bounds = array<i64: 2>, scalar_prefetch = 0 : i64, scratch_operands = 1 : i64, tpu.core_type = #tpu.core_type<tc>, window_params = [{transform_indices = @transform_0, window_bounds = array<i64: 1, 32, 256>}, {pipeline_mode = #tpu.pipeline_mode<synchronous>, transform_indices = @transform_1, window_bounds = array<i64: 32, 32>}, {pipeline_mode = #tpu.pipeline_mode<synchronous>, transform_indices = @transform_2, window_bounds = array<i64: 96, 32>}, {pipeline_mode = #tpu.pipeline_mode<synchronous>, transform_indices = @transform_3, window_bounds = array<i64: 96, 1>}, {pipeline_mode = #tpu.pipeline_mode<synchronous>, transform_indices = @transform_4, window_bounds = array<i64: 32, 32>}, {pipeline_mode = #tpu.pipeline_mode<synchronous>, transform_indices = @transform_5, window_bounds = array<i64: 32, 1>}, {transform_indices = @transform_6, window_bounds = array<i64: 1, 32, 256>}]} {
    %c0 = arith.constant 0 : index
    %c0_0 = arith.constant 0 : index
    %c0_1 = arith.constant 0 : index
    %0 = vector.load %arg1[%c0, %c0_0, %c0_1] : memref<1x32x256xf32, #tpu.memory_space<vmem>>, vector<1x32x256xf32>
    %1 = vector.shape_cast %0 : vector<1x32x256xf32> to vector<32x256xf32>
    %cst = arith.constant dense<0.000000e+00> : vector<32xf32>
    %2 = vector.multi_reduction <add>, %1, %cst [1] : vector<32x256xf32> to vector<32xf32>
    %3 = vector.shape_cast %2 : vector<32xf32> to vector<32x1xf32>
    %cst_2 = arith.constant 3.906250e-03 : f32
    %4 = vector.broadcast %cst_2 : f32 to vector<32x1xf32>
    %5 = arith.mulf %3, %4 : vector<32x1xf32>
    %c0_3 = arith.constant 0 : index
    %c0_4 = arith.constant 0 : index
    %6 = vector.load %arg2[%c0_3, %c0_4] : memref<32x32xf32, #tpu.memory_space<vmem>>, vector<32x32xf32>
    %cst_5 = arith.constant dense<0.000000e+00> : vector<32x1xf32>
    %7 = tpu.matmul %6, %5, %cst_5 {dimension_numbers = #tpu.dot_dimension_numbers<[1], [0], [0], [1], [0, 0, 1, 1], [], []>} : vector<32x32xf32>, vector<32x1xf32>, vector<32x1xf32> -> vector<32x1xf32>
    %8 = vector.broadcast %7 : vector<32x1xf32> to vector<32x256xf32>
    %9 = arith.subf %1, %8 : vector<32x256xf32>
    %10 = arith.mulf %9, %9 : vector<32x256xf32>
    %cst_6 = arith.constant dense<0.000000e+00> : vector<32xf32>
    %11 = vector.multi_reduction <add>, %10, %cst_6 [1] : vector<32x256xf32> to vector<32xf32>
    %12 = vector.shape_cast %11 : vector<32xf32> to vector<32x1xf32>
    %cst_7 = arith.constant 3.906250e-03 : f32
    %13 = vector.broadcast %cst_7 : f32 to vector<32x1xf32>
    %14 = arith.mulf %12, %13 : vector<32x1xf32>
    %c0_8 = arith.constant 0 : index
    %c0_9 = arith.constant 0 : index
    %15 = vector.load %arg2[%c0_8, %c0_9] : memref<32x32xf32, #tpu.memory_space<vmem>>, vector<32x32xf32>
    %cst_10 = arith.constant dense<0.000000e+00> : vector<32x1xf32>
    %16 = tpu.matmul %15, %14, %cst_10 {dimension_numbers = #tpu.dot_dimension_numbers<[1], [0], [0], [1], [0, 0, 1, 1], [], []>} : vector<32x32xf32>, vector<32x1xf32>, vector<32x1xf32> -> vector<32x1xf32>
    %cst_11 = arith.constant 9.99999974E-6 : f32
    %17 = vector.broadcast %cst_11 : f32 to vector<32x1xf32>
    %18 = arith.addf %16, %17 : vector<32x1xf32>
    %19 = math.rsqrt %18 : vector<32x1xf32>
    %20 = vector.broadcast %19 : vector<32x1xf32> to vector<32x256xf32>
    %21 = arith.mulf %9, %20 : vector<32x256xf32>
    %22 = arith.truncf %21 : vector<32x256xf32> to vector<32x256xbf16>
    %c0_12 = arith.constant 0 : index
    %c0_13 = arith.constant 0 : index
    %23 = vector.load %arg3[%c0_12, %c0_13] : memref<96x32xbf16, #tpu.memory_space<vmem>>, vector<96x32xbf16>
    %cst_14 = arith.constant dense<0.000000e+00> : vector<96x256xf32>
    %24 = tpu.matmul %23, %22, %cst_14 {dimension_numbers = #tpu.dot_dimension_numbers<[1], [0], [0], [1], [0, 0, 1, 1], [], []>} : vector<96x32xbf16>, vector<32x256xbf16>, vector<96x256xf32> -> vector<96x256xf32>
    %c0_15 = arith.constant 0 : index
    %c0_16 = arith.constant 0 : index
    %25 = vector.load %arg4[%c0_15, %c0_16] : memref<96x1xf32, #tpu.memory_space<vmem>>, vector<96x1xf32>
    %26 = vector.broadcast %25 : vector<96x1xf32> to vector<96x256xf32>
    %27 = arith.addf %24, %26 : vector<96x256xf32>
    %28 = vector.extract_strided_slice %27 {offsets = [0, 0], sizes = [8, 256], strides = [1, 1]} : vector<96x256xf32> to vector<8x256xf32>
    %29 = arith.truncf %28 : vector<8x256xf32> to vector<8x256xbf16>
    %30 = vector.extract_strided_slice %27 {offsets = [8, 0], sizes = [8, 256], strides = [1, 1]} : vector<96x256xf32> to vector<8x256xf32>
    %31 = arith.truncf %30 : vector<8x256xf32> to vector<8x256xbf16>
    %32 = vector.extract_strided_slice %27 {offsets = [16, 0], sizes = [8, 256], strides = [1, 1]} : vector<96x256xf32> to vector<8x256xf32>
    %33 = arith.truncf %32 : vector<8x256xf32> to vector<8x256xbf16>
    %cst_17 = arith.constant dense<0.000000e+00> : vector<256x256xf32>
    %34 = tpu.matmul %31, %29, %cst_17 {dimension_numbers = #tpu.dot_dimension_numbers<[0], [0], [1], [1], [0, 1, 1, 1], [], []>} : vector<8x256xbf16>, vector<8x256xbf16>, vector<256x256xf32> -> vector<256x256xf32>
    %cst_18 = arith.constant dense<0xFF800000> : vector<256xf32>
    %35 = vector.multi_reduction <maximumf>, %34, %cst_18 [0] : vector<256x256xf32> to vector<256xf32>
    %36 = vector.shape_cast %35 : vector<256xf32> to vector<1x256xf32>
    %37 = vector.broadcast %36 : vector<1x256xf32> to vector<256x256xf32>
    %38 = arith.subf %34, %37 : vector<256x256xf32>
    %39 = math.exp %38 : vector<256x256xf32>
    %cst_19 = arith.constant dense<0.000000e+00> : vector<256xf32>
    %40 = vector.multi_reduction <add>, %39, %cst_19 [0] : vector<256x256xf32> to vector<256xf32>
    %41 = vector.shape_cast %40 : vector<256xf32> to vector<1x256xf32>
    %42 = arith.truncf %39 : vector<256x256xf32> to vector<256x256xbf16>
    %cst_20 = arith.constant dense<0.000000e+00> : vector<8x256xf32>
    %43 = tpu.matmul %33, %42, %cst_20 {dimension_numbers = #tpu.dot_dimension_numbers<[1], [0], [0], [1], [0, 0, 1, 1], [], []>} : vector<8x256xbf16>, vector<256x256xbf16>, vector<8x256xf32> -> vector<8x256xf32>
    %44 = tpu.reciprocal %41 {approx = true} : vector<1x256xf32> -> vector<1x256xf32>
    %45 = vector.broadcast %44 : vector<1x256xf32> to vector<8x256xf32>
    %46 = arith.mulf %43, %45 : vector<8x256xf32>
    %c0_21 = arith.constant 0 : index
    %c0_22 = arith.constant 0 : index
    %47 = vector.load %arg8[%c0_21, %c0_22] : memref<32x256xf32, #tpu.memory_space<vmem>>, vector<8x256xf32>
    tpu.vector_store %arg8[%c0_21, %c0_22], %46 {strides = array<i32>} : memref<32x256xf32, #tpu.memory_space<vmem>>, vector<8x256xf32>,
    %48 = vector.extract_strided_slice %27 {offsets = [24, 0], sizes = [8, 256], strides = [1, 1]} : vector<96x256xf32> to vector<8x256xf32>
    %49 = arith.truncf %48 : vector<8x256xf32> to vector<8x256xbf16>
    %50 = vector.extract_strided_slice %27 {offsets = [32, 0], sizes = [8, 256], strides = [1, 1]} : vector<96x256xf32> to vector<8x256xf32>
    %51 = arith.truncf %50 : vector<8x256xf32> to vector<8x256xbf16>
    %52 = vector.extract_strided_slice %27 {offsets = [40, 0], sizes = [8, 256], strides = [1, 1]} : vector<96x256xf32> to vector<8x256xf32>
    %53 = arith.truncf %52 : vector<8x256xf32> to vector<8x256xbf16>
    %cst_23 = arith.constant dense<0.000000e+00> : vector<256x256xf32>
    %54 = tpu.matmul %51, %49, %cst_23 {dimension_numbers = #tpu.dot_dimension_numbers<[0], [0], [1], [1], [0, 1, 1, 1], [], []>} : vector<8x256xbf16>, vector<8x256xbf16>, vector<256x256xf32> -> vector<256x256xf32>
    %cst_24 = arith.constant dense<0xFF800000> : vector<256xf32>
    %55 = vector.multi_reduction <maximumf>, %54, %cst_24 [0] : vector<256x256xf32> to vector<256xf32>
    %56 = vector.shape_cast %55 : vector<256xf32> to vector<1x256xf32>
    %57 = vector.broadcast %56 : vector<1x256xf32> to vector<256x256xf32>
    %58 = arith.subf %54, %57 : vector<256x256xf32>
    %59 = math.exp %58 : vector<256x256xf32>
    %cst_25 = arith.constant dense<0.000000e+00> : vector<256xf32>
    %60 = vector.multi_reduction <add>, %59, %cst_25 [0] : vector<256x256xf32> to vector<256xf32>
    %61 = vector.shape_cast %60 : vector<256xf32> to vector<1x256xf32>
    %62 = arith.truncf %59 : vector<256x256xf32> to vector<256x256xbf16>
    %cst_26 = arith.constant dense<0.000000e+00> : vector<8x256xf32>
    %63 = tpu.matmul %53, %62, %cst_26 {dimension_numbers = #tpu.dot_dimension_numbers<[1], [0], [0], [1], [0, 0, 1, 1], [], []>} : vector<8x256xbf16>, vector<256x256xbf16>, vector<8x256xf32> -> vector<8x256xf32>
    %64 = tpu.reciprocal %61 {approx = true} : vector<1x256xf32> -> vector<1x256xf32>
    %65 = vector.broadcast %64 : vector<1x256xf32> to vector<8x256xf32>
    %66 = arith.mulf %63, %65 : vector<8x256xf32>
    %c8 = arith.constant 8 : index
    %c0_27 = arith.constant 0 : index
    %67 = vector.load %arg8[%c8, %c0_27] : memref<32x256xf32, #tpu.memory_space<vmem>>, vector<8x256xf32>
    tpu.vector_store %arg8[%c8, %c0_27], %66 {strides = array<i32>} : memref<32x256xf32, #tpu.memory_space<vmem>>, vector<8x256xf32>,
    %68 = vector.extract_strided_slice %27 {offsets = [48, 0], sizes = [8, 256], strides = [1, 1]} : vector<96x256xf32> to vector<8x256xf32>
    %69 = arith.truncf %68 : vector<8x256xf32> to vector<8x256xbf16>
    %70 = vector.extract_strided_slice %27 {offsets = [56, 0], sizes = [8, 256], strides = [1, 1]} : vector<96x256xf32> to vector<8x256xf32>
    %71 = arith.truncf %70 : vector<8x256xf32> to vector<8x256xbf16>
    %72 = vector.extract_strided_slice %27 {offsets = [64, 0], sizes = [8, 256], strides = [1, 1]} : vector<96x256xf32> to vector<8x256xf32>
    %73 = arith.truncf %72 : vector<8x256xf32> to vector<8x256xbf16>
    %cst_28 = arith.constant dense<0.000000e+00> : vector<256x256xf32>
    %74 = tpu.matmul %71, %69, %cst_28 {dimension_numbers = #tpu.dot_dimension_numbers<[0], [0], [1], [1], [0, 1, 1, 1], [], []>} : vector<8x256xbf16>, vector<8x256xbf16>, vector<256x256xf32> -> vector<256x256xf32>
    %cst_29 = arith.constant dense<0xFF800000> : vector<256xf32>
    %75 = vector.multi_reduction <maximumf>, %74, %cst_29 [0] : vector<256x256xf32> to vector<256xf32>
    %76 = vector.shape_cast %75 : vector<256xf32> to vector<1x256xf32>
    %77 = vector.broadcast %76 : vector<1x256xf32> to vector<256x256xf32>
    %78 = arith.subf %74, %77 : vector<256x256xf32>
    %79 = math.exp %78 : vector<256x256xf32>
    %cst_30 = arith.constant dense<0.000000e+00> : vector<256xf32>
    %80 = vector.multi_reduction <add>, %79, %cst_30 [0] : vector<256x256xf32> to vector<256xf32>
    %81 = vector.shape_cast %80 : vector<256xf32> to vector<1x256xf32>
    %82 = arith.truncf %79 : vector<256x256xf32> to vector<256x256xbf16>
    %cst_31 = arith.constant dense<0.000000e+00> : vector<8x256xf32>
    %83 = tpu.matmul %73, %82, %cst_31 {dimension_numbers = #tpu.dot_dimension_numbers<[1], [0], [0], [1], [0, 0, 1, 1], [], []>} : vector<8x256xbf16>, vector<256x256xbf16>, vector<8x256xf32> -> vector<8x256xf32>
    %84 = tpu.reciprocal %81 {approx = true} : vector<1x256xf32> -> vector<1x256xf32>
    %85 = vector.broadcast %84 : vector<1x256xf32> to vector<8x256xf32>
    %86 = arith.mulf %83, %85 : vector<8x256xf32>
    %c16 = arith.constant 16 : index
    %c0_32 = arith.constant 0 : index
    %87 = vector.load %arg8[%c16, %c0_32] : memref<32x256xf32, #tpu.memory_space<vmem>>, vector<8x256xf32>
    tpu.vector_store %arg8[%c16, %c0_32], %86 {strides = array<i32>} : memref<32x256xf32, #tpu.memory_space<vmem>>, vector<8x256xf32>,
    %88 = vector.extract_strided_slice %27 {offsets = [72, 0], sizes = [8, 256], strides = [1, 1]} : vector<96x256xf32> to vector<8x256xf32>
    %89 = arith.truncf %88 : vector<8x256xf32> to vector<8x256xbf16>
    %90 = vector.extract_strided_slice %27 {offsets = [80, 0], sizes = [8, 256], strides = [1, 1]} : vector<96x256xf32> to vector<8x256xf32>
    %91 = arith.truncf %90 : vector<8x256xf32> to vector<8x256xbf16>
    %92 = vector.extract_strided_slice %27 {offsets = [88, 0], sizes = [8, 256], strides = [1, 1]} : vector<96x256xf32> to vector<8x256xf32>
    %93 = arith.truncf %92 : vector<8x256xf32> to vector<8x256xbf16>
    %cst_33 = arith.constant dense<0.000000e+00> : vector<256x256xf32>
    %94 = tpu.matmul %91, %89, %cst_33 {dimension_numbers = #tpu.dot_dimension_numbers<[0], [0], [1], [1], [0, 1, 1, 1], [], []>} : vector<8x256xbf16>, vector<8x256xbf16>, vector<256x256xf32> -> vector<256x256xf32>
    %cst_34 = arith.constant dense<0xFF800000> : vector<256xf32>
    %95 = vector.multi_reduction <maximumf>, %94, %cst_34 [0] : vector<256x256xf32> to vector<256xf32>
    %96 = vector.shape_cast %95 : vector<256xf32> to vector<1x256xf32>
    %97 = vector.broadcast %96 : vector<1x256xf32> to vector<256x256xf32>
    %98 = arith.subf %94, %97 : vector<256x256xf32>
    %99 = math.exp %98 : vector<256x256xf32>
    %cst_35 = arith.constant dense<0.000000e+00> : vector<256xf32>
    %100 = vector.multi_reduction <add>, %99, %cst_35 [0] : vector<256x256xf32> to vector<256xf32>
    %101 = vector.shape_cast %100 : vector<256xf32> to vector<1x256xf32>
    %102 = arith.truncf %99 : vector<256x256xf32> to vector<256x256xbf16>
    %cst_36 = arith.constant dense<0.000000e+00> : vector<8x256xf32>
    %103 = tpu.matmul %93, %102, %cst_36 {dimension_numbers = #tpu.dot_dimension_numbers<[1], [0], [0], [1], [0, 0, 1, 1], [], []>} : vector<8x256xbf16>, vector<256x256xbf16>, vector<8x256xf32> -> vector<8x256xf32>
    %104 = tpu.reciprocal %101 {approx = true} : vector<1x256xf32> -> vector<1x256xf32>
    %105 = vector.broadcast %104 : vector<1x256xf32> to vector<8x256xf32>
    %106 = arith.mulf %103, %105 : vector<8x256xf32>
    %c24 = arith.constant 24 : index
    %c0_37 = arith.constant 0 : index
    %107 = vector.load %arg8[%c24, %c0_37] : memref<32x256xf32, #tpu.memory_space<vmem>>, vector<8x256xf32>
    tpu.vector_store %arg8[%c24, %c0_37], %106 {strides = array<i32>} : memref<32x256xf32, #tpu.memory_space<vmem>>, vector<8x256xf32>,
    %c0_38 = arith.constant 0 : index
    %c0_39 = arith.constant 0 : index
    %108 = vector.load %arg5[%c0_38, %c0_39] : memref<32x32xbf16, #tpu.memory_space<vmem>>, vector<32x32xbf16>
    %c0_40 = arith.constant 0 : index
    %c0_41 = arith.constant 0 : index
    %109 = vector.load %arg8[%c0_40, %c0_41] : memref<32x256xf32, #tpu.memory_space<vmem>>, vector<32x256xf32>
    %110 = arith.truncf %109 : vector<32x256xf32> to vector<32x256xbf16>
    %cst_42 = arith.constant dense<0.000000e+00> : vector<32x256xf32>
    %111 = tpu.matmul %108, %110, %cst_42 {dimension_numbers = #tpu.dot_dimension_numbers<[1], [0], [0], [1], [0, 0, 1, 1], [], []>} : vector<32x32xbf16>, vector<32x256xbf16>, vector<32x256xf32> -> vector<32x256xf32>
    %c0_43 = arith.constant 0 : index
    %c0_44 = arith.constant 0 : index
    %112 = vector.load %arg6[%c0_43, %c0_44] : memref<32x1xf32, #tpu.memory_space<vmem>>, vector<32x1xf32>
    %113 = vector.broadcast %112 : vector<32x1xf32> to vector<32x256xf32>
    %114 = arith.addf %111, %113 : vector<32x256xf32>
    %115 = arith.addf %1, %114 : vector<32x256xf32>
    %c0_45 = arith.constant 0 : index
    %c0_46 = arith.constant 0 : index
    %c0_47 = arith.constant 0 : index
    %116 = vector.load %arg7[%c0_45, %c0_46, %c0_47] : memref<1x32x256xf32, #tpu.memory_space<vmem>>, vector<1x32x256xf32>
    %117 = vector.shape_cast %116 : vector<1x32x256xf32> to vector<32x256xf32>
    %118 = vector.shape_cast %115 : vector<32x256xf32> to vector<1x32x256xf32>
    tpu.vector_store %arg7[%c0_45, %c0_46, %c0_47], %118 {strides = array<i32>} : memref<1x32x256xf32, #tpu.memory_space<vmem>>, vector<1x32x256xf32>,
    return
  }
  func.func @transform_0(%arg0: i32) -> (i32, i32, i32) {
    %c0_i32 = arith.constant 0 : i32
    %c0_i32_0 = arith.constant 0 : i32
    %c0_i32_1 = arith.constant 0 : i32
    return %arg0, %c0_i32, %c0_i32_0 : i32, i32, i32
  }
  func.func @transform_1(%arg0: i32) -> (i32, i32) {
    %c0_i32 = arith.constant 0 : i32
    %c0_i32_0 = arith.constant 0 : i32
    %c0_i32_1 = arith.constant 0 : i32
    return %c0_i32, %c0_i32_0 : i32, i32
  }
  func.func @transform_2(%arg0: i32) -> (i32, i32) {
    %c0_i32 = arith.constant 0 : i32
    %c0_i32_0 = arith.constant 0 : i32
    %c0_i32_1 = arith.constant 0 : i32
    return %c0_i32, %c0_i32_0 : i32, i32
  }
  func.func @transform_3(%arg0: i32) -> (i32, i32) {
    %c0_i32 = arith.constant 0 : i32
    %c0_i32_0 = arith.constant 0 : i32
    %c0_i32_1 = arith.constant 0 : i32
    return %c0_i32, %c0_i32_0 : i32, i32
  }
  func.func @transform_4(%arg0: i32) -> (i32, i32) {
    %c0_i32 = arith.constant 0 : i32
    %c0_i32_0 = arith.constant 0 : i32
    %c0_i32_1 = arith.constant 0 : i32
    return %c0_i32, %c0_i32_0 : i32, i32
  }
  func.func @transform_5(%arg0: i32) -> (i32, i32) {
    %c0_i32 = arith.constant 0 : i32
    %c0_i32_0 = arith.constant 0 : i32
    %c0_i32_1 = arith.constant 0 : i32
    return %c0_i32, %c0_i32_0 : i32, i32
  }
  func.func @transform_6(%arg0: i32) -> (i32, i32, i32) {
    %c0_i32 = arith.constant 0 : i32
    %c0_i32_0 = arith.constant 0 : i32
    %c0_i32_1 = arith.constant 0 : i32
    return %arg0, %c0_i32, %c0_i32_0 : i32, i32, i32
  }
}

</mosaic_0001>

<bundles_post_ra>
// kernel: tpu_custom_call.1
= control target key start
LH: loop header
LB: loop body
LE: loop exit
PB: predicated region body
PF: predicated region fallthrough
CT: control target
= control target key end

     0   :  { %11 = vsyncpa [#allocation4], 0  ;;  %s7840_s0 = inlined_call_operand.vmem [shape: f32[2,32,256], index: 0, kind: input, shape index: {}]   ;;  %s7841_s1 = inlined_call_operand.vmem [shape: f32[32,32], index: 1, kind: input, shape index: {}]   ;;  %s7842_s2 = inlined_call_operand.vmem [shape: bf16[96,32], index: 2, kind: input, shape index: {}]   ;;  %s7843_s3 = inlined_call_operand.vmem [shape: f32[96,1], index: 3, kind: input, shape index: {}]   ;;  %s7844_s4 = inlined_call_operand.vmem [shape: bf16[32,32], index: 4, kind: input, shape index: {}]   ;;  %s7845_s5 = inlined_call_operand.vmem [shape: f32[32,1], index: 5, kind: input, shape index: {}]   ;;  %s7846_s6 = inlined_call_operand.hbm [shape: f32[2,32,256], index: 6, kind: output, shape index: {}]  }
   0x1   :  { %13 = vsyncpa [#allocation4 + $0x1], 0  ;;  %s4659_s21 = smov 0   ;;  %s4661_s22 = smov 0  }
   0x2   :  { %s4663_s23 = smov 0   ;;  %s4665_s24 = smov 0  }
   0x3 LB: > { %s4680_s25 = sadd.s32 4294967295, %s4618_s24   ;;  %s3794_s26 = sadd.s32 4294967294, %s4618_s24   ;;  %s4618_s24 = sphi %s4665_s24, %s8580_s24   ;;  %s4614_s23 = sphi %s4663_s23, %s8579_s23   ;;  %s4610_s22 = sphi %s4661_s22, %s8578_s22   ;;  %s4606_s21 = sphi %s4659_s21, %s8577_s21  }
   0x4   : > { %s4684_s27 = sadd.s32 1, %s4618_s24   ;;  %s157_s28 = sadd.s32 1, %s4614_s23 }
   0x5   : > { %s154_s29 = ssub.s32 %s4618_s24, %s4684_s27  ;;  %p167_p0 = scmp.ne.s32.totalorder %s4614_s23, %s4610_s22 }
   0x6   : > { %p155_p1 = scmp.eq.s32.totalorder %s154_s29, 0  ;;  %p168_p2 = scmp.eq.s32.totalorder %s4680_s25, 1 }
   0x7   : > { %p173_p3 = scmp.ne.s32.totalorder %s4610_s22, %s4606_s21  ;;  %p174_p4 = scmp.eq.s32.totalorder %s3794_s26, 1 }
   0x8   : > { %s4695_s30 = scalar_select %p155_p1, %s4614_s23, %s157_s28  }
   0x9   : > { %p4697_p5 = por %p168_p2, %p167_p0  ;;  %p4701_p6 = por %p174_p4, %p173_p3 }
   0xa   : > { %p3797_p7 = scmp.ge.s32.totalorder %s4618_s24, 1  ;;  %p215_p8 = scmp.lt.s32.totalorder %s4618_s24, 3 }
   0xc   : > { %p216_p9 = pnand %p3797_p7, %p215_p8 }
   0xe   : > { %219 = sbr.rel (%p216_p9) target bundleno = 3758 (0xeae), region = 44 }
  0x15   : > { %p245_p10 = scmp.lt.s32.totalorder %s4680_s25, 1  ;;  %v275_v12 = vld [vmem:[%s7841_s1] sm:$0xff]  ;;  %vm279_vm0 = vcmask 261120   ;;  %v7847_v13 = vmov 0   ;;  %v276_v24 = vld [vmem:[%s7841_s1 + $0x8] sm:$0xff]  ;;  %v277_v25 = vld [vmem:[%s7841_s1 + $0x10] sm:$0xff] }
  0x16   : > { %3924 = vmatprep.mubr.msk.f32.mxu1 %vm279_vm0, %v275_v12  ;;  %4003 = vset.pattern.permute.xlu1 %v7847_v13  ;;  %v278_v26 = vld [vmem:[%s7841_s1 + $0x18] sm:$0xff]  ;;  %vm862_vm1 = vcmask 1043456   ;;  %vm813_vm2 = vcmask 64512   ;;  %s242_s14 = sand.u32 1, %s4610_s22   ;;  %s3899_s17 = sshll.u32 %s4680_s25, 10 }
  0x17   : > { %s246_s9 = scalar_select %p245_p10, %s4680_s25, 1  ;;  %4002 = vset.pattern.permute.xlu0 %v7847_v13  ;;  %714 = vmatprep.mubr.bf16.mxu0 %v7847_v13 }
  0x18   : > { %s3798_s15 = sshll.u32 %s242_s14, 6  ;;  %s7789_s26 = scalar_lea.hbm %s7846_s6, %s3899_s17 }
  0x19   : > { %s3898_s10 = sshll.u32 %s246_s9, 6  ;;  %s7772_s16 = scalar_lea.vmem [#allocation3], %s3798_s15 }
  0x1a   : > { %s4712_s13 = scalar_lea.vmem %s7840_s0, %s3898_s10  ;;  %s3732_s18 = sshll.u32 %s7772_s16, 4  ;;  %s7791_s18 = int_to_ptr.vmem [resolvable:$true] %s3732_s18 }
  0x1b   : > { %v4715_v0 = vld [vmem:[%s4712_s13 + $0x20] sm:$0xff]  ;;  %v4718_v1 = vld [vmem:[%s4712_s13 + $0x28] sm:$0xff]  ;;  %v4725_v5 = vld [vmem:[%s4712_s13 + $0x30] sm:$0xff]  ;;  %s7799_s25 = scalar_lea.sflag [#allocation4], %s242_s14  ;;  %s4556_s28 = scalar_lea.vmem %s7791_s18, 1024 }
  0x1c   : > { %v251_v2 = vld [vmem:[%s4712_s13] sm:$0xff]  ;;  %v265_v3 = vadd.f32 %v4718_v1, %v4715_v0  ;;  %v252_v4 = vld [vmem:[%s4712_s13 + $0x8] sm:$0xff]  ;;  %v4728_v6 = vld [vmem:[%s4712_s13 + $0x38] sm:$0xff]  ;;  %p4557_p11 = scmp.ne.s32.totalorder %s7791_s18, %s4556_s28  ;;  %s4621_s29 = smov [#allocation3]  }
  0x1d   : > { %v259_v7 = vadd.f32 %v252_v4, %v251_v2  ;;  %v253_v8 = vld [vmem:[%s4712_s13 + $0x10] sm:$0xff]  ;;  %v254_v9 = vld [vmem:[%s4712_s13 + $0x18] sm:$0xff]  ;;  %v268_v10 = vadd.f32 %v4728_v6, %v4725_v5  ;;  %s4560_s9 = sshll.u32 %s4621_s29, 4  ;;  %s4561_s9 = int_to_ptr.vmem [resolvable:$false] %s4560_s9 }
  0x1e   : > { %266 = vadd.xlane.f32.xlu1 %v265_v3  ;;  %v262_v11 = vadd.f32 %v254_v9, %v253_v8  ;;  %p4558_p12 = pnand %p4557_p11, %p4697_p5  ;;  %s4562_s10 = scalar_lea.vmem %s4561_s9, 2048 }
  0x1f   : > { %260 = vadd.xlane.f32.xlu0 %v259_v7  ;;  %p4563_p0 = scmp.lt.s32.totalorder %s7791_s18, %s4561_s9  ;;  %p4564_p1 = scmp.lt.s32.totalorder %s4562_s10, %s4556_s28 }
  0x20   : > { %p4559_p13 = pneg %p4558_p12 }
  0x21   : > { %p4565_p2 = por %p4564_p1, %p4563_p0 }
  0x22   : > { %269 = vadd.xlane.f32.xlu1 %v268_v10 }
  0x23   : > { %263 = vadd.xlane.f32.xlu0 %v262_v11  ;;  %v562_v11 = vld [vmem:[%s7843_s3] sm:$0xff]  ;;  %p4566_p3 = pnand %p4565_p2, %p4559_p13 }
  0xab   : > { %v267_v14 = vpop.xlane.xlu1 %266 }
  0xac   : > { %v261_v15 = vpop.xlane.xlu0 %260  ;;  %v273_v18 = vmul.f32 0.00390625, %v267_v14 }
  0xad   : > { %v271_v19 = vmul.f32 0.00390625, %v261_v15  ;;  %v563_v15 = vld [vmem:[%s7843_s3 + $0x8] sm:$0xff] }
  0xaf   : > { %v270_v16 = vpop.xlane.xlu1 %269 }
  0xb0   : > { %v264_v17 = vpop.xlane.xlu0 %263  ;;  %v274_v20 = vmul.f32 0.00390625, %v270_v16 }
  0xb1   : > { %v272_v21 = vmul.f32 0.00390625, %v264_v17 }
  0xb2   : > { %v3948_v23 = vpack.c.bf16 %v274_v20, %v273_v18 }
  0xb3   : > { %v3944_v22 = vpack.c.bf16 %v272_v21, %v271_v19 }
  0xb5   : > { %3945 = vmatprep.subr.bf16.mxu1 %v3944_v22 }
  0xb6   : > { %3947 = vmatpush3.bf16.msra.mxu1 %v3944_v22 }
  0xb7   : > { %3949 = vmatprep.subr.bf16.mxu1 %v3948_v23 }
  0xba   : > { %3951 = vmatpush3.bf16.msra.mxu1 %v3948_v23 }
  0xbd   : > { %3925 = vmatmul.mubr.msk.f32.vlgmr.msra.gmra.mrb[0].mxu1 %vm279_vm0, %v276_v24 }
  0xbe   : > { %3927 = vmatprep.mubr.msk.f32.mxu1 %vm279_vm0, %v277_v25 }
  0xc1   : > { %3928 = vmatmul.mubr.msk.f32.gmra.mrb[2].mxu1 %vm279_vm0, %v278_v26 }
  0xc2   : > { %3938 = vmatprep.mubr.msk.f32.mxu1 %vm279_vm0, %v275_v12 }
 0x190   : > { %v3926_v27 = vpop.f32.mrb[0].mxu1 }
 0x191   : > { %384 = vperm.xlu1 %4003, %v3926_v27   ;;  %v358_v28 = vpop.f32.mrb[1].mxu1 }
 0x192   : > { %379 = vperm.xlu0 %4002, %v358_v28  }
 0x194   : > { %v3929_v29 = vpop.f32.mrb[2].mxu1 }
 0x195   : > { %v368_v30 = vpop.f32.mrb[3].mxu1 }
 0x196   : > { %389 = vperm.xlu1 %4003, %v368_v30  }
 0x19a   : > { %394 = vperm.xlu1 %4003, %v3929_v29  }
 0x210   : > { %v385_v31 = vpop.permute.xlu1 %384 }
 0x211   : > { %v4754_v32 = vsub.f32 %v253_v8, %v385_v31  ;;  %v4756_v33 = vsub.f32 %v254_v9, %v385_v31  ;;  %v380_v34 = vpop.permute.xlu0 %379 }
 0x212   : > { %v4758_v35 = vsub.f32 %v251_v2, %v380_v34  ;;  %v4760_v36 = vsub.f32 %v252_v4, %v380_v34  ;;  %v4006_v34 = vld [vmem:[%s7842_s2 + $0x10] sm:$0xff]  }
 0x213   : > { %v407_v37 = vmul.f32 %v4754_v32, %v4754_v32  ;;  %v408_v38 = vmul.f32 %v4756_v33, %v4756_v33 }
 0x214   : > { %v405_v39 = vmul.f32 %v4758_v35, %v4758_v35  ;;  %v406_v40 = vmul.f32 %v4760_v36, %v4760_v36 }
 0x215   : > { %v390_v41 = vpop.permute.xlu1 %389  ;;  %v416_v42 = vadd.f32 %v408_v38, %v407_v37 }
 0x216   : > { %v4771_v43 = vsub.f32 %v4715_v0, %v390_v41  ;;  %v4774_v44 = vsub.f32 %v4718_v1, %v390_v41  ;;  %v413_v45 = vadd.f32 %v406_v40, %v405_v39 }
 0x217   : > { %417 = vadd.xlane.f32.xlu0 %v416_v42 }
 0x218   : > { %414 = vadd.xlane.f32.xlu1 %v413_v45  ;;  %v409_v46 = vmul.f32 %v4771_v43, %v4771_v43  ;;  %v410_v47 = vmul.f32 %v4774_v44, %v4774_v44 }
 0x219   : > { %v395_v48 = vpop.permute.xlu1 %394 }
 0x21a   : > { %v4781_v49 = vsub.f32 %v4725_v5, %v395_v48  ;;  %v4784_v50 = vsub.f32 %v4728_v6, %v395_v48  ;;  %v419_v51 = vadd.f32 %v410_v47, %v409_v46 }
 0x21c   : > { %420 = vadd.xlane.f32.xlu1 %v419_v51  ;;  %v411_v52 = vmul.f32 %v4781_v49, %v4781_v49  ;;  %v412_v53 = vmul.f32 %v4784_v50, %v4784_v50  ;;  %v4008_v51 = vld [vmem:[%s7842_s2 + $0x20] sm:$0xff]  }
 0x21e   : > { %v422_v54 = vadd.f32 %v412_v53, %v411_v52 }
 0x220   : > { %423 = vadd.xlane.f32.xlu1 %v422_v54  ;;  %v564_v54 = vld [vmem:[%s7843_s3 + $0x10] sm:$0xff] }
 0x2a4   : > { %v418_v55 = vpop.xlane.xlu0 %417 }
 0x2a5   : > { %v426_v56 = vmul.f32 0.00390625, %v418_v55  ;;  %v415_v57 = vpop.xlane.xlu1 %414  ;;  %v565_v55 = vld [vmem:[%s7843_s3 + $0x18] sm:$0xff] }
 0x2a6   : > { %v425_v58 = vmul.f32 0.00390625, %v415_v57 }
 0x2a8   : > { %v3952_v59 = vpack.c.bf16 %v426_v56, %v425_v58  ;;  %v4009_v56 = vld [vmem:[%s7842_s2 + $0x28] sm:$0xff]   ;;  %v566_v58 = vld [vmem:[%s7843_s3 + $0x20] sm:$0xff] }
 0x2a9   : > { %v421_v60 = vpop.xlane.xlu1 %420 }
 0x2aa   : > { %3953 = vmatprep.subr.bf16.mxu1 %v3952_v59  ;;  %v427_v62 = vmul.f32 0.00390625, %v421_v60 }
 0x2ab   : > { %3955 = vmatpush3.bf16.msra.mxu1 %v3952_v59 }
 0x2ad   : > { %v424_v61 = vpop.xlane.xlu1 %423 }
 0x2ae   : > { %v428_v63 = vmul.f32 0.00390625, %v424_v61 }
 0x2b0   : > { %v3956_v0 = vpack.c.bf16 %v428_v63, %v427_v62 }
 0x2b2   : > { %3957 = vmatprep.subr.bf16.mxu1 %v3956_v0 }
 0x2b3   : > { %3959 = vmatpush3.bf16.msra.mxu1 %v3956_v0 }
 0x2b6   : > { %3939 = vmatmul.mubr.msk.f32.vlgmr.msra.gmra.mrb[4].mxu1 %vm279_vm0, %v276_v24 }
 0x2b7   : > { %3941 = vmatprep.mubr.msk.f32.mxu1 %vm279_vm0, %v277_v25 }
 0x2ba   : > { %3942 = vmatmul.mubr.msk.f32.gmra.mrb[6].mxu1 %vm279_vm0, %v278_v26 }
 0x2bb   : > { %901 = vmatprep.mubr.bf16.mxu1 %v7847_v13 }
 0x389   : > { %v3940_v1 = vpop.f32.mrb[4].mxu1 }
 0x38a   : > { %v501_v2 = vadd.f32 1e-05, %v3940_v1  ;;  %v495_v3 = vpop.f32.mrb[5].mxu1 }
 0x38b   : > { %v496_v4 = vadd.f32 1e-05, %v495_v3 }
 0x38c   : > { %4012 = vrsqrt.f32 %v501_v2 }
 0x38d   : > { %4014 = vrsqrt.f32 %v496_v4  ;;  %v3943_v5 = vpop.f32.mrb[6].mxu1 }
 0x38e   : > { %v505_v6 = vpop.f32.mrb[7].mxu1  ;;  %v511_v8 = vadd.f32 1e-05, %v3943_v5 }
 0x38f   : > { %v506_v7 = vadd.f32 1e-05, %v505_v6 }
 0x391   : > { %4016 = vrsqrt.f32 %v506_v7 }
 0x392   : > { %4018 = vrsqrt.f32 %v511_v8 }
 0x396   : > { %v4013_v9 = vpop.eup %4012 }
 0x397   : > { %v4015_v10 = vpop.eup %4014  ;;  %525 = vperm.xlu0 %4002, %v4013_v9  }
 0x398   : > { %520 = vperm.xlu1 %4003, %v4015_v10  }
 0x39b   : > { %v4017_v12 = vpop.eup %4016  ;;  %576 = vperm.xlu0 %4002, %v562_v11  }
 0x39c   : > { %530 = vperm.xlu1 %4003, %v4017_v12   ;;  %v4019_v14 = vpop.eup %4018 }
 0x3a0   : > { %535 = vperm.xlu1 %4003, %v4019_v14  }
 0x3a4   : > { %581 = vperm.xlu1 %4003, %v563_v15  }
 0x416   : > { %v526_v16 = vpop.permute.xlu0 %525 }
 0x417   : > { %v540_v17 = vmul.f32 %v526_v16, %v4754_v32  ;;  %v541_v18 = vmul.f32 %v526_v16, %v4756_v33  ;;  %v521_v19 = vpop.permute.xlu1 %520  ;;  %v4004_v32 = vld [vmem:[%s7842_s2] sm:$0xff]   ;;  %v4005_v33 = vld [vmem:[%s7842_s2 + $0x8] sm:$0xff]  }
 0x418   : > { %v538_v20 = vmul.f32 %v521_v19, %v4758_v35  ;;  %v539_v21 = vmul.f32 %v521_v19, %v4760_v36  ;;  %v4007_v35 = vld [vmem:[%s7842_s2 + $0x18] sm:$0xff]  }
 0x41a   : > { %v547_v22 = vpack.c.bf16 %v541_v18, %v539_v21  ;;  %v546_v23 = vpack.c.bf16 %v540_v17, %v538_v20  ;;  %v577_v36 = vpop.permute.xlu0 %576 }
 0x41b   : > { %v531_v24 = vpop.permute.xlu1 %530 }
 0x41c   : > { %682 = vmatprep.subr.bf16.mxu0 %v547_v22  ;;  %v542_v26 = vmul.f32 %v531_v24, %v4771_v43  ;;  %v543_v27 = vmul.f32 %v531_v24, %v4774_v44 }
 0x41d   : > { %683 = vmatpush1.bf16.msra.mxu0 %v546_v23 }
 0x41f   : > { %v536_v25 = vpop.permute.xlu1 %535 }
 0x420   : > { %v544_v28 = vmul.f32 %v536_v25, %v4781_v49  ;;  %v545_v29 = vmul.f32 %v536_v25, %v4784_v50  ;;  %v567_v25 = vld [vmem:[%s7843_s3 + $0x28] sm:$0xff] }
 0x422   : > { %v548_v30 = vpack.c.bf16 %v544_v28, %v542_v26  ;;  %v549_v31 = vpack.c.bf16 %v545_v29, %v543_v27  ;;  %v569_v28 = vld [vmem:[%s7843_s3 + $0x38] sm:$0xff] }
 0x423   : > { %v582_v40 = vpop.permute.xlu1 %581 }
 0x424   : > { %684 = vmatprep.subr.bf16.mxu0 %v549_v31 }
 0x425   : > { %685 = vmatpush1.bf16.msra.mxu0 %v548_v30 }
 0x428   : > { %3815 = vmatmul.mubr.msk.bf16.vlgmr.msra.gmra.mrb[0].mxu0 %vm279_vm0, %v4004_v32  ;;  %v568_v32 = vld [vmem:[%s7843_s3 + $0x30] sm:$0xff] }
 0x429   : > { %724 = vmatprep.mubr.bf16.mxu0 %v7847_v13 }
 0x430   : > { %3816 = vmatmul.mubr.msk.bf16.gmra.mrb[4].mxu0 %vm279_vm0, %v4005_v33 }
 0x431   : > { %734 = vmatprep.mubr.bf16.mxu0 %v7847_v13 }
 0x438   : > { %3817 = vmatmul.mubr.msk.bf16.gmra.mrb[8].mxu0 %vm279_vm0, %v4006_v34 }
 0x439   : > { %744 = vmatprep.mubr.bf16.mxu0 %v7847_v13 }
 0x440   : > { %3818 = vmatmul.mubr.msk.bf16.gmra.mrb[12].mxu0 %vm279_vm0, %v4007_v35 }
 0x441   : > { %754 = vmatprep.mubr.bf16.mxu0 %v7847_v13 }
 0x448   : > { %3819 = vmatmul.mubr.msk.bf16.gmra.mrb[16].mxu0 %vm279_vm0, %v4008_v51 }
 0x449   : > { %764 = vmatprep.mubr.bf16.mxu0 %v7847_v13 }
 0x450   : > { %3820 = vmatmul.mubr.msk.bf16.gmra.mrb[20].mxu0 %vm279_vm0, %v4009_v56 }
 0x4fb   : > { %v716_v37 = vpop.f32.mrb[0].mxu0 }
 0x4fc   : > { %v717_v38 = vadd.f32 %v716_v37, %v577_v36  ;;  %v718_v39 = vpop.f32.mrb[1].mxu0 }
 0x4fd   : > { %v719_v41 = vadd.f32 %v718_v39, %v577_v36  ;;  %v720_v42 = vpop.f32.mrb[2].mxu0 }
 0x4fe   : > { %v775_v43 = vpack.c.bf16 %v717_v38, %v717_v38  ;;  %v721_v44 = vadd.f32 %v720_v42, %v582_v40  ;;  %v722_v45 = vpop.f32.mrb[3].mxu0 }
 0x4ff   : > { %v776_v46 = vpack.c.bf16 %v719_v41, %v719_v41  ;;  %v723_v47 = vadd.f32 %v722_v45, %v582_v40 }
 0x500   : > { %v864_v48 = vsel %vm862_vm1, %v775_v43, 0  ;;  %v777_v49 = vpack.c.bf16 %v721_v44, %v721_v44 }
 0x501   : > { %v778_v50 = vpack.c.bf16 %v723_v47, %v723_v47  ;;  %3821 = vmatprep.subr.msk.bf16.mxu1 %vm862_vm1, %v776_v46 }
 0x502   : > { %870 = vmatpush1.bf16.msra.mxu1 %v864_v48  ;;  %781 = vxpose.xlu1.c.b16.start.end [1/1] (short) %v777_v49, 128 }
 0x503   : > { %797 = vxpose.xlu0.c.b16.start.end [1/1] (short) %v778_v50, 128  ;;  %v726_v52 = vpop.f32.mrb[4].mxu0 }
 0x504   : > { %v728_v53 = vpop.f32.mrb[5].mxu0 }
 0x505   : > { %v4844_v57 = vpop.f32.mrb[6].mxu0 }
 0x506   : > { %8031 = vst [vmem:[#allocation6_spill] sm:$0xff] %v4844_v57  ;;  %v4849_v59 = vpop.f32.mrb[7].mxu0 }
 0x507   : > { %8032 = vst [vmem:[#allocation7_spill] sm:$0xff] %v4849_v59 }
 0x50b   : > { %v736_v60 = vpop.f32.mrb[8].mxu0 }
 0x50c   : > { %v738_v61 = vpop.f32.mrb[9].mxu0 }
 0x50d   : > { %v4878_v24 = vpop.f32.mrb[10].mxu0 }
 0x50e   : > { %8034 = vst [vmem:[#allocation9_spill] sm:$0xff] %v4878_v24  ;;  %v742_v26 = vpop.f32.mrb[11].mxu0 }
 0x513   : > { %v4885_v27 = vpop.f32.mrb[12].mxu0 }
 0x514   : > { %8035 = vst [vmem:[#allocation10_spill] sm:$0xff] %v4885_v27  ;;  %v4890_v29 = vpop.f32.mrb[13].mxu0 }
 0x515   : > { %8036 = vst [vmem:[#allocation11_spill] sm:$0xff] %v4890_v29  ;;  %v750_v30 = vpop.f32.mrb[14].mxu0 }
 0x516   : > { %v752_v31 = vpop.f32.mrb[15].mxu0 }
 0x522   : > { %586 = vperm.xlu1 %4003, %v564_v54  }
 0x526   : > { %591 = vperm.xlu1 %4003, %v565_v55  }
 0x528   : > { %596 = vperm.xlu0 %4002, %v566_v58  }
 0x568   : > { %v789_v62 = vpop.trf.xlu1 }
 0x569   : > { %3822 = vmatmul.mubr.msk.bf16.vlgmr.msra.gmra.mrb[8].mxu1 %vm813_vm2, %v789_v62  ;;  %v805_v1 = vpop.trf.xlu0 }
 0x56a   : > { %911 = vmatprep.mubr.bf16.mxu1 %v7847_v13 }
 0x56c   : > { %v790_v63 = vpop.trf.xlu1 }
 0x56d   : > { %v806_v2 = vpop.trf.xlu0 }
 0x570   : > { %v791_v0 = vpop.trf.xlu1 }
 0x571   : > { %3823 = vmatmul.mubr.msk.bf16.gmra.mrb[12].mxu1 %vm813_vm2, %v790_v63  ;;  %v807_v4 = vpop.trf.xlu0 }
 0x572   : > { %921 = vmatprep.mubr.bf16.mxu1 %v7847_v13 }
 0x574   : > { %v792_v3 = vpop.trf.xlu1 }
 0x575   : > { %v808_v6 = vpop.trf.xlu0 }
 0x578   : > { %v793_v5 = vpop.trf.xlu1 }
 0x579   : > { %3824 = vmatmul.mubr.msk.bf16.gmra.mrb[16].mxu1 %vm813_vm2, %v791_v0  ;;  %v809_v8 = vpop.trf.xlu0 }
 0x57a   : > { %931 = vmatprep.mubr.bf16.mxu1 %v7847_v13 }
 0x57c   : > { %v794_v7 = vpop.trf.xlu1 }
 0x57d   : > { %v810_v10 = vpop.trf.xlu0 }
 0x580   : > { %v795_v9 = vpop.trf.xlu1 }
 0x581   : > { %3825 = vmatmul.mubr.msk.bf16.gmra.mrb[20].mxu1 %vm813_vm2, %v792_v3  ;;  %v811_v12 = vpop.trf.xlu0 }
 0x582   : > { %941 = vmatprep.mubr.bf16.mxu1 %v7847_v13 }
 0x584   : > { %v796_v11 = vpop.trf.xlu1 }
 0x585   : > { %v812_v15 = vpop.trf.xlu0 }
 0x589   : > { %3826 = vmatmul.mubr.msk.bf16.gmra.mrb[24].mxu1 %vm813_vm2, %v793_v5 }
 0x58a   : > { %951 = vmatprep.mubr.bf16.mxu1 %v7847_v13 }
 0x591   : > { %3827 = vmatmul.mubr.msk.bf16.gmra.mrb[28].mxu1 %vm813_vm2, %v794_v7 }
 0x592   : > { %961 = vmatprep.mubr.bf16.mxu1 %v7847_v13 }
 0x599   : > { %3828 = vmatmul.mubr.msk.bf16.gmra.mrb[32].mxu1 %vm813_vm2, %v795_v9 }
 0x59a   : > { %971 = vmatprep.mubr.bf16.mxu1 %v7847_v13 }
 0x5a1   : > { %3829 = vmatmul.mubr.msk.bf16.gmra.mrb[36].mxu1 %vm813_vm2, %v796_v11  ;;  %v587_v14 = vpop.permute.xlu1 %586 }
 0x5a2   : > { %v4867_v16 = vadd.f32 %v726_v52, %v587_v14  ;;  %v729_v17 = vadd.f32 %v728_v53, %v587_v14  ;;  %981 = vmatprep.mubr.bf16.mxu1 %v7847_v13 }
 0x5a4   : > { %8033 = vst [vmem:[#allocation8_spill] sm:$0xff] %v4867_v16  ;;  %v780_v18 = vpack.c.bf16 %v729_v17, %v729_v17 }
 0x5a5   : > { %v4900_v33 = vpop.permute.xlu1 %591 }
 0x5a6   : > { %1466 = vmatprep.mubr.bf16.mxu0 %v780_v18  ;;  %8037 = vst [vmem:[#allocation12_spill] sm:$0xff] %v4900_v33 }
 0x5a7   : > { %v597_v19 = vpop.permute.xlu0 %596 }
 0x5a8   : > { %v737_v20 = vadd.f32 %v736_v60, %v597_v19  ;;  %v739_v21 = vadd.f32 %v738_v61, %v597_v19 }
 0x5a9   : > { %3830 = vmatmul.mubr.msk.bf16.gmra.mrb[40].mxu1 %vm813_vm2, %v805_v1 }
 0x5aa   : > { %v1483_v22 = vpack.c.bf16 %v737_v20, %v737_v20  ;;  %v1484_v23 = vpack.c.bf16 %v739_v21, %v739_v21  ;;  %991 = vmatprep.mubr.bf16.mxu1 %v7847_v13 }
 0x5ac   : > { %1487 = vxpose.xlu0.c.b16.start.end [1/1] (short) %v1483_v22, 128  ;;  %1503 = vxpose.xlu1.c.b16.start.end [1/1] (short) %v1484_v23, 128 }
 0x5b1   : > { %3831 = vmatmul.mubr.msk.bf16.gmra.mrb[44].mxu1 %vm813_vm2, %v806_v2 }
 0x5b2   : > { %1001 = vmatprep.mubr.bf16.mxu1 %v7847_v13 }
 0x5b9   : > { %3832 = vmatmul.mubr.msk.bf16.gmra.mrb[48].mxu1 %vm813_vm2, %v807_v4 }
 0x5ba   : > { %1011 = vmatprep.mubr.bf16.mxu1 %v7847_v13 }
 0x5c1   : > { %3833 = vmatmul.mubr.msk.bf16.gmra.mrb[52].mxu1 %vm813_vm2, %v808_v6 }
 0x5c2   : > { %1021 = vmatprep.mubr.bf16.mxu1 %v7847_v13 }
 0x5c9   : > { %3834 = vmatmul.mubr.msk.bf16.gmra.mrb[56].mxu1 %vm813_vm2, %v809_v8 }
 0x5ca   : > { %1031 = vmatprep.mubr.bf16.mxu1 %v7847_v13 }
 0x5cc   : > { %601 = vperm.xlu1 %4003, %v567_v25  }
 0x5d1   : > { %611 = vperm.xlu0 %4002, %v569_v28   ;;  %3835 = vmatmul.mubr.msk.bf16.gmra.mrb[60].mxu1 %vm813_vm2, %v810_v10 }
 0x5d2   : > { %1041 = vmatprep.mubr.bf16.mxu1 %v7847_v13 }
 0x5d5   : > { %606 = vperm.xlu0 %4002, %v568_v32  }
 0x5d9   : > { %3836 = vmatmul.mubr.msk.bf16.gmra.mrb[64].mxu1 %vm813_vm2, %v811_v12 }
 0x5da   : > { %1051 = vmatprep.mubr.bf16.mxu1 %v7847_v13 }
 0x5e1   : > { %3837 = vmatmul.mubr.msk.bf16.gmra.mrb[68].mxu1 %vm813_vm2, %v812_v15 }
 0x612   : > { %v4902_v34 = vpop.trf.xlu1  ;;  %v4904_v35 = vpop.trf.xlu0 }
 0x613   : > { %8038 = vst [vmem:[#allocation13_spill] sm:$0xff] %v4902_v34  ;;  %8039 = vst [vmem:[#allocation14_spill] sm:$0xff] %v4904_v35 }
 0x616   : > { %v4906_v36 = vpop.trf.xlu1  ;;  %v4908_v37 = vpop.trf.xlu0 }
 0x617   : > { %8040 = vst [vmem:[#allocation15_spill] sm:$0xff] %v4906_v36  ;;  %8041 = vst [vmem:[#allocation16_spill] sm:$0xff] %v4908_v37 }
 0x61a   : > { %v4910_v38 = vpop.trf.xlu1  ;;  %v4912_v39 = vpop.trf.xlu0 }
 0x61b   : > { %8042 = vst [vmem:[#allocation17_spill] sm:$0xff] %v4910_v38  ;;  %8043 = vst [vmem:[#allocation18_spill] sm:$0xff] %v4912_v39 }
 0x61e   : > { %v4914_v40 = vpop.trf.xlu1  ;;  %v4916_v41 = vpop.trf.xlu0 }
 0x61f   : > { %8044 = vst [vmem:[#allocation19_spill] sm:$0xff] %v4914_v40  ;;  %8045 = vst [vmem:[#allocation20_spill] sm:$0xff] %v4916_v41 }
 0x622   : > { %v4918_v42 = vpop.trf.xlu1  ;;  %v4920_v43 = vpop.trf.xlu0 }
 0x623   : > { %8046 = vst [vmem:[#allocation21_spill] sm:$0xff] %v4918_v42  ;;  %8047 = vst [vmem:[#allocation22_spill] sm:$0xff] %v4920_v43 }
 0x626   : > { %v4922_v44 = vpop.trf.xlu1  ;;  %v4930_v48 = vpop.trf.xlu0 }
 0x627   : > { %8048 = vst [vmem:[#allocation23_spill] sm:$0xff] %v4922_v44  ;;  %8049 = vst [vmem:[#allocation24_spill] sm:$0xff] %v4930_v48 }
 0x62a   : > { %v4934_v50 = vpop.trf.xlu1  ;;  %v4938_v52 = vpop.trf.xlu0 }
 0x62b   : > { %8050 = vst [vmem:[#allocation25_spill] sm:$0xff] %v4934_v50  ;;  %8051 = vst [vmem:[#allocation26_spill] sm:$0xff] %v4938_v52 }
 0x62e   : > { %v4944_v55 = vpop.trf.xlu1  ;;  %v4956_v63 = vpop.trf.xlu0 }
 0x62f   : > { %8052 = vst [vmem:[#allocation27_spill] sm:$0xff] %v4944_v55  ;;  %8053 = vst [vmem:[#allocation28_spill] sm:$0xff] %v4956_v63 }
 0x63c   : > { %v4924_v45 = vpop.f32.mrb[8].mxu1 }
 0x63d   : > { %v4926_v46 = vpop.f32.mrb[9].mxu1 }
 0x63e   : > { %v4928_v47 = vpop.f32.mrb[10].mxu1 }
 0x63f   : > { %v4932_v49 = vpop.f32.mrb[11].mxu1 }
 0x644   : > { %v4936_v51 = vpop.f32.mrb[12].mxu1 }
 0x645   : > { %v1062_v53 = vmax.f32 %v4924_v45, %v4936_v51  ;;  %v4942_v54 = vpop.f32.mrb[13].mxu1 }
 0x646   : > { %v1099_v56 = vmax.f32 %v4926_v46, %v4942_v54  ;;  %v4948_v58 = vpop.f32.mrb[14].mxu1 }
 0x647   : > { %v1063_v60 = vmax.f32 %v4928_v47, %v4948_v58  ;;  %v4952_v61 = vpop.f32.mrb[15].mxu1 }
 0x648   : > { %v1100_v62 = vmax.f32 %v4932_v49, %v4952_v61 }
 0x64b   : > { %v4958_v0 = vpop.permute.xlu1 %601 }
 0x64c   : > { %8054 = vst [vmem:[#allocation29_spill] sm:$0xff] %v4958_v0  ;;  %v743_v1 = vadd.f32 %v742_v26, %v4958_v0  ;;  %v4961_v2 = vpop.f32.mrb[16].mxu1  ;;  %v572_v0 = vld [vmem:[%s7843_s3 + $0x50] sm:$0xff] }
 0x64d   : > { %v1064_v3 = vmax.f32 %v1062_v53, %v4961_v2  ;;  %v4964_v4 = vpop.f32.mrb[17].mxu1 }
 0x64e   : > { %v1486_v5 = vpack.c.bf16 %v743_v1, %v743_v1  ;;  %v1101_v6 = vmax.f32 %v1099_v56, %v4964_v4  ;;  %v4967_v7 = vpop.f32.mrb[18].mxu1 }
 0x64f   : > { %v1065_v8 = vmax.f32 %v1063_v60, %v4967_v7  ;;  %v4970_v9 = vpop.f32.mrb[19].mxu1 }
 0x650   : > { %v1102_v10 = vmax.f32 %v1100_v62, %v4970_v9  ;;  %v612_v11 = vpop.permute.xlu0 %611  ;;  %2170 = vmatprep.mubr.bf16.mxu1 %v1486_v5 }
 0x651   : > { %v751_v12 = vadd.f32 %v750_v30, %v612_v11  ;;  %v753_v14 = vadd.f32 %v752_v31, %v612_v11 }
 0x653   : > { %v2187_v15 = vpack.c.bf16 %v751_v12, %v751_v12  ;;  %v2188_v17 = vpack.c.bf16 %v753_v14, %v753_v14 }
 0x654   : > { %v4973_v18 = vpop.f32.mrb[20].mxu1 }
 0x655   : > { %v1066_v19 = vmax.f32 %v1064_v3, %v4973_v18  ;;  %2207 = vxpose.xlu0.c.b16.start.end [1/1] (short) %v2188_v17, 128  ;;  %2191 = vxpose.xlu1.c.b16.start.end [1/1] (short) %v2187_v15, 128  ;;  %v4976_v20 = vpop.f32.mrb[21].mxu1 }
 0x656   : > { %v1103_v21 = vmax.f32 %v1101_v6, %v4976_v20  ;;  %v4979_v22 = vpop.f32.mrb[22].mxu1 }
 0x657   : > { %v1067_v23 = vmax.f32 %v1065_v8, %v4979_v22  ;;  %v4982_v25 = vpop.f32.mrb[23].mxu1 }
 0x658   : > { %v1104_v26 = vmax.f32 %v1102_v10, %v4982_v25 }
 0x65c   : > { %v4985_v28 = vpop.f32.mrb[24].mxu1 }
 0x65d   : > { %v1068_v30 = vmax.f32 %v1066_v19, %v4985_v28  ;;  %v4988_v31 = vpop.f32.mrb[25].mxu1 }
 0x65e   : > { %v1105_v32 = vmax.f32 %v1103_v21, %v4988_v31  ;;  %v4991_v53 = vpop.f32.mrb[26].mxu1 }
 0x65f   : > { %v1069_v56 = vmax.f32 %v1067_v23, %v4991_v53  ;;  %v4994_v60 = vpop.f32.mrb[27].mxu1 }
 0x660   : > { %v1106_v62 = vmax.f32 %v1104_v26, %v4994_v60 }
 0x664   : > { %v4997_v1 = vpop.f32.mrb[28].mxu1 }
 0x665   : > { %v1070_v3 = vmax.f32 %v1068_v30, %v4997_v1  ;;  %v5000_v5 = vpop.f32.mrb[29].mxu1 }
 0x666   : > { %v1107_v6 = vmax.f32 %v1105_v32, %v5000_v5  ;;  %v5003_v8 = vpop.f32.mrb[30].mxu1  ;;  %v570_v32 = vld [vmem:[%s7843_s3 + $0x40] sm:$0xff] }
 0x667   : > { %v1071_v10 = vmax.f32 %v1069_v56, %v5003_v8  ;;  %v5006_v11 = vpop.f32.mrb[31].mxu1 }
 0x668   : > { %v1108_v12 = vmax.f32 %v1106_v62, %v5006_v11 }
 0x66c   : > { %v5009_v14 = vpop.f32.mrb[32].mxu1 }
 0x66d   : > { %v1072_v15 = vmax.f32 %v1070_v3, %v5009_v14  ;;  %v5012_v17 = vpop.f32.mrb[33].mxu1 }
 0x66e   : > { %8055 = vst [vmem:[#allocation30_spill] sm:$0xff] %v5012_v17  ;;  %v1109_v19 = vmax.f32 %v1107_v6, %v5012_v17  ;;  %v5015_v21 = vpop.f32.mrb[34].mxu1 }
 0x66f   : > { %v1073_v23 = vmax.f32 %v1071_v10, %v5015_v21  ;;  %v5018_v26 = vpop.f32.mrb[35].mxu1  ;;  %v571_v10 = vld [vmem:[%s7843_s3 + $0x48] sm:$0xff] }
 0x670   : > { %8056 = vst [vmem:[#allocation31_spill] sm:$0xff] %v5018_v26  ;;  %v1110_v30 = vmax.f32 %v1108_v12, %v5018_v26 }
 0x674   : > { %v5024_v56 = vpop.f32.mrb[36].mxu1 }
 0x675   : > { %v1074_v62 = vmax.f32 %v1072_v15, %v5024_v56  ;;  %616 = vperm.xlu1 %4003, %v570_v32   ;;  %v5027_v3 = vpop.f32.mrb[37].mxu1 }
 0x676   : > { %8057 = vst [vmem:[#allocation32_spill] sm:$0xff] %v5027_v3  ;;  %v1111_v6 = vmax.f32 %v1109_v19, %v5027_v3  ;;  %v5030_v13 = vpop.f32.mrb[38].mxu1 }
 0x677   : > { %v1075_v12 = vmax.f32 %v1073_v23, %v5030_v13  ;;  %v5036_v24 = vpop.f32.mrb[39].mxu1 }
 0x678   : > { %8058 = vst [vmem:[#allocation33_spill] sm:$0xff] %v5036_v24  ;;  %v1112_v15 = vmax.f32 %v1110_v30, %v5036_v24 }
 0x679   : > { %621 = vperm.xlu1 %4003, %v571_v10  }
 0x67a   : > { %626 = vperm.xlu0 %4002, %v572_v0  }
 0x67c   : > { %v5042_v32 = vpop.f32.mrb[40].mxu1 }
 0x67d   : > { %v1076_v19 = vmax.f32 %v1074_v62, %v5042_v32  ;;  %v5045_v29 = vpop.f32.mrb[41].mxu1 }
 0x67e   : > { %8059 = vst [vmem:[#allocation34_spill] sm:$0xff] %v5045_v29  ;;  %v1113_v27 = vmax.f32 %v1111_v6, %v5045_v29  ;;  %v5048_v55 = vpop.f32.mrb[42].mxu1 }
 0x67f   : > { %v1077_v23 = vmax.f32 %v1075_v12, %v5048_v55  ;;  %v5051_v50 = vpop.f32.mrb[43].mxu1 }
 0x680   : > { %8060 = vst [vmem:[#allocation35_spill] sm:$0xff] %v5051_v50  ;;  %v1114_v44 = vmax.f32 %v1112_v15, %v5051_v50 }
 0x684   : > { %v5054_v42 = vpop.f32.mrb[44].mxu1 }
 0x685   : > { %v1078_v0 = vmax.f32 %v1076_v19, %v5054_v42  ;;  %v5057_v30 = vpop.f32.mrb[45].mxu1 }
 0x686   : > { %8061 = vst [vmem:[#allocation36_spill] sm:$0xff] %v5057_v30  ;;  %v1115_v62 = vmax.f32 %v1113_v27, %v5057_v30  ;;  %v5060_v10 = vpop.f32.mrb[46].mxu1 }
 0x687   : > { %v1079_v6 = vmax.f32 %v1077_v23, %v5060_v10  ;;  %v5063_v40 = vpop.f32.mrb[47].mxu1 }
 0x688   : > { %8062 = vst [vmem:[#allocation37_spill] sm:$0xff] %v5063_v40  ;;  %v1116_v12 = vmax.f32 %v1114_v44, %v5063_v40  ;;  %v5137_v40 = vpop.f32.mrb[16].mxu0 }
 0x689   : > { %8075 = vst [vmem:[#allocation50_spill] sm:$0xff] %v5137_v40  ;;  %v5140_v30 = vpop.f32.mrb[17].mxu0 }
 0x68a   : > { %8076 = vst [vmem:[#allocation51_spill] sm:$0xff] %v5140_v30  ;;  %v5142_v50 = vpop.f32.mrb[18].mxu0 }
 0x68b   : > { %8077 = vst [vmem:[#allocation52_spill] sm:$0xff] %v5142_v50  ;;  %v5144_v24 = vpop.f32.mrb[19].mxu0 }
 0x68c   : > { %v5066_v38 = vpop.f32.mrb[48].mxu1  ;;  %8078 = vst [vmem:[#allocation53_spill] sm:$0xff] %v5144_v24 }
 0x68d   : > { %v1080_v15 = vmax.f32 %v1078_v0, %v5066_v38  ;;  %v5069_v36 = vpop.f32.mrb[49].mxu1 }
 0x68e   : > { %8063 = vst [vmem:[#allocation38_spill] sm:$0xff] %v5069_v36  ;;  %v1117_v19 = vmax.f32 %v1115_v62, %v5069_v36  ;;  %v5072_v34 = vpop.f32.mrb[50].mxu1 }
 0x68f   : > { %v1081_v27 = vmax.f32 %v1079_v6, %v5072_v34  ;;  %v5075_v63 = vpop.f32.mrb[51].mxu1 }
 0x690   : > { %8064 = vst [vmem:[#allocation39_spill] sm:$0xff] %v5075_v63  ;;  %v1118_v23 = vmax.f32 %v1116_v12, %v5075_v63 }
 0x694   : > { %v5078_v52 = vpop.f32.mrb[52].mxu1 }
 0x695   : > { %v1082_v44 = vmax.f32 %v1080_v15, %v5078_v52  ;;  %v5081_v48 = vpop.f32.mrb[53].mxu1 }
 0x696   : > { %8065 = vst [vmem:[#allocation40_spill] sm:$0xff] %v5081_v48  ;;  %v1119_v0 = vmax.f32 %v1117_v19, %v5081_v48  ;;  %v5084_v43 = vpop.f32.mrb[54].mxu1 }
 0x697   : > { %v1083_v62 = vmax.f32 %v1081_v27, %v5084_v43  ;;  %v5087_v41 = vpop.f32.mrb[55].mxu1 }
 0x698   : > { %8066 = vst [vmem:[#allocation41_spill] sm:$0xff] %v5087_v41  ;;  %v1120_v6 = vmax.f32 %v1118_v23, %v5087_v41 }
 0x69c   : > { %v5090_v39 = vpop.f32.mrb[56].mxu1 }
 0x69d   : > { %v1084_v12 = vmax.f32 %v1082_v44, %v5090_v39  ;;  %v5093_v37 = vpop.f32.mrb[57].mxu1 }
 0x69e   : > { %8067 = vst [vmem:[#allocation42_spill] sm:$0xff] %v5093_v37  ;;  %v1121_v15 = vmax.f32 %v1119_v0, %v5093_v37  ;;  %v5096_v35 = vpop.f32.mrb[58].mxu1 }
 0x69f   : > { %v1085_v19 = vmax.f32 %v1083_v62, %v5096_v35  ;;  %v5099_v16 = vpop.f32.mrb[59].mxu1 }
 0x6a0   : > { %8068 = vst [vmem:[#allocation43_spill] sm:$0xff] %v5099_v16  ;;  %v1122_v27 = vmax.f32 %v1120_v6, %v5099_v16 }
 0x6a4   : > { %v5102_v59 = vpop.f32.mrb[60].mxu1 }
 0x6a5   : > { %v1086_v23 = vmax.f32 %v1084_v12, %v5102_v59  ;;  %v5105_v57 = vpop.f32.mrb[61].mxu1 }
 0x6a6   : > { %8069 = vst [vmem:[#allocation44_spill] sm:$0xff] %v5105_v57  ;;  %v1123_v44 = vmax.f32 %v1121_v15, %v5105_v57  ;;  %v5108_v33 = vpop.f32.mrb[62].mxu1 }
 0x6a7   : > { %v1087_v0 = vmax.f32 %v1085_v19, %v5108_v33  ;;  %v5111_v37 = vpop.f32.mrb[63].mxu1 }
 0x6a8   : > { %8070 = vst [vmem:[#allocation45_spill] sm:$0xff] %v5111_v37  ;;  %v1124_v62 = vmax.f32 %v1122_v27, %v5111_v37 }
 0x6ac   : > { %v5114_v41 = vpop.f32.mrb[64].mxu1 }
 0x6ad   : > { %v1088_v6 = vmax.f32 %v1086_v23, %v5114_v41  ;;  %v5117_v16 = vpop.f32.mrb[65].mxu1 }
 0x6ae   : > { %8071 = vst [vmem:[#allocation46_spill] sm:$0xff] %v5117_v16  ;;  %v1125_v12 = vmax.f32 %v1123_v44, %v5117_v16  ;;  %v5120_v48 = vpop.f32.mrb[66].mxu1 }
 0x6af   : > { %v1089_v15 = vmax.f32 %v1087_v0, %v5120_v48  ;;  %v5123_v57 = vpop.f32.mrb[67].mxu1 }
 0x6b0   : > { %8072 = vst [vmem:[#allocation47_spill] sm:$0xff] %v5123_v57  ;;  %v1126_v19 = vmax.f32 %v1124_v62, %v5123_v57 }
 0x6b4   : > { %v5126_v63 = vpop.f32.mrb[68].mxu1 }
 0x6b5   : > { %v1090_v27 = vmax.f32 %v1088_v6, %v5126_v63  ;;  %v5129_v37 = vpop.f32.mrb[69].mxu1 }
 0x6b6   : > { %8073 = vst [vmem:[#allocation48_spill] sm:$0xff] %v5129_v37  ;;  %v1127_v23 = vmax.f32 %v1125_v12, %v5129_v37  ;;  %v5132_v36 = vpop.f32.mrb[70].mxu1  ;;  %v5146_v37 = vpop.f32.mrb[20].mxu0 }
 0x6b7   : > { %v1091_v44 = vmax.f32 %v1089_v15, %v5132_v36  ;;  %v5135_v16 = vpop.f32.mrb[71].mxu1  ;;  %v5148_v3 = vpop.f32.mrb[21].mxu0 }
 0x6b8   : > { %8074 = vst [vmem:[#allocation49_spill] sm:$0xff] %v5135_v16  ;;  %v1128_v0 = vmax.f32 %v1126_v19, %v5135_v16 }
 0x6b9   : > { %v1092_v62 = vmax.f32 %v1090_v27, %v1091_v44 }
 0x6ba   : > { %v1129_v57 = vmax.f32 %v1127_v23, %v1128_v0  ;;  %v5152_v23 = vpop.permute.xlu0 %606 }
 0x6bb   : > { %v1093_v6 = vrot.slane %v1092_v62, 4  ;;  %v5150_v27 = vpop.trf.xlu1  ;;  %8080 = vst [vmem:[#allocation55_spill] sm:$0xff] %v5152_v23 }
 0x6bc   : > { %v1130_v29 = vrot.slane %v1129_v57, 4  ;;  %8079 = vst [vmem:[#allocation54_spill] sm:$0xff] %v5150_v27 }
 0x6bd   : > { %v1094_v12 = vmax.f32 %v1092_v62, %v1093_v6 }
 0x6be   : > { %v1131_v15 = vmax.f32 %v1129_v57, %v1130_v29 }
 0x6bf   : > { %v1095_v26 = vrot.slane %v1094_v12, 2 }
 0x6c0   : > { %v1132_v40 = vrot.slane %v1131_v15, 2 }
 0x6c1   : > { %v1096_v17 = vmax.f32 %v1094_v12, %v1095_v26 }
 0x6c2   : > { %v1133_v19 = vmax.f32 %v1131_v15, %v1132_v40 }
 0x6c3   : > { %v1097_v16 = vrot.slane %v1096_v17, 1 }
 0x6c4   : > { %v1134_v30 = vrot.slane %v1133_v19, 1 }
 0x6c5   : > { %v5154_v44 = vmax.f32 %v1096_v17, %v1097_v16 }
 0x6c6   : > { %v5156_v0 = vmax.f32 %v1133_v19, %v1134_v30  ;;  %v5182_v30 = vpop.trf.xlu0 }
 0x6c7   : > { %v1136_v62 = vsub.f32 %v4924_v45, %v5154_v44  ;;  %v1138_v57 = vsub.f32 %v4928_v47, %v5154_v44  ;;  %v1140_v29 = vsub.f32 %v4936_v51, %v5154_v44  ;;  %v1142_v40 = vsub.f32 %v4948_v58, %v5154_v44  ;;  %8081 = vst [vmem:[#allocation56_spill] sm:$0xff] %v5182_v30 }
 0x6c8   : > { %v1144_v26 = vsub.f32 %v4961_v2, %v5154_v44  ;;  %v1146_v16 = vsub.f32 %v4967_v7, %v5154_v44  ;;  %v1148_v17 = vsub.f32 %v4973_v18, %v5154_v44  ;;  %v1150_v45 = vsub.f32 %v4979_v22, %v5154_v44 }
 0x6c9   : > { %v1152_v47 = vsub.f32 %v4985_v28, %v5154_v44  ;;  %v1154_v51 = vsub.f32 %v4991_v53, %v5154_v44  ;;  %v1156_v58 = vsub.f32 %v4997_v1, %v5154_v44  ;;  %v1158_v2 = vsub.f32 %v5003_v8, %v5154_v44  ;;  %v5192_v53 = vpop.trf.xlu1 }
 0x6ca   : > { %v1160_v7 = vsub.f32 %v5009_v14, %v5154_v44  ;;  %v1162_v18 = vsub.f32 %v5015_v21, %v5154_v44  ;;  %v1164_v22 = vsub.f32 %v5024_v56, %v5154_v44  ;;  %v1166_v28 = vsub.f32 %v5030_v13, %v5154_v44  ;;  %8082 = vst [vmem:[#allocation57_spill] sm:$0xff] %v5192_v53 }
 0x6cb   : > { %v1168_v1 = vsub.f32 %v5042_v32, %v5154_v44  ;;  %v1170_v8 = vsub.f32 %v5048_v55, %v5154_v44  ;;  %v1172_v14 = vsub.f32 %v5054_v42, %v5154_v44  ;;  %v1174_v21 = vsub.f32 %v5060_v10, %v5154_v44  ;;  %v5228_v55 = vpop.trf.xlu0 }
 0x6cc   : > { %v1176_v56 = vsub.f32 %v5066_v38, %v5154_v44  ;;  %v1178_v13 = vsub.f32 %v5072_v34, %v5154_v44  ;;  %v1180_v6 = vsub.f32 %v5078_v52, %v5154_v44  ;;  %v1182_v32 = vsub.f32 %v5084_v43, %v5154_v44  ;;  %8083 = vst [vmem:[#allocation58_spill] sm:$0xff] %v5228_v55 }
 0x6cd   : > { %v1200_v15 = vmul.f32 1.442695, %v1136_v62  ;;  %v1204_v19 = vmul.f32 1.442695, %v1138_v57  ;;  %v1208_v42 = vmul.f32 1.442695, %v1140_v29  ;;  %v5232_v24 = vpop.trf.xlu1 }
 0x6ce   : > { %v1212_v38 = vmul.f32 1.442695, %v1142_v40  ;;  %8084 = vst [vmem:[#allocation59_spill] sm:$0xff] %v5232_v24  ;;  %v1216_v52 = vmul.f32 1.442695, %v1144_v26 }
 0x6cf   : > { %4020 = vpow2.f32 %v1200_v15  ;;  %v1220_v43 = vmul.f32 1.442695, %v1146_v16  ;;  %v1224_v12 = vmul.f32 1.442695, %v1148_v17  ;;  %v1228_v62 = vmul.f32 1.442695, %v1150_v45  ;;  %v5234_v40 = vpop.trf.xlu0 }
 0x6d0   : > { %4022 = vpow2.f32 %v1204_v19  ;;  %v1232_v57 = vmul.f32 1.442695, %v1152_v47  ;;  %v1236_v29 = vmul.f32 1.442695, %v1154_v51  ;;  %v1240_v10 = vmul.f32 1.442695, %v1156_v58 }
 0x6d1   : > { %4024 = vpow2.f32 %v1208_v42  ;;  %v1244_v50 = vmul.f32 1.442695, %v1158_v2  ;;  %v1248_v55 = vmul.f32 1.442695, %v1160_v7  ;;  %8085 = vst [vmem:[#allocation60_spill] sm:$0xff] %v5234_v40  ;;  %v5236_v15 = vpop.trf.xlu1  ;;  %v8092_v42 = vld [vmem:[#allocation33_spill] sm:$0xff] }
 0x6d2   : > { %4026 = vpow2.f32 %v1212_v38  ;;  %v1252_v34 = vmul.f32 1.442695, %v1162_v18  ;;  %v1256_v30 = vmul.f32 1.442695, %v1164_v22  ;;  %v1260_v24 = vmul.f32 1.442695, %v1166_v28 }
 0x6d3   : > { %4028 = vpow2.f32 %v1216_v52  ;;  %8086 = vst [vmem:[#allocation61_spill] sm:$0xff] %v5236_v15  ;;  %v1264_v26 = vmul.f32 1.442695, %v1168_v1  ;;  %v1268_v16 = vmul.f32 1.442695, %v1170_v8  ;;  %v8095_v8 = vld [vmem:[#allocation36_spill] sm:$0xff] }
 0x6d4   : > { %4030 = vpow2.f32 %v1220_v43  ;;  %v1272_v17 = vmul.f32 1.442695, %v1172_v14  ;;  %v1276_v45 = vmul.f32 1.442695, %v1174_v21  ;;  %v5238_v47 = vmul.f32 1.442695, %v1176_v56  ;;  %v5262_v56 = vpop.trf.xlu0 }
 0x6d5   : > { %4032 = vpow2.f32 %v1224_v12  ;;  %v5240_v51 = vmul.f32 1.442695, %v1178_v13  ;;  %v5242_v58 = vmul.f32 1.442695, %v1180_v6  ;;  %v5244_v2 = vmul.f32 1.442695, %v1182_v32 }
 0x6d6   : > { %4034 = vpow2.f32 %v1228_v62  ;;  %8087 = vst [vmem:[#allocation62_spill] sm:$0xff] %v5262_v56  ;;  %v8089_v43 = vld [vmem:[#allocation30_spill] sm:$0xff]  ;;  %v8090_v12 = vld [vmem:[#allocation31_spill] sm:$0xff]  ;;  %v8099_v19 = vld [vmem:[#allocation40_spill] sm:$0xff] }
 0x6d7   : > { %4036 = vpow2.f32 %v1232_v57  ;;  %v8091_v57 = vld [vmem:[#allocation32_spill] sm:$0xff]  ;;  %v8094_v14 = vld [vmem:[#allocation35_spill] sm:$0xff]  ;;  %v8097_v22 = vld [vmem:[#allocation38_spill] sm:$0xff] }
 0x6d8   : > { %4038 = vpow2.f32 %v1236_v29  ;;  %v8096_v29 = vld [vmem:[#allocation37_spill] sm:$0xff]  ;;  %v8098_v18 = vld [vmem:[#allocation39_spill] sm:$0xff]  ;;  %v5312_v40 = vpop.trf.xlu0 }
 0x6d9   : > { %v5254_v1 = vpop.eup %4020  ;;  %4040 = vpow2.f32 %v1240_v10  ;;  %v5272_v10 = vpop.trf.xlu1  ;;  %v8100_v56 = vld [vmem:[#allocation41_spill] sm:$0xff]  ;;  %8101 = vst [vmem:[#allocation30_spill] sm:$0xff] %v5312_v40  ;;  %v8108_v15 = vld [vmem:[#allocation47_spill] sm:$0xff] }
 0x6da   : > { %v5264_v13 = vpop.eup %4022  ;;  %4042 = vpow2.f32 %v1244_v50  ;;  %8088 = vst [vmem:[#allocation63_spill] sm:$0xff] %v5272_v10  ;;  %v8106_v40 = vld [vmem:[#allocation45_spill] sm:$0xff] }
 0x6db   : > { %v5274_v38 = vpop.eup %4024  ;;  %4044 = vpow2.f32 %v1248_v55  ;;  %v1328_v52 = vadd.f32 %v5264_v13, %v5254_v1  ;;  %v8093_v55 = vld [vmem:[#allocation34_spill] sm:$0xff] }
 0x6dc   : > { %v5282_v62 = vpop.eup %4026  ;;  %4046 = vpow2.f32 %v1252_v34 }
 0x6dd   : > { %v5290_v21 = vpop.eup %4028  ;;  %4048 = vpow2.f32 %v1256_v30  ;;  %v1329_v50 = vadd.f32 %v5274_v38, %v1328_v52  ;;  %v5322_v53 = vpop.trf.xlu1 }
 0x6de   : > { %v5297_v28 = vpop.eup %4030  ;;  %4050 = vpow2.f32 %v1260_v24  ;;  %8105 = vst [vmem:[#allocation31_spill] sm:$0xff] %v5322_v53  ;;  %v8112_v53 = vsub.f32 %v5096_v35, %v5154_v44  ;;  %v8115_v35 = vsub.f32 %v5108_v33, %v5154_v44 }
 0x6df   : > { %v5305_v7 = vpop.eup %4032  ;;  %4052 = vpow2.f32 %v1264_v26  ;;  %v1330_v52 = vadd.f32 %v5282_v62, %v1329_v50 }
 0x6e0   : > { %v5314_v32 = vpop.eup %4034  ;;  %4054 = vpow2.f32 %v1268_v16  ;;  %v8107_v16 = vld [vmem:[#allocation46_spill] sm:$0xff]  ;;  %v1300_v30 = vmul.f32 1.442695, %v8112_v53  ;;  %v1308_v53 = vmul.f32 1.442695, %v8115_v35  ;;  %v8121_v35 = vsub.f32 %v5126_v63, %v5154_v44 }
 0x6e1   : > { %v5324_v34 = vpop.eup %4036  ;;  %4056 = vpow2.f32 %v1272_v17  ;;  %v1331_v24 = vadd.f32 %v5290_v21, %v1330_v52  ;;  %v8111_v52 = vsub.f32 %v5090_v39, %v5154_v44 }
 0x6e2   : > { %v5331_v10 = vpop.eup %4038  ;;  %4058 = vpow2.f32 %v1276_v45 }
 0x6e3   : > { %v5339_v6 = vpop.eup %4040  ;;  %4060 = vpow2.f32 %v5238_v47  ;;  %v1296_v23 = vmul.f32 1.442695, %v8111_v52  ;;  %v1332_v27 = vadd.f32 %v5297_v28, %v1331_v24  ;;  %v8113_v47 = vsub.f32 %v5102_v59, %v5154_v44  ;;  %v5359_v52 = vpop.trf.xlu0 }
 0x6e4   : > { %v5346_v45 = vpop.eup %4042  ;;  %4062 = vpow2.f32 %v5240_v51  ;;  %8114 = vst [vmem:[#allocation32_spill] sm:$0xff] %v5359_v52  ;;  %v5367_v51 = vpop.trf.xlu1  ;;  %v8118_v59 = vsub.f32 %v5114_v41, %v5154_v44 }
 0x6e5   : > { %v5352_v50 = vpop.eup %4044  ;;  %4064 = vpow2.f32 %v5242_v58  ;;  %v1304_v17 = vmul.f32 1.442695, %v8113_v47  ;;  %v1333_v39 = vadd.f32 %v5305_v7, %v1332_v27  ;;  %8116 = vst [vmem:[#allocation33_spill] sm:$0xff] %v5367_v51 }
 0x6e6   : > { %v5361_v24 = vpop.eup %4046  ;;  %4066 = vpow2.f32 %v5244_v2  ;;  %v1312_v58 = vmul.f32 1.442695, %v8118_v59  ;;  %v8119_v2 = vsub.f32 %v5120_v48, %v5154_v44 }
 0x6e7   : > { %v5369_v26 = vpop.eup %4048  ;;  %4068 = vpow2.f32 %v1296_v23  ;;  %v1334_v27 = vadd.f32 %v5314_v32, %v1333_v39  ;;  %v1320_v23 = vmul.f32 1.442695, %v8121_v35  ;;  %v8122_v39 = vsub.f32 %v5132_v36, %v5154_v44  ;;  %v5397_v63 = vpop.trf.xlu0 }
 0x6e8   : > { %8117 = vst [vmem:[#allocation34_spill] sm:$0xff] %v5369_v26  ;;  %v5375_v47 = vpop.eup %4050  ;;  %4070 = vpow2.f32 %v1300_v30  ;;  %v1316_v52 = vmul.f32 1.442695, %v8119_v2  ;;  %8124 = vst [vmem:[#allocation36_spill] sm:$0xff] %v5397_v63  ;;  %v8126_v36 = vsub.f32 %v4942_v54, %v5156_v0  ;;  %v8130_v54 = vsub.f32 %v4970_v9, %v5156_v0 }
 0x6e9   : > { %v5380_v33 = vpop.eup %4052  ;;  %4072 = vpow2.f32 %v1304_v17  ;;  %v1335_v51 = vadd.f32 %v5324_v34, %v1334_v27  ;;  %v1324_v30 = vmul.f32 1.442695, %v8122_v39  ;;  %v8123_v17 = vsub.f32 %v4926_v46, %v5156_v0 }
 0x6ea   : > { %8120 = vst [vmem:[#allocation35_spill] sm:$0xff] %v5380_v33  ;;  %v5386_v41 = vpop.eup %4054  ;;  %4074 = vpow2.f32 %v1308_v53  ;;  %v8125_v53 = vsub.f32 %v4932_v49, %v5156_v0  ;;  %v1210_v44 = vmul.f32 1.442695, %v8126_v36  ;;  %v8128_v39 = vsub.f32 %v4952_v61, %v5156_v0 }
 0x6eb   : > { %v5391_v59 = vpop.eup %4056  ;;  %4076 = vpow2.f32 %v1312_v58  ;;  %v1336_v48 = vadd.f32 %v5331_v10, %v1335_v51  ;;  %v1202_v2 = vmul.f32 1.442695, %v8123_v17  ;;  %v5407_v58 = vpop.trf.xlu1  ;;  %v1222_v36 = vmul.f32 1.442695, %v8130_v54 }
 0x6ec   : > { %v5399_v35 = vpop.eup %4058  ;;  %4078 = vpow2.f32 %v1316_v52  ;;  %v1206_v27 = vmul.f32 1.442695, %v8125_v53  ;;  %8127 = vst [vmem:[#allocation37_spill] sm:$0xff] %v5407_v58  ;;  %v1214_v17 = vmul.f32 1.442695, %v8128_v39  ;;  %v8129_v52 = vsub.f32 %v4964_v4, %v5156_v0 }
 0x6ed   : > { %v5409_v51 = vpop.eup %4060  ;;  %4080 = vpow2.f32 %v1320_v23  ;;  %v1337_v46 = vadd.f32 %v5339_v6, %v1336_v48  ;;  %v8131_v23 = vsub.f32 %v4976_v20, %v5156_v0  ;;  %v8132_v48 = vsub.f32 %v4982_v25, %v5156_v0  ;;  %v8138_v25 = vld [vmem:[#allocation50_spill] sm:$0xff] }
 0x6ee   : > { %v1218_v49 = vmul.f32 1.442695, %v8129_v52  ;;  %v5418_v53 = vpop.eup %4062  ;;  %4082 = vpow2.f32 %v1324_v30  ;;  %v8133_v30 = vsub.f32 %v4988_v31, %v5156_v0  ;;  %v8134_v9 = vsub.f32 %v4994_v60, %v5156_v0 }
 0x6ef   : > { %v1226_v63 = vmul.f32 1.442695, %v8131_v23  ;;  %v1230_v61 = vmul.f32 1.442695, %v8132_v48  ;;  %v5429_v39 = vpop.eup %4064  ;;  %v1338_v4 = vadd.f32 %v5346_v45, %v1337_v46  ;;  %4084 = vpow2.f32 %v1202_v2  ;;  %v5453_v23 = vpop.trf.xlu0 }
 0x6f0   : > { %v1234_v52 = vmul.f32 1.442695, %v8133_v30  ;;  %v1238_v54 = vmul.f32 1.442695, %v8134_v9  ;;  %v5438_v58 = vpop.eup %4066  ;;  %4086 = vpow2.f32 %v1206_v27  ;;  %8135 = vst [vmem:[#allocation38_spill] sm:$0xff] %v5453_v23  ;;  %v8137_v60 = vsub.f32 %v5000_v5, %v5156_v0 }
 0x6f1   : > { %v5446_v46 = vpop.eup %4068  ;;  %v1339_v31 = vadd.f32 %v5352_v50, %v1338_v4  ;;  %4088 = vpow2.f32 %v1210_v44 }
 0x6f2   : > { %v5455_v48 = vpop.eup %4070  ;;  %4090 = vpow2.f32 %v1214_v17  ;;  %v1242_v17 = vmul.f32 1.442695, %v8137_v60 }
 0x6f3   : > { %v5465_v4 = vpop.eup %4072  ;;  %v1340_v27 = vadd.f32 %v5361_v24, %v1339_v31  ;;  %4092 = vpow2.f32 %v1218_v49 }
 0x6f4   : > { %v5461_v2 = vpop.permute.xlu1 %616  ;;  %v5475_v20 = vpop.eup %4074  ;;  %4094 = vpow2.f32 %v1222_v36  ;;  %v8141_v36 = vsub.f32 %v8089_v43, %v5156_v0  ;;  %v8142_v43 = vsub.f32 %v8090_v12, %v5156_v0  ;;  %v8144_v12 = vsub.f32 %v8092_v42, %v5156_v0 }
 0x6f5   : > { %8136 = vst [vmem:[#allocation39_spill] sm:$0xff] %v5461_v2  ;;  %v5473_v30 = vadd.f32 %v8138_v25, %v5461_v2  ;;  %v5483_v31 = vpop.eup %4076  ;;  %v1341_v5 = vadd.f32 %v5369_v26, %v1340_v27  ;;  %4096 = vpow2.f32 %v1226_v63  ;;  %v8140_v25 = vsub.f32 %v5006_v11, %v5156_v0 }
 0x6f6   : > { %v5492_v9 = vpop.eup %4078  ;;  %4098 = vpow2.f32 %v1230_v61  ;;  %v8143_v61 = vsub.f32 %v8091_v57, %v5156_v0  ;;  %v1262_v57 = vmul.f32 1.442695, %v8144_v12  ;;  %v8146_v42 = vsub.f32 %v8094_v14, %v5156_v0 }
 0x6f7   : > { %8139 = vst [vmem:[#allocation40_spill] sm:$0xff] %v5473_v30  ;;  %v1246_v60 = vmul.f32 1.442695, %v8140_v25  ;;  %v1250_v30 = vmul.f32 1.442695, %v8141_v36  ;;  %v5500_v27 = vpop.eup %4080  ;;  %v1342_v11 = vadd.f32 %v5375_v47, %v1341_v5  ;;  %4100 = vpow2.f32 %v1234_v52 }
 0x6f8   : > { %v1254_v25 = vmul.f32 1.442695, %v8142_v43  ;;  %v1258_v36 = vmul.f32 1.442695, %v8143_v61  ;;  %v5509_v23 = vpop.eup %4082  ;;  %4102 = vpow2.f32 %v1238_v54  ;;  %v8145_v43 = vsub.f32 %v8093_v55, %v5156_v0 }
 0x6f9   : > { %v627_v44 = vpop.permute.xlu0 %626  ;;  %v4085_v52 = vpop.eup %4084  ;;  %v1343_v2 = vadd.f32 %v5380_v33, %v1342_v11  ;;  %4104 = vpow2.f32 %v1242_v17  ;;  %v1270_v55 = vmul.f32 1.442695, %v8146_v42 }
 0x6fa   : > { %v767_v49 = vadd.f32 %v5146_v37, %v627_v44  ;;  %v769_v63 = vadd.f32 %v5148_v3, %v627_v44  ;;  %v1266_v61 = vmul.f32 1.442695, %v8145_v43  ;;  %v4087_v54 = vpop.eup %4086  ;;  %4106 = vpow2.f32 %v1246_v60 }
 0x6fb   : > { %v1432_v3 = vpack.c.bf16 %v5509_v23, %v5500_v27  ;;  %v4089_v44 = vpop.eup %4088  ;;  %v1344_v5 = vadd.f32 %v5386_v41, %v1343_v2  ;;  %4108 = vpow2.f32 %v1250_v30  ;;  %v1365_v17 = vadd.f32 %v4087_v54, %v4085_v52 }
 0x6fc   : > { %v2891_v37 = vpack.c.bf16 %v767_v49, %v767_v49  ;;  %v2892_v26 = vpack.c.bf16 %v769_v63, %v769_v63  ;;  %v1403_v11 = vpack.c.bf16 %v4087_v54, %v4085_v52  ;;  %v4091_v33 = vpop.eup %4090  ;;  %4110 = vpow2.f32 %v1254_v25 }
 0x6fd   : > { %v8147_v60 = vsub.f32 %v8095_v8, %v5156_v0  ;;  %v4093_v63 = vpop.eup %4092  ;;  %v1345_v12 = vadd.f32 %v5391_v59, %v1344_v5  ;;  %4112 = vpow2.f32 %v1258_v36  ;;  %v1366_v2 = vadd.f32 %v4089_v44, %v1365_v17 }
 0x6fe   : > { %2895 = vxpose.xlu0.c.b16.start.end [1/1] (short) %v2891_v37, 128  ;;  %2911 = vxpose.xlu1.c.b16.start.end [1/1] (short) %v2892_v26, 128  ;;  %v1405_v30 = vpack.c.bf16 %v4091_v33, %v4089_v44  ;;  %v4095_v52 = vpop.eup %4094  ;;  %4114 = vpow2.f32 %v1262_v57  ;;  %v8148_v25 = vsub.f32 %v8096_v29, %v5156_v0  ;;  %v8149_v43 = vsub.f32 %v8097_v22, %v5156_v0 }
 0x6ff   : > { %v1274_v49 = vmul.f32 1.442695, %v8147_v60  ;;  %1434 = vmatprep.subr.bf16.mxu0 %v1403_v11  ;;  %v8150_v26 = vpack.c.bf16 %v5264_v13, %v5254_v1  ;;  %v4097_v54 = vpop.eup %4096  ;;  %v1346_v36 = vadd.f32 %v5399_v35, %v1345_v12  ;;  %4116 = vpow2.f32 %v1266_v61  ;;  %v8154_v60 = vld [vmem:[#allocation42_spill] sm:$0xff] }
 0x700   : > { %v1278_v14 = vmul.f32 1.442695, %v8148_v25  ;;  %v1282_v8 = vmul.f32 1.442695, %v8149_v43  ;;  %v1367_v5 = vadd.f32 %v4091_v33, %v1366_v2  ;;  %v1407_v37 = vpack.c.bf16 %v4095_v52, %v4093_v63  ;;  %v4099_v57 = vpop.eup %4098 }
 0x701   : > { %1435 = vmatpush1.bf16.msra.mxu0 %v8150_v26  ;;  %4118 = vpow2.f32 %v1270_v55  ;;  %v8151_v29 = vsub.f32 %v8098_v18, %v5156_v0  ;;  %v8152_v22 = vsub.f32 %v8099_v19, %v5156_v0  ;;  %v4101_v11 = vpop.eup %4100  ;;  %v1347_v1 = vadd.f32 %v5409_v51, %v1346_v36  ;;  %v8159_v26 = vld [vmem:[#allocation44_spill] sm:$0xff] }
 0x702   : > { %1436 = vmatprep.subr.bf16.mxu0 %v1405_v30  ;;  %4120 = vpow2.f32 %v1274_v49  ;;  %v1368_v13 = vadd.f32 %v4093_v63, %v1367_v5  ;;  %v1409_v42 = vpack.c.bf16 %v4099_v57, %v4097_v54  ;;  %v4103_v61 = vpop.eup %4102  ;;  %v8153_v33 = vsub.f32 %v8100_v56, %v5156_v0 }
 0x703   : > { %v1286_v44 = vmul.f32 1.442695, %v8151_v29  ;;  %v1290_v17 = vmul.f32 1.442695, %v8152_v22  ;;  %4122 = vpow2.f32 %v1278_v14  ;;  %v8155_v18 = vsub.f32 %v8154_v60, %v5156_v0  ;;  %v4105_v2 = vpop.eup %4104  ;;  %v8157_v14 = vld [vmem:[#allocation43_spill] sm:$0xff] }
 0x704   : > { %v1294_v55 = vmul.f32 1.442695, %v8153_v33  ;;  %v8156_v19 = vpack.c.bf16 %v5282_v62, %v5274_v38  ;;  %v1348_v30 = vadd.f32 %v5418_v53, %v1347_v1  ;;  %4124 = vpow2.f32 %v1282_v8  ;;  %v4107_v25 = vpop.eup %4106 }
 0x705   : > { %v1298_v12 = vmul.f32 1.442695, %v8155_v18  ;;  %v1369_v49 = vadd.f32 %v4095_v52, %v1368_v13  ;;  %v1411_v63 = vpack.c.bf16 %v4103_v61, %v4101_v11  ;;  %4126 = vpow2.f32 %v1286_v44  ;;  %v4109_v29 = vpop.eup %4108 }
 0x706   : > { %1437 = vmatpush1.bf16.msra.mxu0 %v8156_v19  ;;  %v8158_v56 = vsub.f32 %v8157_v14, %v5156_v0  ;;  %v8160_v36 = vsub.f32 %v8159_v26, %v5156_v0  ;;  %v1349_v38 = vadd.f32 %v5429_v39, %v1348_v30  ;;  %4128 = vpow2.f32 %v1290_v17  ;;  %v4111_v8 = vpop.eup %4110  ;;  %v8165_v19 = vld [vmem:[#allocation48_spill] sm:$0xff] }
 0x707   : > { %1438 = vmatprep.subr.bf16.mxu0 %v1407_v37  ;;  %v1370_v62 = vadd.f32 %v4097_v54, %v1369_v49  ;;  %v1413_v22 = vpack.c.bf16 %v4107_v25, %v4105_v2  ;;  %4130 = vpow2.f32 %v1294_v55  ;;  %v8161_v52 = vsub.f32 %v8106_v40, %v5156_v0  ;;  %v4113_v33 = vpop.eup %4112 }
 0x708   : > { %v1302_v43 = vmul.f32 1.442695, %v8158_v56  ;;  %v1306_v5 = vmul.f32 1.442695, %v8160_v36  ;;  %v8162_v44 = vsub.f32 %v8107_v16, %v5156_v0  ;;  %v8163_v13 = vpack.c.bf16 %v5297_v28, %v5290_v21  ;;  %v4115_v55 = vpop.eup %4114 }
 0x709   : > { %v1310_v37 = vmul.f32 1.442695, %v8161_v52  ;;  %v1350_v60 = vadd.f32 %v5438_v58, %v1349_v38  ;;  %4132 = vpow2.f32 %v1298_v12  ;;  %v1371_v54 = vadd.f32 %v4099_v57, %v1370_v62  ;;  %v4117_v49 = vpop.eup %4116  ;;  %v8167_v57 = vld [vmem:[#allocation49_spill] sm:$0xff] }
 0x70a   : > { %v1314_v1 = vmul.f32 1.442695, %v8162_v44  ;;  %1439 = vmatpush1.bf16.msra.mxu0 %v8163_v13  ;;  %v1415_v17 = vpack.c.bf16 %v4111_v8, %v4109_v29  ;;  %4134 = vpow2.f32 %v1302_v43  ;;  %v8164_v40 = vsub.f32 %v8108_v15, %v5156_v0 }
 0x70b   : > { %1440 = vmatprep.subr.bf16.mxu0 %v1409_v42  ;;  %v8166_v16 = vsub.f32 %v8165_v19, %v5156_v0  ;;  %v1351_v28 = vadd.f32 %v5446_v46, %v1350_v60  ;;  %4136 = vpow2.f32 %v1306_v5  ;;  %v1372_v21 = vadd.f32 %v4101_v11, %v1371_v54  ;;  %v4119_v12 = vpop.eup %4118 }
 0x70c   : > { %v1318_v18 = vmul.f32 1.442695, %v8164_v40  ;;  %v1417_v14 = vpack.c.bf16 %v4115_v55, %v4113_v33  ;;  %4138 = vpow2.f32 %v1310_v37  ;;  %v8168_v42 = vsub.f32 %v8167_v57, %v5156_v0  ;;  %v4121_v43 = vpop.eup %4120 }
 0x70d   : > { %v1322_v30 = vmul.f32 1.442695, %v8166_v16  ;;  %v8169_v15 = vpack.c.bf16 %v5314_v32, %v5305_v7  ;;  %v1352_v26 = vadd.f32 %v5455_v48, %v1351_v28  ;;  %4140 = vpow2.f32 %v1314_v1  ;;  %v4123_v5 = vpop.eup %4122 }
 0x70e   : > { %v1326_v56 = vmul.f32 1.442695, %v8168_v42  ;;  %v1373_v36 = vadd.f32 %v4103_v61, %v1372_v21  ;;  %v1419_v38 = vpack.c.bf16 %v4119_v12, %v4117_v49  ;;  %4142 = vpow2.f32 %v1318_v18  ;;  %v4125_v11 = vpop.eup %4124 }
 0x70f   : > { %1441 = vmatpush1.bf16.msra.mxu0 %v8169_v15  ;;  %v1353_v62 = vadd.f32 %v5465_v4, %v1352_v26  ;;  %4144 = vpow2.f32 %v1322_v30  ;;  %v1421_v0 = vpack.c.bf16 %v4123_v5, %v4121_v43  ;;  %v4127_v37 = vpop.eup %4126  ;;  %v8170_v7 = vpack.c.bf16 %v5331_v10, %v5324_v34  ;;  %v8173_v26 = vld [vmem:[#allocation34_spill] sm:$0xff] }
 0x710   : > { %1442 = vmatprep.subr.bf16.mxu0 %v1411_v63  ;;  %v1374_v52 = vadd.f32 %v4105_v2, %v1373_v36  ;;  %4146 = vpow2.f32 %v1326_v56  ;;  %v4129_v32 = vpop.eup %4128  ;;  %v1423_v63 = vpack.c.bf16 %v4127_v37, %v4125_v11  ;;  %v8171_v18 = vpack.c.bf16 %v5346_v45, %v5339_v6 }
 0x711   : > { %v1354_v44 = vadd.f32 %v5475_v20, %v1353_v62  ;;  %v4131_v1 = vpop.eup %4130  ;;  %v8174_v36 = vpack.c.bf16 %v5375_v47, %v8173_v26  ;;  %v573_v62 = vld [vmem:[%s7843_s3 + $0x58] sm:$0xff] }
 0x712   : > { %v1375_v61 = vadd.f32 %v4107_v25, %v1374_v52  ;;  %v1425_v40 = vpack.c.bf16 %v4131_v1, %v4129_v32 }
 0x713   : > { %1443 = vmatpush1.bf16.msra.mxu0 %v8170_v7  ;;  %v4133_v13 = vpop.eup %4132  ;;  %v1355_v60 = vadd.f32 %v5483_v31, %v1354_v44  ;;  %v8178_v7 = vpack.c.bf16 %v5418_v53, %v5409_v51  ;;  %v8181_v44 = vpack.c.bf16 %v5475_v20, %v5465_v4  ;;  %v8186_v20 = vld [vmem:[#allocation8_spill] sm:$0xff] }
 0x714   : > { %1444 = vmatprep.subr.bf16.mxu0 %v1413_v22  ;;  %v1376_v54 = vadd.f32 %v4109_v29, %v1375_v61  ;;  %v4135_v2 = vpop.eup %4134  ;;  %v8172_v29 = vpack.c.bf16 %v5361_v24, %v5352_v50  ;;  %v779_v4 = vpack.c.bf16 %v8186_v20, %v8186_v20 }
 0x715   : > { %v4137_v19 = vpop.eup %4136  ;;  %v1356_v10 = vadd.f32 %v5492_v9, %v1355_v60  ;;  %v1427_v16 = vpack.c.bf16 %v4135_v2, %v4133_v13 }
 0x716   : > { %v1377_v34 = vadd.f32 %v4111_v8, %v1376_v54  ;;  %v4139_v25 = vpop.eup %4138 }
 0x717   : > { %1445 = vmatpush1.bf16.msra.mxu0 %v8171_v18  ;;  %v4141_v22 = vpop.eup %4140  ;;  %v1357_v30 = vadd.f32 %v5500_v27, %v1356_v10  ;;  %v1429_v21 = vpack.c.bf16 %v4139_v25, %v4137_v19  ;;  %v8187_v18 = vmov 0   ;;  %v8191_v27 = vld [vmem:[#allocation18_spill] sm:$0xff] }
 0x718   : > { %1446 = vmatprep.subr.bf16.mxu0 %v1415_v17  ;;  %v1378_v28 = vadd.f32 %v4113_v33, %v1377_v34  ;;  %v4143_v57 = vpop.eup %4142  ;;  %v3609_v33 = vld [vmem:[%s7845_s5] sm:$0xff]  ;;  %v8194_v34 = vld [vmem:[#allocation24_spill] sm:$0xff] }
 0x719   : > { %v4145_v42 = vpop.eup %4144  ;;  %v5605_v6 = vadd.f32 %v5509_v23, %v1357_v30  ;;  %v1431_v8 = vpack.c.bf16 %v4143_v57, %v4141_v22  ;;  %v8190_v23 = vld [vmem:[#allocation16_spill] sm:$0xff]  ;;  %v8193_v10 = vld [vmem:[#allocation22_spill] sm:$0xff] }
 0x71a   : > { %v1379_v45 = vadd.f32 %v4115_v55, %v1378_v28  ;;  %v4147_v17 = vpop.eup %4146  ;;  %v3611_v55 = vld [vmem:[%s7845_s5 + $0x10] sm:$0xff] }
 0x71b   : > { %1447 = vmatpush1.bf16.msra.mxu0 %v8172_v29  ;;  %v1433_v15 = vpack.c.bf16 %v4147_v17, %v4145_v42  ;;  %v8199_v28 = vld [vmem:[#allocation28_spill] sm:$0xff] }
 0x71c   : > { %1448 = vmatprep.subr.bf16.mxu0 %v1417_v14  ;;  %v1380_v56 = vadd.f32 %v4117_v49, %v1379_v45  ;;  %v8175_v14 = vld [vmem:[#allocation35_spill] sm:$0xff] }
 0x71d   : > { %v8176_v49 = vpack.c.bf16 %v5386_v41, %v8175_v14  ;;  %v8215_v14 = vld [vmem:[#allocation51_spill] sm:$0xff] }
 0x71e   : > { %v1381_v50 = vadd.f32 %v4119_v12, %v1380_v56  ;;  %3615 = vperm.xlu1 %4003, %v3609_v33   ;;  %v8177_v12 = vpack.c.bf16 %v5399_v35, %v5391_v59  ;;  %v8179_v35 = vpack.c.bf16 %v5438_v58, %v5429_v39  ;;  %v8184_v39 = vld [vmem:[#allocation7_spill] sm:$0xff] }
 0x71f   : > { %1449 = vmatpush1.bf16.msra.mxu0 %v8174_v36  ;;  %v8211_v36 = vld [vmem:[#allocation21_spill] sm:$0xff] }
 0x720   : > { %1450 = vmatprep.subr.bf16.mxu0 %v1419_v38  ;;  %v1382_v24 = vadd.f32 %v4121_v43, %v1381_v50  ;;  %v3610_v43 = vld [vmem:[%s7845_s5 + $0x8] sm:$0xff] }
 0x721   : > { %v8212_v50 = vld [vmem:[#allocation23_spill] sm:$0xff] }
 0x722   : > { %v1383_v52 = vadd.f32 %v4123_v5, %v1382_v24  ;;  %3625 = vperm.xlu1 %4003, %v3611_v55   ;;  %v3612_v5 = vld [vmem:[%s7845_s5 + $0x18] sm:$0xff]  ;;  %v8214_v55 = vld [vmem:[#allocation39_spill] sm:$0xff] }
 0x723   : > { %1451 = vmatpush1.bf16.msra.mxu0 %v8176_v49  ;;  %631 = vperm.xlu0 %4002, %v573_v62   ;;  %v8213_v24 = vld [vmem:[#allocation25_spill] sm:$0xff]  ;;  %v759_v49 = vadd.f32 %v8215_v14, %v8214_v55 }
 0x724   : > { %1452 = vmatprep.subr.bf16.mxu0 %v1421_v0  ;;  %v1384_v47 = vadd.f32 %v4125_v11, %v1383_v52  ;;  %v8216_v52 = vld [vmem:[#allocation27_spill] sm:$0xff] }
 0x725   : > { %v2190_v62 = vpack.c.bf16 %v759_v49, %v759_v49 }
 0x726   : > { %v1385_v38 = vadd.f32 %v4127_v37, %v1384_v47  ;;  %v1359_v47 = vrot.slane %v5605_v6, 4 }
 0x727   : > { %1453 = vmatpush1.bf16.msra.mxu0 %v8177_v12  ;;  %3620 = vperm.xlu0 %4002, %v3610_v43  }
 0x728   : > { %1454 = vmatprep.subr.bf16.mxu0 %v1423_v63  ;;  %v1386_v41 = vadd.f32 %v4129_v32, %v1385_v38  ;;  %v8180_v32 = vpack.c.bf16 %v5455_v48, %v5446_v46  ;;  %v8182_v63 = vld [vmem:[#allocation12_spill] sm:$0xff]  ;;  %v8185_v46 = vpack.c.bf16 %v5492_v9, %v5483_v31  ;;  %v770_v9 = vpop.f32.mrb[22].mxu0  ;;  %v1360_v43 = vadd.f32 %v1359_v47, %v5605_v6 }
 0x729   : > { %v5658_v31 = vpop.f32.mrb[23].mxu0 }
 0x72a   : > { %v1387_v11 = vadd.f32 %v4131_v1, %v1386_v41  ;;  %v8183_v1 = vld [vmem:[#allocation6_spill] sm:$0xff]  ;;  %8188 = vst [vmem:[#allocation41_spill] sm:$0xff] %v5658_v31  ;;  %v1361_v41 = vrot.slane %v1360_v43, 2 }
 0x72b   : > { %1455 = vmatpush1.bf16.msra.mxu0 %v8178_v7  ;;  %3630 = vperm.xlu0 %4002, %v3612_v5   ;;  %v731_v58 = vadd.f32 %v8183_v1, %v8182_v63 }
 0x72c   : > { %1456 = vmatprep.subr.bf16.mxu0 %v1425_v40  ;;  %v1388_v59 = vadd.f32 %v4133_v13, %v1387_v11  ;;  %v733_v13 = vadd.f32 %v8184_v39, %v8182_v63  ;;  %v1362_v5 = vadd.f32 %v1361_v41, %v1360_v43 }
 0x72d   : > { %v1481_v54 = vpack.c.bf16 %v731_v58, %v731_v58 }
 0x72e   : > { %v1389_v0 = vadd.f32 %v4135_v2, %v1388_v59  ;;  %v1482_v40 = vpack.c.bf16 %v733_v13, %v733_v13  ;;  %v1363_v59 = vrot.slane %v1362_v5, 1 }
 0x72f   : > { %1457 = vmatpush1.bf16.msra.mxu0 %v8179_v35  ;;  %v1568_v2 = vsel %vm862_vm1, %v1481_v54, 0 }
 0x730   : > { %1458 = vmatprep.subr.bf16.mxu0 %v1427_v16  ;;  %v1390_v37 = vadd.f32 %v4137_v19, %v1389_v0  ;;  %v8189_v19 = vld [vmem:[#allocation14_spill] sm:$0xff]  ;;  %v1364_v0 = vadd.f32 %v1363_v59, %v1362_v5 }
 0x732   : > { %v1391_v51 = vadd.f32 %v4139_v25, %v1390_v37  ;;  %v8196_v25 = vld [vmem:[#allocation26_spill] sm:$0xff]  ;;  %4148 = vrcp.f32 %v1364_v0 }
 0x733   : > { %1459 = vmatpush1.bf16.msra.mxu0 %v8180_v32 }
 0x734   : > { %1460 = vmatprep.subr.bf16.mxu0 %v1429_v21  ;;  %v1392_v53 = vadd.f32 %v4141_v22, %v1391_v51 }
 0x736   : > { %v1393_v61 = vadd.f32 %v4143_v57, %v1392_v53  ;;  %v8201_v57 = vld [vmem:[#allocation13_spill] sm:$0xff] }
 0x737   : > { %1461 = vmatpush1.bf16.msra.mxu0 %v8181_v44 }
 0x738   : > { %1462 = vmatprep.subr.bf16.mxu0 %v1431_v8  ;;  %v1394_v60 = vadd.f32 %v4145_v42, %v1393_v61  ;;  %v8203_v42 = vld [vmem:[#allocation15_spill] sm:$0xff] }
 0x73a   : > { %v1395_v48 = vadd.f32 %v4147_v17, %v1394_v60  ;;  %v8206_v17 = vld [vmem:[#allocation17_spill] sm:$0xff] }
 0x73b   : > { %1463 = vmatpush1.bf16.msra.mxu0 %v8185_v46 }
 0x73c   : > { %1464 = vmatprep.subr.bf16.mxu0 %v1433_v15  ;;  %v8208_v15 = vld [vmem:[#allocation19_spill] sm:$0xff]  ;;  %v1396_v12 = vrot.slane %v1395_v48, 4  ;;  %v4149_v32 = vpop.eup %4148 }
 0x73e   : > { %v1397_v38 = vadd.f32 %v1396_v12, %v1395_v48 }
 0x73f   : > { %1465 = vmatpush1.bf16.msra.mxu0 %v1432_v3  ;;  %v8192_v3 = vld [vmem:[#allocation20_spill] sm:$0xff] }
 0x740   : > { %3838 = vmatprep.subr.msk.bf16.mxu0 %vm862_vm1, %v1482_v40  ;;  %v1398_v7 = vrot.slane %v1397_v38, 2 }
 0x742   : > { %1467 = vmatmul.mubr.bf16.vlgmr.msra.gmra.mrb[24].mxu0 %v779_v4  ;;  %v1399_v11 = vadd.f32 %v1398_v7, %v1397_v38 }
 0x743   : > { %1574 = vmatpush1.bf16.msra.mxu0 %v1568_v2  ;;  %1605 = vmatprep.mubr.bf16.mxu0 %v8187_v18 }
 0x744   : > { %v1400_v35 = vrot.slane %v1399_v11, 1 }
 0x746   : > { %v1401_v37 = vadd.f32 %v1400_v35, %v1399_v11 }
 0x748   : > { %4150 = vrcp.f32 %v1401_v37 }
 0x74a   : > { %3839 = vmatmul.mubr.msk.bf16.vlgmr.msra.gmra.mrb[28].mxu0 %vm813_vm2, %v8189_v19 }
 0x74b   : > { %1615 = vmatprep.mubr.bf16.mxu0 %v8187_v18 }
 0x752   : > { %3840 = vmatmul.mubr.msk.bf16.gmra.mrb[32].mxu0 %vm813_vm2, %v8190_v23  ;;  %v4151_v53 = vpop.eup %4150 }
 0x753   : > { %1625 = vmatprep.mubr.bf16.mxu0 %v8187_v18 }
 0x75a   : > { %3841 = vmatmul.mubr.msk.bf16.gmra.mrb[36].mxu0 %vm813_vm2, %v8191_v27 }
 0x75b   : > { %1635 = vmatprep.mubr.bf16.mxu0 %v8187_v18 }
 0x762   : > { %3842 = vmatmul.mubr.msk.bf16.gmra.mrb[40].mxu0 %vm813_vm2, %v8192_v3 }
 0x763   : > { %1645 = vmatprep.mubr.bf16.mxu0 %v8187_v18 }
 0x764   : > { %v5678_v16 = vpop.trf.xlu0 }
 0x765   : > { %8195 = vst [vmem:[#allocation45_spill] sm:$0xff] %v5678_v16 }
 0x768   : > { %v5683_v22 = vpop.trf.xlu0 }
 0x769   : > { %8197 = vst [vmem:[#allocation46_spill] sm:$0xff] %v5683_v22 }
 0x76a   : > { %3843 = vmatmul.mubr.msk.bf16.gmra.mrb[44].mxu0 %vm813_vm2, %v8193_v10 }
 0x76b   : > { %1655 = vmatprep.mubr.bf16.mxu0 %v8187_v18 }
 0x76c   : > { %v5685_v30 = vpop.trf.xlu0 }
 0x76d   : > { %8198 = vst [vmem:[#allocation47_spill] sm:$0xff] %v5685_v30 }
 0x770   : > { %v5690_v21 = vpop.trf.xlu0 }
 0x771   : > { %8200 = vst [vmem:[#allocation50_spill] sm:$0xff] %v5690_v21 }
 0x772   : > { %3844 = vmatmul.mubr.msk.bf16.gmra.mrb[48].mxu0 %vm813_vm2, %v8194_v34 }
 0x773   : > { %1665 = vmatprep.mubr.bf16.mxu0 %v8187_v18 }
 0x774   : > { %v5695_v29 = vpop.trf.xlu0 }
 0x775   : > { %8202 = vst [vmem:[#allocation42_spill] sm:$0xff] %v5695_v29 }
 0x778   : > { %v5700_v45 = vpop.trf.xlu0 }
 0x779   : > { %8204 = vst [vmem:[#allocation43_spill] sm:$0xff] %v5700_v45 }
 0x77a   : > { %3845 = vmatmul.mubr.msk.bf16.gmra.mrb[52].mxu0 %vm813_vm2, %v8196_v25 }
 0x77b   : > { %1675 = vmatprep.mubr.bf16.mxu0 %v8187_v18 }
 0x77c   : > { %v5702_v8 = vpop.trf.xlu0 }
 0x77d   : > { %8205 = vst [vmem:[#allocation44_spill] sm:$0xff] %v5702_v8 }
 0x780   : > { %v5707_v56 = vpop.trf.xlu0 }
 0x781   : > { %8207 = vst [vmem:[#allocation48_spill] sm:$0xff] %v5707_v56 }
 0x782   : > { %3846 = vmatmul.mubr.msk.bf16.gmra.mrb[56].mxu0 %vm813_vm2, %v8199_v28 }
 0x783   : > { %1685 = vmatprep.mubr.bf16.mxu0 %v8187_v18 }
 0x78a   : > { %3847 = vmatmul.mubr.msk.bf16.gmra.mrb[60].mxu0 %vm813_vm2, %v8201_v57 }
 0x78b   : > { %1695 = vmatprep.mubr.bf16.mxu0 %v8187_v18 }
 0x792   : > { %3848 = vmatmul.mubr.msk.bf16.gmra.mrb[64].mxu0 %vm813_vm2, %v8203_v42 }
 0x793   : > { %1705 = vmatprep.mubr.bf16.mxu0 %v8187_v18 }
 0x79a   : > { %3849 = vmatmul.mubr.msk.bf16.gmra.mrb[68].mxu0 %vm813_vm2, %v8206_v17 }
 0x79b   : > { %1715 = vmatprep.mubr.bf16.mxu0 %v8187_v18 }
 0x7a2   : > { %3850 = vmatmul.mubr.msk.bf16.gmra.mrb[72].mxu0 %vm813_vm2, %v8208_v15  ;;  %v5712_v33 = vpop.permute.xlu0 %631 }
 0x7a3   : > { %1725 = vmatprep.mubr.bf16.mxu0 %v8187_v18  ;;  %8209 = vst [vmem:[#allocation49_spill] sm:$0xff] %v5712_v33  ;;  %v5715_v26 = vadd.f32 %v770_v9, %v5712_v33 }
 0x7a5   : > { %8210 = vst [vmem:[#allocation34_spill] sm:$0xff] %v5715_v26 }
 0x7aa   : > { %3851 = vmatmul.mubr.msk.bf16.gmra.mrb[76].mxu0 %vm813_vm2, %v8211_v36 }
 0x7ab   : > { %1735 = vmatprep.mubr.bf16.mxu0 %v8187_v18 }
 0x7b2   : > { %3852 = vmatmul.mubr.msk.bf16.gmra.mrb[80].mxu0 %vm813_vm2, %v8212_v50 }
 0x7b3   : > { %1745 = vmatprep.mubr.bf16.mxu0 %v8187_v18 }
 0x7ba   : > { %3853 = vmatmul.mubr.msk.bf16.gmra.mrb[84].mxu0 %vm813_vm2, %v8213_v24 }
 0x7bb   : > { %1755 = vmatprep.mubr.bf16.mxu0 %v8187_v18 }
 0x7c2   : > { %3854 = vmatmul.mubr.msk.bf16.gmra.mrb[88].mxu0 %vm813_vm2, %v8216_v52 }
 0x7c3   : > { %2874 = vmatprep.mubr.bf16.mxu0 %v2190_v62 }
 0x815   : > { %v1468_v51 = vpop.f32.mrb[24].mxu0 }
 0x816   : > { %v5732_v44 = vmul.f32 %v4149_v32, %v1468_v51  ;;  %v1470_v61 = vpop.f32.mrb[25].mxu0 }
 0x817   : > { %v5734_v63 = vmul.f32 %v4151_v53, %v1470_v61  ;;  %v1472_v6 = vpop.f32.mrb[26].mxu0 }
 0x818   : > { %8217 = vst [vmem:[#allocation35_spill] sm:$0xff] %v5732_v44  ;;  %v1473_v1 = vpop.f32.mrb[27].mxu0 }
 0x819   : > { %8218 = vst [vmem:[#allocation12_spill] sm:$0xff] %v5734_v63 }
 0x81d   : > { %v5736_v58 = vpop.f32.mrb[28].mxu0 }
 0x81e   : > { %v5738_v39 = vpop.f32.mrb[29].mxu0 }
 0x81f   : > { %v5740_v13 = vpop.f32.mrb[30].mxu0 }
 0x820   : > { %v5742_v60 = vpop.f32.mrb[31].mxu0 }
 0x825   : > { %v5744_v46 = vpop.f32.mrb[32].mxu0 }
 0x826   : > { %v1766_v48 = vmax.f32 %v5736_v58, %v5744_v46  ;;  %v5748_v54 = vpop.f32.mrb[33].mxu0 }
 0x827   : > { %v1803_v40 = vmax.f32 %v5738_v39, %v5748_v54  ;;  %v5752_v20 = vpop.f32.mrb[34].mxu0 }
 0x828   : > { %v1767_v4 = vmax.f32 %v5740_v13, %v5752_v20  ;;  %v5756_v2 = vpop.f32.mrb[35].mxu0 }
 0x829   : > { %v1804_v9 = vmax.f32 %v5742_v60, %v5756_v2 }
 0x82d   : > { %v5760_v19 = vpop.f32.mrb[36].mxu0 }
 0x82e   : > { %v1768_v23 = vmax.f32 %v1766_v48, %v5760_v19  ;;  %v5763_v27 = vpop.f32.mrb[37].mxu0 }
 0x82f   : > { %v1805_v3 = vmax.f32 %v1803_v40, %v5763_v27  ;;  %v5766_v10 = vpop.f32.mrb[38].mxu0 }
 0x830   : > { %v1769_v34 = vmax.f32 %v1767_v4, %v5766_v10  ;;  %v5769_v25 = vpop.f32.mrb[39].mxu0 }
 0x831   : > { %v1806_v28 = vmax.f32 %v1804_v9, %v5769_v25 }
 0x835   : > { %v5772_v57 = vpop.f32.mrb[40].mxu0 }
 0x836   : > { %v1770_v42 = vmax.f32 %v1768_v23, %v5772_v57  ;;  %v5775_v17 = vpop.f32.mrb[41].mxu0 }
 0x837   : > { %v1807_v15 = vmax.f32 %v1805_v3, %v5775_v17  ;;  %v5778_v36 = vpop.f32.mrb[42].mxu0 }
 0x838   : > { %v1771_v50 = vmax.f32 %v1769_v34, %v5778_v36  ;;  %v5781_v24 = vpop.f32.mrb[43].mxu0 }
 0x839   : > { %v1808_v55 = vmax.f32 %v1806_v28, %v5781_v24 }
 0x83d   : > { %v5784_v14 = vpop.f32.mrb[44].mxu0 }
 0x83e   : > { %v1772_v49 = vmax.f32 %v1770_v42, %v5784_v14  ;;  %v5787_v62 = vpop.f32.mrb[45].mxu0 }
 0x83f   : > { %v1809_v52 = vmax.f32 %v1807_v15, %v5787_v62  ;;  %v5790_v47 = vpop.f32.mrb[46].mxu0 }
 0x840   : > { %v1773_v12 = vmax.f32 %v1771_v50, %v5790_v47  ;;  %v5793_v43 = vpop.f32.mrb[47].mxu0 }
 0x841   : > { %v1810_v38 = vmax.f32 %v1808_v55, %v5793_v43 }
 0x845   : > { %v5796_v41 = vpop.f32.mrb[48].mxu0 }
 0x846   : > { %v1774_v7 = vmax.f32 %v1772_v49, %v5796_v41  ;;  %v5799_v5 = vpop.f32.mrb[49].mxu0 }
 0x847   : > { %v1811_v11 = vmax.f32 %v1809_v52, %v5799_v5  ;;  %v5802_v59 = vpop.f32.mrb[50].mxu0 }
 0x848   : > { %v1775_v35 = vmax.f32 %v1773_v12, %v5802_v59  ;;  %v5805_v0 = vpop.f32.mrb[51].mxu0 }
 0x849   : > { %8219 = vst [vmem:[#allocation6_spill] sm:$0xff] %v5805_v0  ;;  %v1812_v37 = vmax.f32 %v1810_v38, %v5805_v0 }
 0x84d   : > { %v5808_v32 = vpop.f32.mrb[52].mxu0 }
 0x84e   : > { %v1776_v51 = vmax.f32 %v1774_v7, %v5808_v32  ;;  %v5811_v53 = vpop.f32.mrb[53].mxu0 }
 0x84f   : > { %8220 = vst [vmem:[#allocation7_spill] sm:$0xff] %v5811_v53  ;;  %v1813_v61 = vmax.f32 %v1811_v11, %v5811_v53  ;;  %v5814_v6 = vpop.f32.mrb[54].mxu0 }
 0x850   : > { %v1777_v1 = vmax.f32 %v1775_v35, %v5814_v6  ;;  %v5817_v48 = vpop.f32.mrb[55].mxu0 }
 0x851   : > { %8221 = vst [vmem:[#allocation8_spill] sm:$0xff] %v5817_v48  ;;  %v1814_v40 = vmax.f32 %v1812_v37, %v5817_v48 }
 0x855   : > { %v5820_v4 = vpop.f32.mrb[56].mxu0 }
 0x856   : > { %v1778_v9 = vmax.f32 %v1776_v51, %v5820_v4  ;;  %v5823_v23 = vpop.f32.mrb[57].mxu0 }
 0x857   : > { %8222 = vst [vmem:[#allocation14_spill] sm:$0xff] %v5823_v23  ;;  %v1815_v3 = vmax.f32 %v1813_v61, %v5823_v23  ;;  %v5826_v34 = vpop.f32.mrb[58].mxu0 }
 0x858   : > { %v1779_v28 = vmax.f32 %v1777_v1, %v5826_v34  ;;  %v5829_v42 = vpop.f32.mrb[59].mxu0 }
 0x859   : > { %8223 = vst [vmem:[#allocation16_spill] sm:$0xff] %v5829_v42  ;;  %v1816_v15 = vmax.f32 %v1814_v40, %v5829_v42 }
 0x85d   : > { %v5832_v50 = vpop.f32.mrb[60].mxu0 }
 0x85e   : > { %v1780_v55 = vmax.f32 %v1778_v9, %v5832_v50  ;;  %v5835_v49 = vpop.f32.mrb[61].mxu0 }
 0x85f   : > { %8224 = vst [vmem:[#allocation18_spill] sm:$0xff] %v5835_v49  ;;  %v1817_v52 = vmax.f32 %v1815_v3, %v5835_v49  ;;  %v5838_v12 = vpop.f32.mrb[62].mxu0 }
 0x860   : > { %v1781_v38 = vmax.f32 %v1779_v28, %v5838_v12  ;;  %v5841_v7 = vpop.f32.mrb[63].mxu0 }
 0x861   : > { %8225 = vst [vmem:[#allocation20_spill] sm:$0xff] %v5841_v7  ;;  %v1818_v11 = vmax.f32 %v1816_v15, %v5841_v7 }
 0x865   : > { %v5844_v35 = vpop.f32.mrb[64].mxu0 }
 0x866   : > { %v1782_v37 = vmax.f32 %v1780_v55, %v5844_v35  ;;  %v5847_v51 = vpop.f32.mrb[65].mxu0 }
 0x867   : > { %8226 = vst [vmem:[#allocation22_spill] sm:$0xff] %v5847_v51  ;;  %v1819_v61 = vmax.f32 %v1817_v52, %v5847_v51  ;;  %v5850_v1 = vpop.f32.mrb[66].mxu0 }
 0x868   : > { %v1783_v40 = vmax.f32 %v1781_v38, %v5850_v1  ;;  %v5853_v9 = vpop.f32.mrb[67].mxu0 }
 0x869   : > { %8227 = vst [vmem:[#allocation24_spill] sm:$0xff] %v5853_v9  ;;  %v1820_v3 = vmax.f32 %v1818_v11, %v5853_v9 }
 0x86d   : > { %v5856_v28 = vpop.f32.mrb[68].mxu0 }
 0x86e   : > { %v1784_v15 = vmax.f32 %v1782_v37, %v5856_v28  ;;  %v5859_v26 = vpop.f32.mrb[69].mxu0 }
 0x86f   : > { %8228 = vst [vmem:[#allocation26_spill] sm:$0xff] %v5859_v26  ;;  %v1821_v55 = vmax.f32 %v1819_v61, %v5859_v26  ;;  %v5862_v56 = vpop.f32.mrb[70].mxu0 }
 0x870   : > { %v1785_v52 = vmax.f32 %v1783_v40, %v5862_v56  ;;  %v5865_v8 = vpop.f32.mrb[71].mxu0 }
 0x871   : > { %8229 = vst [vmem:[#allocation28_spill] sm:$0xff] %v5865_v8  ;;  %v1822_v38 = vmax.f32 %v1820_v3, %v5865_v8 }
 0x875   : > { %v5868_v45 = vpop.f32.mrb[72].mxu0 }
 0x876   : > { %v1786_v11 = vmax.f32 %v1784_v15, %v5868_v45  ;;  %v5871_v29 = vpop.f32.mrb[73].mxu0 }
 0x877   : > { %8230 = vst [vmem:[#allocation13_spill] sm:$0xff] %v5871_v29  ;;  %v1823_v37 = vmax.f32 %v1821_v55, %v5871_v29  ;;  %v5874_v21 = vpop.f32.mrb[74].mxu0 }
 0x878   : > { %v1787_v61 = vmax.f32 %v1785_v52, %v5874_v21  ;;  %v5877_v30 = vpop.f32.mrb[75].mxu0 }
 0x879   : > { %8231 = vst [vmem:[#allocation15_spill] sm:$0xff] %v5877_v30  ;;  %v1824_v40 = vmax.f32 %v1822_v38, %v5877_v30 }
 0x87d   : > { %v5880_v22 = vpop.f32.mrb[76].mxu0 }
 0x87e   : > { %v1788_v3 = vmax.f32 %v1786_v11, %v5880_v22  ;;  %v5883_v16 = vpop.f32.mrb[77].mxu0 }
 0x87f   : > { %8232 = vst [vmem:[#allocation17_spill] sm:$0xff] %v5883_v16  ;;  %v1825_v15 = vmax.f32 %v1823_v37, %v5883_v16  ;;  %v5886_v63 = vpop.f32.mrb[78].mxu0 }
 0x880   : > { %v1789_v55 = vmax.f32 %v1787_v61, %v5886_v63  ;;  %v5889_v44 = vpop.f32.mrb[79].mxu0 }
 0x881   : > { %8233 = vst [vmem:[#allocation19_spill] sm:$0xff] %v5889_v44  ;;  %v1826_v52 = vmax.f32 %v1824_v40, %v5889_v44 }
 0x885   : > { %v5892_v31 = vpop.f32.mrb[80].mxu0 }
 0x886   : > { %v1790_v38 = vmax.f32 %v1788_v3, %v5892_v31  ;;  %v5895_v33 = vpop.f32.mrb[81].mxu0 }
 0x887   : > { %8234 = vst [vmem:[#allocation21_spill] sm:$0xff] %v5895_v33  ;;  %v1827_v11 = vmax.f32 %v1825_v15, %v5895_v33  ;;  %v5898_v18 = vpop.f32.mrb[82].mxu0 }
 0x888   : > { %v1791_v37 = vmax.f32 %v1789_v55, %v5898_v18  ;;  %v5901_v16 = vpop.f32.mrb[83].mxu0 }
 0x889   : > { %8235 = vst [vmem:[#allocation23_spill] sm:$0xff] %v5901_v16  ;;  %v1828_v61 = vmax.f32 %v1826_v52, %v5901_v16 }
 0x88d   : > { %v5904_v30 = vpop.f32.mrb[84].mxu0 }
 0x88e   : > { %v1792_v40 = vmax.f32 %v1790_v38, %v5904_v30  ;;  %v5907_v44 = vpop.f32.mrb[85].mxu0 }
 0x88f   : > { %8236 = vst [vmem:[#allocation25_spill] sm:$0xff] %v5907_v44  ;;  %v1829_v3 = vmax.f32 %v1827_v11, %v5907_v44  ;;  %v5910_v29 = vpop.f32.mrb[86].mxu0 }
 0x890   : > { %v1793_v15 = vmax.f32 %v1791_v37, %v5910_v29  ;;  %v5913_v33 = vpop.f32.mrb[87].mxu0 }
 0x891   : > { %8237 = vst [vmem:[#allocation39_spill] sm:$0xff] %v5913_v33  ;;  %v1830_v55 = vmax.f32 %v1828_v61, %v5913_v33 }
 0x895   : > { %v5916_v8 = vpop.f32.mrb[88].mxu0 }
 0x896   : > { %v1794_v52 = vmax.f32 %v1792_v40, %v5916_v8  ;;  %v5919_v16 = vpop.f32.mrb[89].mxu0 }
 0x897   : > { %8238 = vst [vmem:[#allocation51_spill] sm:$0xff] %v5919_v16  ;;  %v1831_v38 = vmax.f32 %v1829_v3, %v5919_v16  ;;  %v5922_v26 = vpop.f32.mrb[90].mxu0 }
 0x898   : > { %v1795_v11 = vmax.f32 %v1793_v15, %v5922_v26  ;;  %v5925_v44 = vpop.f32.mrb[91].mxu0 }
 0x899   : > { %8239 = vst [vmem:[#allocation27_spill] sm:$0xff] %v5925_v44  ;;  %v1832_v37 = vmax.f32 %v1830_v55, %v5925_v44 }
 0x89a   : > { %v1796_v9 = vmax.f32 %v1794_v52, %v1795_v11 }
 0x89b   : > { %v1833_v51 = vmax.f32 %v1831_v38, %v1832_v37 }
 0x89c   : > { %v1797_v7 = vrot.slane %v1796_v9, 4 }
 0x89d   : > { %v1834_v61 = vrot.slane %v1833_v51, 4 }
 0x89e   : > { %v1798_v33 = vmax.f32 %v1796_v9, %v1797_v7 }
 0x89f   : > { %v1835_v49 = vmax.f32 %v1833_v51, %v1834_v61 }
 0x8a0   : > { %v1799_v42 = vrot.slane %v1798_v33, 2 }
 0x8a1   : > { %v1836_v40 = vrot.slane %v1835_v49, 2 }
 0x8a2   : > { %v1800_v23 = vmax.f32 %v1798_v33, %v1799_v42  ;;  %v8259_v42 = vld [vmem:[#allocation51_spill] sm:$0xff] }
 0x8a3   : > { %v1837_v48 = vmax.f32 %v1835_v49, %v1836_v40 }
 0x8a4   : > { %v1801_v53 = vrot.slane %v1800_v23, 1 }
 0x8a5   : > { %v1838_v3 = vrot.slane %v1837_v48, 1 }
 0x8a6   : > { %v5928_v16 = vmax.f32 %v1800_v23, %v1801_v53 }
 0x8a7   : > { %v5930_v0 = vmax.f32 %v1837_v48, %v1838_v3 }
 0x8a8   : > { %v1840_v15 = vsub.f32 %v5736_v58, %v5928_v16  ;;  %v1842_v55 = vsub.f32 %v5740_v13, %v5928_v16  ;;  %v1844_v7 = vsub.f32 %v5744_v46, %v5928_v16  ;;  %v1846_v51 = vsub.f32 %v5752_v20, %v5928_v16 }
 0x8a9   : > { %v1848_v33 = vsub.f32 %v5760_v19, %v5928_v16  ;;  %v1850_v53 = vsub.f32 %v5766_v10, %v5928_v16  ;;  %v1852_v48 = vsub.f32 %v5772_v57, %v5928_v16  ;;  %v1854_v58 = vsub.f32 %v5778_v36, %v5928_v16 }
 0x8aa   : > { %v1856_v13 = vsub.f32 %v5784_v14, %v5928_v16  ;;  %v1858_v46 = vsub.f32 %v5790_v47, %v5928_v16  ;;  %v1860_v20 = vsub.f32 %v5796_v41, %v5928_v16  ;;  %v1862_v19 = vsub.f32 %v5802_v59, %v5928_v16 }
 0x8ab   : > { %v1864_v10 = vsub.f32 %v5808_v32, %v5928_v16  ;;  %v1866_v57 = vsub.f32 %v5814_v6, %v5928_v16  ;;  %v1868_v36 = vsub.f32 %v5820_v4, %v5928_v16  ;;  %v1870_v14 = vsub.f32 %v5826_v34, %v5928_v16 }
 0x8ac   : > { %v1872_v47 = vsub.f32 %v5832_v50, %v5928_v16  ;;  %v1874_v41 = vsub.f32 %v5838_v12, %v5928_v16  ;;  %v1876_v59 = vsub.f32 %v5844_v35, %v5928_v16  ;;  %v1878_v32 = vsub.f32 %v5850_v1, %v5928_v16 }
 0x8ad   : > { %v1880_v6 = vsub.f32 %v5856_v28, %v5928_v16  ;;  %v1882_v4 = vsub.f32 %v5862_v56, %v5928_v16  ;;  %v1884_v23 = vsub.f32 %v5868_v45, %v5928_v16  ;;  %v1886_v34 = vsub.f32 %v5874_v21, %v5928_v16 }
 0x8ae   : > { %v1904_v1 = vmul.f32 1.442695, %v1840_v15  ;;  %v1908_v9 = vmul.f32 1.442695, %v1842_v55  ;;  %v1912_v28 = vmul.f32 1.442695, %v1844_v7 }
 0x8af   : > { %v1916_v38 = vmul.f32 1.442695, %v1846_v51  ;;  %v1920_v37 = vmul.f32 1.442695, %v1848_v33  ;;  %v1924_v61 = vmul.f32 1.442695, %v1850_v53 }
 0x8b0   : > { %4152 = vpow2.f32 %v1904_v1  ;;  %v1928_v40 = vmul.f32 1.442695, %v1852_v48  ;;  %v1932_v3 = vmul.f32 1.442695, %v1854_v58  ;;  %v1936_v21 = vmul.f32 1.442695, %v1856_v13 }
 0x8b1   : > { %4154 = vpow2.f32 %v1908_v9  ;;  %v1940_v35 = vmul.f32 1.442695, %v1858_v46  ;;  %v1944_v15 = vmul.f32 1.442695, %v1860_v20  ;;  %v1948_v55 = vmul.f32 1.442695, %v1862_v19 }
 0x8b2   : > { %4156 = vpow2.f32 %v1912_v28  ;;  %v1952_v7 = vmul.f32 1.442695, %v1864_v10  ;;  %v1956_v52 = vmul.f32 1.442695, %v1866_v57  ;;  %v1960_v51 = vmul.f32 1.442695, %v1868_v36 }
 0x8b3   : > { %4158 = vpow2.f32 %v1916_v38  ;;  %v1964_v45 = vmul.f32 1.442695, %v1870_v14  ;;  %v1968_v11 = vmul.f32 1.442695, %v1872_v47  ;;  %v1972_v1 = vmul.f32 1.442695, %v1874_v41 }
 0x8b4   : > { %4160 = vpow2.f32 %v1920_v37  ;;  %v1976_v33 = vmul.f32 1.442695, %v1876_v59  ;;  %v1980_v53 = vmul.f32 1.442695, %v1878_v32  ;;  %v1984_v9 = vmul.f32 1.442695, %v1880_v6 }
 0x8b5   : > { %4162 = vpow2.f32 %v1924_v61  ;;  %v6000_v48 = vmul.f32 1.442695, %v1882_v4  ;;  %v6002_v58 = vmul.f32 1.442695, %v1884_v23  ;;  %v6004_v13 = vmul.f32 1.442695, %v1886_v34 }
 0x8b6   : > { %4164 = vpow2.f32 %v1928_v40  ;;  %v8240_v6 = vld [vmem:[#allocation6_spill] sm:$0xff]  ;;  %v8242_v28 = vld [vmem:[#allocation8_spill] sm:$0xff]  ;;  %v8251_v38 = vld [vmem:[#allocation13_spill] sm:$0xff] }
 0x8b7   : > { %4166 = vpow2.f32 %v1932_v3  ;;  %v8243_v61 = vld [vmem:[#allocation14_spill] sm:$0xff]  ;;  %v8244_v3 = vld [vmem:[#allocation16_spill] sm:$0xff]  ;;  %v8252_v19 = vld [vmem:[#allocation15_spill] sm:$0xff] }
 0x8b8   : > { %4168 = vpow2.f32 %v1936_v21  ;;  %v8241_v21 = vld [vmem:[#allocation7_spill] sm:$0xff]  ;;  %v8246_v32 = vld [vmem:[#allocation20_spill] sm:$0xff]  ;;  %v8247_v59 = vld [vmem:[#allocation22_spill] sm:$0xff] }
 0x8b9   : > { %4170 = vpow2.f32 %v1940_v35  ;;  %v8248_v40 = vld [vmem:[#allocation24_spill] sm:$0xff]  ;;  %v8249_v14 = vld [vmem:[#allocation26_spill] sm:$0xff]  ;;  %v8254_v46 = vld [vmem:[#allocation19_spill] sm:$0xff] }
 0x8ba   : > { %v6014_v57 = vpop.eup %4152  ;;  %4172 = vpow2.f32 %v1944_v15  ;;  %v8250_v36 = vld [vmem:[#allocation28_spill] sm:$0xff]  ;;  %v8253_v15 = vld [vmem:[#allocation17_spill] sm:$0xff] }
 0x8bb   : > { %v6022_v41 = vpop.eup %4154  ;;  %4174 = vpow2.f32 %v1948_v55  ;;  %v8245_v55 = vld [vmem:[#allocation18_spill] sm:$0xff] }
 0x8bc   : > { %v6030_v23 = vpop.eup %4156  ;;  %4176 = vpow2.f32 %v1952_v7  ;;  %v2032_v34 = vadd.f32 %v6022_v41, %v6014_v57  ;;  %v8258_v7 = vld [vmem:[#allocation39_spill] sm:$0xff] }
 0x8bd   : > { %v6038_v37 = vpop.eup %4158  ;;  %4178 = vpow2.f32 %v1956_v52  ;;  %v8256_v52 = vld [vmem:[#allocation23_spill] sm:$0xff] }
 0x8be   : > { %v6046_v4 = vpop.eup %4160  ;;  %4180 = vpow2.f32 %v1960_v51  ;;  %v2033_v35 = vadd.f32 %v6030_v23, %v2032_v34 }
 0x8bf   : > { %v6053_v47 = vpop.eup %4162  ;;  %4182 = vpow2.f32 %v1964_v45 }
 0x8c0   : > { %v6061_v10 = vpop.eup %4164  ;;  %4184 = vpow2.f32 %v1968_v11  ;;  %v2034_v34 = vadd.f32 %v6038_v37, %v2033_v35 }
 0x8c1   : > { %v6068_v20 = vpop.eup %4166  ;;  %4186 = vpow2.f32 %v1972_v1 }
 0x8c2   : > { %v6076_v12 = vpop.eup %4168  ;;  %4188 = vpow2.f32 %v1976_v33  ;;  %v2035_v35 = vadd.f32 %v6046_v4, %v2034_v34  ;;  %v8260_v34 = vsub.f32 %v5880_v22, %v5928_v16 }
 0x8c3   : > { %v6083_v50 = vpop.eup %4170  ;;  %4190 = vpow2.f32 %v1980_v53  ;;  %v8261_v53 = vsub.f32 %v5886_v63, %v5928_v16 }
 0x8c4   : > { %v6091_v56 = vpop.eup %4172  ;;  %4192 = vpow2.f32 %v1984_v9  ;;  %v2000_v45 = vmul.f32 1.442695, %v8260_v34  ;;  %v2036_v1 = vadd.f32 %v6053_v47, %v2035_v35  ;;  %v8262_v9 = vsub.f32 %v5892_v31, %v5928_v16 }
 0x8c5   : > { %v6097_v49 = vpop.eup %4174  ;;  %4194 = vpow2.f32 %v6000_v48  ;;  %v2004_v11 = vmul.f32 1.442695, %v8261_v53  ;;  %v8263_v48 = vsub.f32 %v5898_v18, %v5928_v16  ;;  %v8267_v18 = vsub.f32 %v5916_v8, %v5928_v16 }
 0x8c6   : > { %v6103_v51 = vpop.eup %4176  ;;  %4196 = vpow2.f32 %v6002_v58  ;;  %v2008_v33 = vmul.f32 1.442695, %v8262_v9  ;;  %v2037_v22 = vadd.f32 %v6061_v10, %v2036_v1  ;;  %v8264_v58 = vsub.f32 %v5904_v30, %v5928_v16 }
 0x8c7   : > { %v6110_v34 = vpop.eup %4178  ;;  %4198 = vpow2.f32 %v6004_v13  ;;  %v2012_v35 = vmul.f32 1.442695, %v8263_v48  ;;  %v8265_v1 = vsub.f32 %v5910_v29, %v5928_v16 }
 0x8c8   : > { %v6116_v63 = vpop.eup %4180  ;;  %4200 = vpow2.f32 %v2000_v45  ;;  %v2016_v53 = vmul.f32 1.442695, %v8264_v58  ;;  %v2038_v31 = vadd.f32 %v6068_v20, %v2037_v22  ;;  %v2024_v45 = vmul.f32 1.442695, %v8267_v18 }
 0x8c9   : > { %v6122_v9 = vpop.eup %4182  ;;  %4202 = vpow2.f32 %v2004_v11  ;;  %v2020_v13 = vmul.f32 1.442695, %v8265_v1  ;;  %v8268_v22 = vsub.f32 %v5922_v26, %v5928_v16  ;;  %v8271_v16 = vsub.f32 %v5748_v54, %v5930_v0 }
 0x8ca   : > { %v6127_v44 = vpop.eup %4184  ;;  %4204 = vpow2.f32 %v2008_v33  ;;  %v2039_v48 = vadd.f32 %v6076_v12, %v2038_v31  ;;  %v8269_v33 = vsub.f32 %v5738_v39, %v5930_v0  ;;  %v8270_v31 = vsub.f32 %v5742_v60, %v5930_v0 }
 0x8cb   : > { %8266 = vst [vmem:[#allocation6_spill] sm:$0xff] %v6127_v44  ;;  %v6133_v30 = vpop.eup %4186  ;;  %4206 = vpow2.f32 %v2012_v35  ;;  %v2028_v11 = vmul.f32 1.442695, %v8268_v22  ;;  %v1914_v26 = vmul.f32 1.442695, %v8271_v16  ;;  %v8272_v39 = vsub.f32 %v5756_v2, %v5930_v0 }
 0x8cc   : > { %v6138_v58 = vpop.eup %4188  ;;  %4208 = vpow2.f32 %v2016_v53  ;;  %v2040_v29 = vadd.f32 %v6083_v50, %v2039_v48  ;;  %v1906_v1 = vmul.f32 1.442695, %v8269_v33  ;;  %v1910_v35 = vmul.f32 1.442695, %v8270_v31 }
 0x8cd   : > { %v6144_v8 = vpop.eup %4190  ;;  %4210 = vpow2.f32 %v2020_v13  ;;  %v1918_v48 = vmul.f32 1.442695, %v8272_v39  ;;  %v8273_v13 = vsub.f32 %v5763_v27, %v5930_v0  ;;  %v8274_v60 = vsub.f32 %v5769_v25, %v5930_v0 }
 0x8ce   : > { %v6152_v18 = vpop.eup %4192  ;;  %4212 = vpow2.f32 %v2024_v45  ;;  %v2041_v53 = vadd.f32 %v6091_v56, %v2040_v29  ;;  %v8275_v45 = vsub.f32 %v5775_v17, %v5930_v0  ;;  %v8276_v29 = vsub.f32 %v5781_v24, %v5930_v0 }
 0x8cf   : > { %v1922_v22 = vmul.f32 1.442695, %v8273_v13  ;;  %v6161_v33 = vpop.eup %4194  ;;  %4214 = vpow2.f32 %v2028_v11  ;;  %v1926_v54 = vmul.f32 1.442695, %v8274_v60  ;;  %v8277_v11 = vsub.f32 %v5787_v62, %v5930_v0 }
 0x8d0   : > { %v1930_v31 = vmul.f32 1.442695, %v8275_v45  ;;  %v1934_v2 = vmul.f32 1.442695, %v8276_v29  ;;  %v6172_v16 = vpop.eup %4196  ;;  %v2042_v27 = vadd.f32 %v6097_v49, %v2041_v53  ;;  %4216 = vpow2.f32 %v1906_v1 }
 0x8d1   : > { %v1938_v39 = vmul.f32 1.442695, %v8277_v11  ;;  %v8278_v25 = vsub.f32 %v5793_v43, %v5930_v0  ;;  %v6181_v60 = vpop.eup %4198  ;;  %4218 = vpow2.f32 %v1910_v35 }
 0x8d2   : > { %v6189_v53 = vpop.eup %4200  ;;  %v2043_v62 = vadd.f32 %v6103_v51, %v2042_v27  ;;  %4220 = vpow2.f32 %v1914_v26 }
 0x8d3   : > { %v1942_v13 = vmul.f32 1.442695, %v8278_v25  ;;  %v6196_v45 = vpop.eup %4202  ;;  %4222 = vpow2.f32 %v1918_v48  ;;  %v8279_v48 = vsub.f32 %v5799_v5, %v5930_v0  ;;  %v8280_v25 = vsub.f32 %v8240_v6, %v5930_v0 }
 0x8d4   : > { %v6204_v27 = vpop.eup %4204  ;;  %v2044_v26 = vadd.f32 %v6110_v34, %v2043_v62  ;;  %4224 = vpow2.f32 %v1922_v22 }
 0x8d5   : > { %v6211_v43 = vpop.eup %4206  ;;  %4226 = vpow2.f32 %v1926_v54  ;;  %v1946_v35 = vmul.f32 1.442695, %v8279_v48  ;;  %v1950_v11 = vmul.f32 1.442695, %v8280_v25 }
 0x8d6   : > { %v6219_v62 = vpop.eup %4208  ;;  %v2045_v22 = vadd.f32 %v6116_v63, %v2044_v26  ;;  %4228 = vpow2.f32 %v1930_v31  ;;  %v8281_v31 = vsub.f32 %v8241_v21, %v5930_v0  ;;  %v8286_v21 = vsub.f32 %v8246_v32, %v5930_v0 }
 0x8d7   : > { %v6227_v1 = vpop.eup %4210  ;;  %4230 = vpow2.f32 %v1934_v2  ;;  %v8282_v2 = vsub.f32 %v8242_v28, %v5930_v0  ;;  %v8285_v28 = vsub.f32 %v8245_v55, %v5930_v0  ;;  %v8289_v32 = vsub.f32 %v8249_v14, %v5930_v0 }
 0x8d8   : > { %v6232_v29 = vpop.eup %4212  ;;  %v2046_v24 = vadd.f32 %v6122_v9, %v2045_v22  ;;  %4232 = vpow2.f32 %v1938_v39  ;;  %v1954_v5 = vmul.f32 1.442695, %v8281_v31  ;;  %v8283_v39 = vsub.f32 %v8243_v61, %v5930_v0 }
 0x8d9   : > { %v6240_v48 = vpop.eup %4214  ;;  %4234 = vpow2.f32 %v1942_v13  ;;  %v1958_v6 = vmul.f32 1.442695, %v8282_v2  ;;  %v8284_v13 = vsub.f32 %v8244_v3, %v5930_v0  ;;  %v1970_v2 = vmul.f32 1.442695, %v8285_v28 }
 0x8da   : > { %v4217_v25 = vpop.eup %4216  ;;  %v2047_v54 = vadd.f32 %v6127_v44, %v2046_v24  ;;  %4236 = vpow2.f32 %v1946_v35  ;;  %v1962_v22 = vmul.f32 1.442695, %v8283_v39  ;;  %v8287_v3 = vsub.f32 %v8247_v59, %v5930_v0 }
 0x8db   : > { %v4219_v31 = vpop.eup %4218  ;;  %4238 = vpow2.f32 %v1950_v11  ;;  %v1966_v26 = vmul.f32 1.442695, %v8284_v13  ;;  %v1974_v11 = vmul.f32 1.442695, %v8286_v21  ;;  %v1986_v21 = vmul.f32 1.442695, %v8289_v32 }
 0x8dc   : > { %v4221_v17 = vpop.eup %4220  ;;  %v2048_v24 = vadd.f32 %v6133_v30, %v2047_v54  ;;  %4240 = vpow2.f32 %v1954_v5  ;;  %v2069_v35 = vadd.f32 %v4219_v31, %v4217_v25  ;;  %v2107_v61 = vpack.c.bf16 %v4219_v31, %v4217_v25 }
 0x8dd   : > { %v4223_v39 = vpop.eup %4222  ;;  %4242 = vpow2.f32 %v1958_v6  ;;  %v1978_v13 = vmul.f32 1.442695, %v8287_v3  ;;  %v8288_v6 = vsub.f32 %v8248_v40, %v5930_v0  ;;  %v8290_v59 = vpack.c.bf16 %v6022_v41, %v6014_v57 }
 0x8de   : > { %v4225_v44 = vpop.eup %4224  ;;  %v2049_v55 = vadd.f32 %v6138_v58, %v2048_v24  ;;  %4244 = vpow2.f32 %v1962_v22  ;;  %v2070_v28 = vadd.f32 %v4221_v17, %v2069_v35  ;;  %2138 = vmatprep.subr.bf16.mxu1 %v2107_v61  ;;  %v2109_v54 = vpack.c.bf16 %v4223_v39, %v4221_v17 }
 0x8df   : > { %v4227_v5 = vpop.eup %4226  ;;  %4246 = vpow2.f32 %v1966_v26  ;;  %v1982_v25 = vmul.f32 1.442695, %v8288_v6  ;;  %2139 = vmatpush1.bf16.msra.mxu1 %v8290_v59  ;;  %v8291_v40 = vsub.f32 %v8250_v36, %v5930_v0  ;;  %v8292_v14 = vsub.f32 %v8251_v38, %v5930_v0  ;;  %v8297_v59 = vld [vmem:[#allocation21_spill] sm:$0xff] }
 0x8e0   : > { %v4229_v31 = vpop.eup %4228  ;;  %v2050_v22 = vadd.f32 %v6144_v8, %v2049_v55  ;;  %4248 = vpow2.f32 %v1970_v2  ;;  %v2071_v24 = vadd.f32 %v4223_v39, %v2070_v28  ;;  %2140 = vmatprep.subr.bf16.mxu1 %v2109_v54  ;;  %v2111_v17 = vpack.c.bf16 %v4227_v5, %v4225_v44 }
 0x8e1   : > { %v4231_v26 = vpop.eup %4230  ;;  %4250 = vpow2.f32 %v1974_v11  ;;  %v1990_v35 = vmul.f32 1.442695, %v8291_v40  ;;  %v1994_v61 = vmul.f32 1.442695, %v8292_v14  ;;  %v8293_v39 = vsub.f32 %v8252_v19, %v5930_v0 }
 0x8e2   : > { %v4233_v3 = vpop.eup %4232  ;;  %v2051_v57 = vadd.f32 %v6152_v18, %v2050_v22  ;;  %4252 = vpow2.f32 %v1978_v13  ;;  %v2072_v41 = vadd.f32 %v4225_v44, %v2071_v24  ;;  %v2113_v55 = vpack.c.bf16 %v4231_v26, %v4229_v31 }
 0x8e3   : > { %v4235_v2 = vpop.eup %4234  ;;  %4254 = vpow2.f32 %v1982_v25  ;;  %v1998_v11 = vmul.f32 1.442695, %v8293_v39  ;;  %v8294_v36 = vsub.f32 %v8253_v15, %v5930_v0  ;;  %v8295_v38 = vpack.c.bf16 %v6038_v37, %v6030_v23 }
 0x8e4   : > { %v4237_v54 = vpop.eup %4236  ;;  %v2052_v6 = vadd.f32 %v6161_v33, %v2051_v57  ;;  %4256 = vpow2.f32 %v1986_v21  ;;  %v2073_v44 = vadd.f32 %v4227_v5, %v2072_v41  ;;  %v2115_v13 = vpack.c.bf16 %v4235_v2, %v4233_v3 }
 0x8e5   : > { %v2002_v28 = vmul.f32 1.442695, %v8294_v36  ;;  %2141 = vmatpush1.bf16.msra.mxu1 %v8295_v38  ;;  %v4239_v25 = vpop.eup %4238  ;;  %4258 = vpow2.f32 %v1990_v35  ;;  %v8296_v19 = vsub.f32 %v8254_v46, %v5930_v0  ;;  %v8298_v15 = vsub.f32 %v8297_v59, %v5930_v0  ;;  %v8300_v35 = vld [vmem:[#allocation25_spill] sm:$0xff] }
 0x8e6   : > { %2142 = vmatprep.subr.bf16.mxu1 %v2111_v17  ;;  %v4241_v24 = vpop.eup %4240  ;;  %v2053_v23 = vadd.f32 %v6172_v16, %v2052_v6  ;;  %4260 = vpow2.f32 %v1994_v61  ;;  %v2074_v37 = vadd.f32 %v4229_v31, %v2073_v44  ;;  %v2117_v40 = vpack.c.bf16 %v4239_v25, %v4237_v54 }
 0x8e7   : > { %v2006_v32 = vmul.f32 1.442695, %v8296_v19  ;;  %v2010_v22 = vmul.f32 1.442695, %v8298_v15  ;;  %v4243_v21 = vpop.eup %4242  ;;  %4262 = vpow2.f32 %v1998_v11  ;;  %v8299_v5 = vsub.f32 %v8256_v52, %v5930_v0 }
 0x8e8   : > { %v8301_v46 = vsub.f32 %v8300_v35, %v5930_v0  ;;  %v8302_v57 = vpack.c.bf16 %v6053_v47, %v6046_v4  ;;  %v4245_v41 = vpop.eup %4244  ;;  %v2054_v39 = vadd.f32 %v6181_v60, %v2053_v23  ;;  %4264 = vpow2.f32 %v2002_v28 }
 0x8e9   : > { %v2014_v17 = vmul.f32 1.442695, %v8299_v5  ;;  %v2075_v31 = vadd.f32 %v4231_v26, %v2074_v37  ;;  %v2119_v61 = vpack.c.bf16 %v4243_v21, %v4241_v24  ;;  %v4247_v11 = vpop.eup %4246  ;;  %4266 = vpow2.f32 %v2006_v32  ;;  %v8305_v26 = vld [vmem:[#allocation27_spill] sm:$0xff] }
 0x8ea   : > { %v2018_v14 = vmul.f32 1.442695, %v8301_v46  ;;  %2143 = vmatpush1.bf16.msra.mxu1 %v8302_v57  ;;  %v8303_v52 = vsub.f32 %v8258_v7, %v5930_v0  ;;  %v8304_v38 = vsub.f32 %v8259_v42, %v5930_v0  ;;  %v4249_v44 = vpop.eup %4248  ;;  %v2055_v47 = vadd.f32 %v6189_v53, %v2054_v39 }
 0x8eb   : > { %2144 = vmatprep.subr.bf16.mxu1 %v2113_v55  ;;  %4268 = vpow2.f32 %v2010_v22  ;;  %v2076_v4 = vadd.f32 %v4233_v3, %v2075_v31  ;;  %v2121_v19 = vpack.c.bf16 %v4247_v11, %v4245_v41  ;;  %v4251_v28 = vpop.eup %4250  ;;  %v8306_v55 = vsub.f32 %v8305_v26, %v5930_v0 }
 0x8ec   : > { %v2022_v36 = vmul.f32 1.442695, %v8303_v52  ;;  %v2026_v6 = vmul.f32 1.442695, %v8304_v38  ;;  %4270 = vpow2.f32 %v2014_v17  ;;  %v8307_v7 = vpack.c.bf16 %v6068_v20, %v6061_v10  ;;  %v4253_v59 = vpop.eup %4252 }
 0x8ed   : > { %v2030_v32 = vmul.f32 1.442695, %v8306_v55  ;;  %v2056_v42 = vadd.f32 %v6196_v45, %v2055_v47  ;;  %4272 = vpow2.f32 %v2018_v14  ;;  %v2077_v15 = vadd.f32 %v4235_v2, %v2076_v4  ;;  %v4255_v22 = vpop.eup %4254 }
 0x8ee   : > { %2145 = vmatpush1.bf16.msra.mxu1 %v8307_v7  ;;  %v2123_v23 = vpack.c.bf16 %v4251_v28, %v4249_v44  ;;  %4274 = vpow2.f32 %v2022_v36  ;;  %v4257_v3 = vpop.eup %4256  ;;  %v2125_v0 = vpack.c.bf16 %v4255_v22, %v4253_v59  ;;  %v8308_v20 = vpack.c.bf16 %v6083_v50, %v6076_v12 }
 0x8ef   : > { %2146 = vmatprep.subr.bf16.mxu1 %v2115_v13  ;;  %v2057_v37 = vadd.f32 %v6204_v27, %v2056_v42  ;;  %4276 = vpow2.f32 %v2026_v6  ;;  %v2078_v5 = vadd.f32 %v4237_v54, %v2077_v15  ;;  %v4259_v17 = vpop.eup %4258  ;;  %v8309_v52 = vpack.c.bf16 %v6097_v49, %v6091_v56 }
 0x8f0   : > { %4278 = vpow2.f32 %v2030_v32  ;;  %v4261_v10 = vpop.eup %4260  ;;  %v2127_v13 = vpack.c.bf16 %v4259_v17, %v4257_v3  ;;  %v8311_v42 = vpack.c.bf16 %v6122_v9, %v6116_v63  ;;  %v8315_v63 = vpack.c.bf16 %v6161_v33, %v6152_v18 }
 0x8f1   : > { %v2058_v35 = vadd.f32 %v6211_v43, %v2057_v37  ;;  %v2079_v2 = vadd.f32 %v4239_v25, %v2078_v5  ;;  %v4263_v46 = vpop.eup %4262  ;;  %v8318_v18 = vpack.c.bf16 %v6211_v43, %v6204_v27 }
 0x8f2   : > { %2147 = vmatpush1.bf16.msra.mxu1 %v8308_v20  ;;  %v4265_v14 = vpop.eup %4264  ;;  %v2129_v31 = vpack.c.bf16 %v4263_v46, %v4261_v10 }
 0x8f3   : > { %2148 = vmatprep.subr.bf16.mxu1 %v2117_v40  ;;  %v2059_v57 = vadd.f32 %v6219_v62, %v2058_v35  ;;  %v2080_v39 = vadd.f32 %v4241_v24, %v2079_v2  ;;  %v4267_v54 = vpop.eup %4266  ;;  %v8310_v24 = vpack.c.bf16 %v6110_v34, %v6103_v51  ;;  %v8312_v51 = vld [vmem:[#allocation6_spill] sm:$0xff] }
 0x8f4   : > { %v2131_v38 = vpack.c.bf16 %v4267_v54, %v4265_v14  ;;  %v8313_v34 = vpack.c.bf16 %v6133_v30, %v8312_v51  ;;  %v8316_v30 = vpack.c.bf16 %v6181_v60, %v6172_v16  ;;  %v8321_v60 = vld [vmem:[#allocation11_spill] sm:$0xff] }
 0x8f5   : > { %v4269_v36 = vpop.eup %4268  ;;  %v2060_v50 = vadd.f32 %v6227_v1, %v2059_v57  ;;  %v2081_v12 = vadd.f32 %v4243_v21, %v2080_v39  ;;  %v8328_v57 = vld [vmem:[#allocation57_spill] sm:$0xff]  ;;  %v8331_v39 = vld [vmem:[#allocation63_spill] sm:$0xff] }
 0x8f6   : > { %2149 = vmatpush1.bf16.msra.mxu1 %v8309_v52  ;;  %v4271_v25 = vpop.eup %4270  ;;  %v8334_v52 = vld [vmem:[#allocation37_spill] sm:$0xff] }
 0x8f7   : > { %2150 = vmatprep.subr.bf16.mxu1 %v2119_v61  ;;  %v4273_v40 = vpop.eup %4272  ;;  %v2061_v6 = vadd.f32 %v6232_v29, %v2060_v50  ;;  %v2082_v47 = vadd.f32 %v4245_v41, %v2081_v12  ;;  %v2133_v4 = vpack.c.bf16 %v4271_v25, %v4269_v36  ;;  %v8336_v50 = vld [vmem:[#allocation58_spill] sm:$0xff]  ;;  %v8337_v12 = vld [vmem:[#allocation60_spill] sm:$0xff] }
 0x8f8   : > { %v4275_v26 = vpop.eup %4274 }
 0x8f9   : > { %v4277_v55 = vpop.eup %4276  ;;  %v6338_v49 = vadd.f32 %v6240_v48, %v2061_v6  ;;  %v2083_v56 = vadd.f32 %v4247_v11, %v2082_v47  ;;  %v2135_v21 = vpack.c.bf16 %v4275_v26, %v4273_v40  ;;  %v8314_v11 = vpack.c.bf16 %v6144_v8, %v6138_v58  ;;  %v8341_v6 = vld [vmem:[#allocation36_spill] sm:$0xff]  ;;  %v8342_v47 = vld [vmem:[#allocation49_spill] sm:$0xff] }
 0x8fa   : > { %2151 = vmatpush1.bf16.msra.mxu1 %v8310_v24  ;;  %v4279_v61 = vpop.eup %4278  ;;  %v8317_v58 = vpack.c.bf16 %v6196_v45, %v6189_v53  ;;  %v8322_v53 = vpack.c.bf16 %v6227_v1, %v6219_v62  ;;  %v8323_v45 = vld [vmem:[#allocation29_spill] sm:$0xff]  ;;  %v8326_v1 = vmov 0   ;;  %v8327_v62 = vld [vmem:[#allocation54_spill] sm:$0xff] }
 0x8fb   : > { %2152 = vmatprep.subr.bf16.mxu1 %v2121_v19  ;;  %v2084_v32 = vadd.f32 %v4249_v44, %v2083_v56  ;;  %v2137_v7 = vpack.c.bf16 %v4279_v61, %v4277_v55  ;;  %v2063_v56 = vrot.slane %v6338_v49, 4 }
 0x8fd   : > { %v2085_v41 = vadd.f32 %v4251_v28, %v2084_v32 }
 0x8fe   : > { %2153 = vmatpush1.bf16.msra.mxu1 %v8311_v42 }
 0x8ff   : > { %2154 = vmatprep.subr.bf16.mxu1 %v2123_v23  ;;  %v2086_v15 = vadd.f32 %v4253_v59, %v2085_v41 }
 0x901   : > { %v2087_v37 = vadd.f32 %v4255_v22, %v2086_v15 }
 0x902   : > { %2155 = vmatpush1.bf16.msra.mxu1 %v8313_v34 }
 0x903   : > { %2156 = vmatprep.subr.bf16.mxu1 %v2125_v0  ;;  %v2088_v5 = vadd.f32 %v4257_v3, %v2087_v37  ;;  %v8319_v3 = vld [vmem:[#allocation55_spill] sm:$0xff]  ;;  %v8320_v0 = vld [vmem:[#allocation10_spill] sm:$0xff] }
 0x904   : > { %v747_v16 = vadd.f32 %v8320_v0, %v8319_v3 }
 0x905   : > { %v2089_v44 = vadd.f32 %v4259_v17, %v2088_v5  ;;  %v749_v17 = vadd.f32 %v8321_v60, %v8319_v3 }
 0x906   : > { %2157 = vmatpush1.bf16.msra.mxu1 %v8314_v11  ;;  %v2185_v43 = vpack.c.bf16 %v747_v16, %v747_v16 }
 0x907   : > { %2158 = vmatprep.subr.bf16.mxu1 %v2127_v13  ;;  %v2090_v19 = vadd.f32 %v4261_v10, %v2089_v44  ;;  %v8324_v10 = vld [vmem:[#allocation9_spill] sm:$0xff]  ;;  %v2186_v27 = vpack.c.bf16 %v749_v17, %v749_v17  ;;  %v8325_v13 = vpack.c.bf16 %v6240_v48, %v6232_v29  ;;  %v8329_v29 = vld [vmem:[#allocation59_spill] sm:$0xff] }
 0x908   : > { %v741_v35 = vadd.f32 %v8324_v10, %v8323_v45  ;;  %v8330_v48 = vld [vmem:[#allocation61_spill] sm:$0xff] }
 0x909   : > { %v2091_v9 = vadd.f32 %v4263_v46, %v2090_v19 }
 0x90a   : > { %2159 = vmatpush1.bf16.msra.mxu1 %v8315_v63  ;;  %v1485_v46 = vpack.c.bf16 %v741_v35, %v741_v35 }
 0x90b   : > { %2160 = vmatprep.subr.bf16.mxu1 %v2129_v31  ;;  %v2092_v28 = vadd.f32 %v4265_v14, %v2091_v9  ;;  %v2272_v14 = vsel %vm862_vm1, %v2185_v43, 0  ;;  %v8332_v31 = vld [vmem:[#allocation31_spill] sm:$0xff] }
 0x90d   : > { %v2093_v59 = vadd.f32 %v4267_v54, %v2092_v28  ;;  %v8333_v54 = vld [vmem:[#allocation33_spill] sm:$0xff] }
 0x90e   : > { %2161 = vmatpush1.bf16.msra.mxu1 %v8316_v30 }
 0x90f   : > { %2162 = vmatprep.subr.bf16.mxu1 %v2131_v38  ;;  %v2094_v23 = vadd.f32 %v4269_v36, %v2093_v59  ;;  %v8335_v36 = vld [vmem:[#allocation56_spill] sm:$0xff]  ;;  %v8338_v38 = vld [vmem:[#allocation62_spill] sm:$0xff] }
 0x911   : > { %v2095_v8 = vadd.f32 %v4271_v25, %v2094_v23  ;;  %v8339_v25 = vld [vmem:[#allocation30_spill] sm:$0xff] }
 0x912   : > { %2163 = vmatpush1.bf16.msra.mxu1 %v8317_v58 }
 0x913   : > { %2164 = vmatprep.subr.bf16.mxu1 %v2133_v4  ;;  %v2096_v22 = vadd.f32 %v4273_v40, %v2095_v8  ;;  %v8340_v40 = vld [vmem:[#allocation32_spill] sm:$0xff]  ;;  %v8343_v4 = vld [vmem:[#allocation41_spill] sm:$0xff] }
 0x915   : > { %v2097_v33 = vadd.f32 %v4275_v26, %v2096_v22  ;;  %v773_v26 = vadd.f32 %v8343_v4, %v8342_v47 }
 0x916   : > { %2165 = vmatpush1.bf16.msra.mxu1 %v8318_v18 }
 0x917   : > { %2166 = vmatprep.subr.bf16.mxu1 %v2135_v21  ;;  %v2098_v20 = vadd.f32 %v4277_v55, %v2097_v33  ;;  %v2894_v24 = vpack.c.bf16 %v773_v26, %v773_v26  ;;  %v8344_v55 = vld [vmem:[#allocation38_spill] sm:$0xff] }
 0x919   : > { %v2099_v2 = vadd.f32 %v4279_v61, %v2098_v20  ;;  %v2064_v61 = vadd.f32 %v2063_v56, %v6338_v49 }
 0x91a   : > { %2167 = vmatpush1.bf16.msra.mxu1 %v8322_v53 }
 0x91b   : > { %2168 = vmatprep.subr.bf16.mxu1 %v2137_v7  ;;  %v2100_v21 = vrot.slane %v2099_v2, 4  ;;  %v2065_v7 = vrot.slane %v2064_v61, 2 }
 0x91d   : > { %v2101_v32 = vadd.f32 %v2100_v21, %v2099_v2  ;;  %v2066_v41 = vadd.f32 %v2065_v7, %v2064_v61 }
 0x91e   : > { %2169 = vmatpush1.bf16.msra.mxu1 %v8325_v13 }
 0x91f   : > { %3855 = vmatprep.subr.msk.bf16.mxu1 %vm862_vm1, %v2186_v27  ;;  %v2102_v42 = vrot.slane %v2101_v32, 2  ;;  %v2067_v51 = vrot.slane %v2066_v41, 1 }
 0x921   : > { %2171 = vmatmul.mubr.bf16.vlgmr.msra.gmra.mrb[72].mxu1 %v1485_v46  ;;  %v2103_v15 = vadd.f32 %v2102_v42, %v2101_v32  ;;  %v2068_v37 = vadd.f32 %v2067_v51, %v2066_v41 }
 0x922   : > { %2278 = vmatpush1.bf16.msra.mxu1 %v2272_v14  ;;  %2309 = vmatprep.mubr.bf16.mxu1 %v8326_v1 }
 0x923   : > { %v2104_v34 = vrot.slane %v2103_v15, 1  ;;  %4280 = vrcp.f32 %v2068_v37 }
 0x925   : > { %v2105_v5 = vadd.f32 %v2104_v34, %v2103_v15 }
 0x927   : > { %4282 = vrcp.f32 %v2105_v5 }
 0x929   : > { %3856 = vmatmul.mubr.msk.bf16.vlgmr.msra.gmra.mrb[76].mxu1 %vm813_vm2, %v8327_v62 }
 0x92a   : > { %2319 = vmatprep.mubr.bf16.mxu1 %v8326_v1 }
 0x92d   : > { %v4281_v11 = vpop.eup %4280 }
 0x931   : > { %3857 = vmatmul.mubr.msk.bf16.gmra.mrb[80].mxu1 %vm813_vm2, %v8328_v57  ;;  %v4283_v19 = vpop.eup %4282 }
 0x932   : > { %2329 = vmatprep.mubr.bf16.mxu1 %v8326_v1 }
 0x939   : > { %3858 = vmatmul.mubr.msk.bf16.gmra.mrb[84].mxu1 %vm813_vm2, %v8329_v29 }
 0x93a   : > { %2339 = vmatprep.mubr.bf16.mxu1 %v8326_v1 }
 0x941   : > { %3859 = vmatmul.mubr.msk.bf16.gmra.mrb[88].mxu1 %vm813_vm2, %v8330_v48 }
 0x942   : > { %2349 = vmatprep.mubr.bf16.mxu1 %v8326_v1 }
 0x949   : > { %3860 = vmatmul.mubr.msk.bf16.gmra.mrb[92].mxu1 %vm813_vm2, %v8331_v39 }
 0x94a   : > { %2359 = vmatprep.mubr.bf16.mxu1 %v8326_v1 }
 0x951   : > { %3861 = vmatmul.mubr.msk.bf16.gmra.mrb[96].mxu1 %vm813_vm2, %v8332_v31 }
 0x952   : > { %2369 = vmatprep.mubr.bf16.mxu1 %v8326_v1 }
 0x959   : > { %3862 = vmatmul.mubr.msk.bf16.gmra.mrb[100].mxu1 %vm813_vm2, %v8333_v54 }
 0x95a   : > { %2379 = vmatprep.mubr.bf16.mxu1 %v8326_v1 }
 0x961   : > { %3863 = vmatmul.mubr.msk.bf16.gmra.mrb[104].mxu1 %vm813_vm2, %v8334_v52 }
 0x962   : > { %2389 = vmatprep.mubr.bf16.mxu1 %v8326_v1 }
 0x969   : > { %3864 = vmatmul.mubr.msk.bf16.gmra.mrb[108].mxu1 %vm813_vm2, %v8335_v36 }
 0x96a   : > { %2399 = vmatprep.mubr.bf16.mxu1 %v8326_v1 }
 0x971   : > { %3865 = vmatmul.mubr.msk.bf16.gmra.mrb[112].mxu1 %vm813_vm2, %v8336_v50 }
 0x972   : > { %2409 = vmatprep.mubr.bf16.mxu1 %v8326_v1 }
 0x979   : > { %3866 = vmatmul.mubr.msk.bf16.gmra.mrb[116].mxu1 %vm813_vm2, %v8337_v12 }
 0x97a   : > { %2419 = vmatprep.mubr.bf16.mxu1 %v8326_v1 }
 0x981   : > { %3867 = vmatmul.mubr.msk.bf16.gmra.mrb[120].mxu1 %vm813_vm2, %v8338_v38 }
 0x982   : > { %2429 = vmatprep.mubr.bf16.mxu1 %v8326_v1 }
 0x989   : > { %3868 = vmatmul.mubr.msk.bf16.gmra.mrb[124].mxu1 %vm813_vm2, %v8339_v25 }
 0x98a   : > { %2439 = vmatprep.mubr.bf16.mxu1 %v8326_v1 }
 0x991   : > { %3869 = vmatmul.mubr.msk.bf16.gmra.mrb[128].mxu1 %vm813_vm2, %v8340_v40 }
 0x992   : > { %2449 = vmatprep.mubr.bf16.mxu1 %v8326_v1 }
 0x999   : > { %3870 = vmatmul.mubr.msk.bf16.gmra.mrb[132].mxu1 %vm813_vm2, %v8341_v6 }
 0x99a   : > { %2459 = vmatprep.mubr.bf16.mxu1 %v8326_v1 }
 0x9a1   : > { %3871 = vmatmul.mubr.msk.bf16.gmra.mrb[136].mxu1 %vm813_vm2, %v8344_v55 }
 0x9a2   : > { %3578 = vmatprep.mubr.bf16.mxu1 %v2894_v24 }
 0x9f4   : > { %v2172_v44 = vpop.f32.mrb[72].mxu1 }
 0x9f5   : > { %v6427_v63 = vmul.f32 %v4281_v11, %v2172_v44  ;;  %v2174_v9 = vpop.f32.mrb[73].mxu1 }
 0x9f6   : > { %v6429_v28 = vmul.f32 %v4283_v19, %v2174_v9  ;;  %v2176_v49 = vpop.f32.mrb[74].mxu1 }
 0x9f7   : > { %8345 = vst [vmem:[#allocation7_spill] sm:$0xff] %v6427_v63  ;;  %v2177_v23 = vpop.f32.mrb[75].mxu1 }
 0x9f8   : > { %8346 = vst [vmem:[#allocation8_spill] sm:$0xff] %v6429_v28 }
 0x9fc   : > { %v6435_v22 = vpop.f32.mrb[76].mxu1 }
 0x9fd   : > { %v6437_v18 = vpop.f32.mrb[77].mxu1 }
 0x9fe   : > { %v6439_v33 = vpop.f32.mrb[78].mxu1 }
 0x9ff   : > { %v6441_v3 = vpop.f32.mrb[79].mxu1 }
 0xa04   : > { %v6443_v0 = vpop.f32.mrb[80].mxu1 }
 0xa05   : > { %v2470_v16 = vmax.f32 %v6435_v22, %v6443_v0  ;;  %v6447_v60 = vpop.f32.mrb[81].mxu1 }
 0xa06   : > { %v2507_v17 = vmax.f32 %v6437_v18, %v6447_v60  ;;  %v6451_v20 = vpop.f32.mrb[82].mxu1 }
 0xa07   : > { %v2471_v53 = vmax.f32 %v6439_v33, %v6451_v20  ;;  %v6455_v45 = vpop.f32.mrb[83].mxu1 }
 0xa08   : > { %v2508_v10 = vmax.f32 %v6441_v3, %v6455_v45 }
 0xa0c   : > { %v6459_v35 = vpop.f32.mrb[84].mxu1 }
 0xa0d   : > { %v2472_v2 = vmax.f32 %v2470_v16, %v6459_v35  ;;  %v6462_v43 = vpop.f32.mrb[85].mxu1 }
 0xa0e   : > { %v2509_v27 = vmax.f32 %v2507_v17, %v6462_v43  ;;  %v6465_v13 = vpop.f32.mrb[86].mxu1 }
 0xa0f   : > { %v2473_v46 = vmax.f32 %v2471_v53, %v6465_v13  ;;  %v6468_v14 = vpop.f32.mrb[87].mxu1 }
 0xa10   : > { %v2510_v62 = vmax.f32 %v2508_v10, %v6468_v14 }
 0xa14   : > { %v6471_v57 = vpop.f32.mrb[88].mxu1 }
 0xa15   : > { %v2474_v29 = vmax.f32 %v2472_v2, %v6471_v57  ;;  %v6474_v48 = vpop.f32.mrb[89].mxu1 }
 0xa16   : > { %v2511_v39 = vmax.f32 %v2509_v27, %v6474_v48  ;;  %v6477_v31 = vpop.f32.mrb[90].mxu1 }
 0xa17   : > { %v2475_v54 = vmax.f32 %v2473_v46, %v6477_v31  ;;  %v6480_v52 = vpop.f32.mrb[91].mxu1 }
 0xa18   : > { %v2512_v36 = vmax.f32 %v2510_v62, %v6480_v52 }
 0xa1c   : > { %v6483_v50 = vpop.f32.mrb[92].mxu1 }
 0xa1d   : > { %v2476_v12 = vmax.f32 %v2474_v29, %v6483_v50  ;;  %v6486_v38 = vpop.f32.mrb[93].mxu1 }
 0xa1e   : > { %v2513_v25 = vmax.f32 %v2511_v39, %v6486_v38  ;;  %v6489_v40 = vpop.f32.mrb[94].mxu1 }
 0xa1f   : > { %v2477_v6 = vmax.f32 %v2475_v54, %v6489_v40  ;;  %v6492_v47 = vpop.f32.mrb[95].mxu1 }
 0xa20   : > { %v2514_v4 = vmax.f32 %v2512_v36, %v6492_v47 }
 0xa24   : > { %v6495_v26 = vpop.f32.mrb[96].mxu1 }
 0xa25   : > { %v2478_v24 = vmax.f32 %v2476_v12, %v6495_v26  ;;  %v6498_v55 = vpop.f32.mrb[97].mxu1 }
 0xa26   : > { %v2515_v56 = vmax.f32 %v2513_v25, %v6498_v55  ;;  %v6501_v21 = vpop.f32.mrb[98].mxu1 }
 0xa27   : > { %v2479_v61 = vmax.f32 %v2477_v6, %v6501_v21  ;;  %v6504_v32 = vpop.f32.mrb[99].mxu1 }
 0xa28   : > { %8349 = vst [vmem:[#allocation14_spill] sm:$0xff] %v6504_v32  ;;  %v2516_v7 = vmax.f32 %v2514_v4, %v6504_v32 }
 0xa2c   : > { %v6507_v42 = vpop.f32.mrb[100].mxu1 }
 0xa2d   : > { %v2480_v41 = vmax.f32 %v2478_v24, %v6507_v42  ;;  %v6510_v15 = vpop.f32.mrb[101].mxu1 }
 0xa2e   : > { %8350 = vst [vmem:[#allocation16_spill] sm:$0xff] %v6510_v15  ;;  %v2517_v51 = vmax.f32 %v2515_v56, %v6510_v15  ;;  %v6513_v34 = vpop.f32.mrb[102].mxu1 }
 0xa2f   : > { %v2481_v37 = vmax.f32 %v2479_v61, %v6513_v34  ;;  %v6516_v5 = vpop.f32.mrb[103].mxu1 }
 0xa30   : > { %8351 = vst [vmem:[#allocation18_spill] sm:$0xff] %v6516_v5  ;;  %v2518_v11 = vmax.f32 %v2516_v7, %v6516_v5 }
 0xa34   : > { %v6519_v44 = vpop.f32.mrb[104].mxu1 }
 0xa35   : > { %v2482_v19 = vmax.f32 %v2480_v41, %v6519_v44  ;;  %v6522_v9 = vpop.f32.mrb[105].mxu1 }
 0xa36   : > { %8352 = vst [vmem:[#allocation20_spill] sm:$0xff] %v6522_v9  ;;  %v2519_v49 = vmax.f32 %v2517_v51, %v6522_v9  ;;  %v6525_v23 = vpop.f32.mrb[106].mxu1 }
 0xa37   : > { %v2483_v16 = vmax.f32 %v2481_v37, %v6525_v23  ;;  %v6528_v17 = vpop.f32.mrb[107].mxu1 }
 0xa38   : > { %8353 = vst [vmem:[#allocation22_spill] sm:$0xff] %v6528_v17  ;;  %v2520_v53 = vmax.f32 %v2518_v11, %v6528_v17 }
 0xa3c   : > { %v6531_v10 = vpop.f32.mrb[108].mxu1 }
 0xa3d   : > { %v2484_v2 = vmax.f32 %v2482_v19, %v6531_v10  ;;  %v6534_v27 = vpop.f32.mrb[109].mxu1 }
 0xa3e   : > { %8354 = vst [vmem:[#allocation24_spill] sm:$0xff] %v6534_v27  ;;  %v2521_v46 = vmax.f32 %v2519_v49, %v6534_v27  ;;  %v6537_v62 = vpop.f32.mrb[110].mxu1 }
 0xa3f   : > { %v2485_v29 = vmax.f32 %v2483_v16, %v6537_v62  ;;  %v6540_v39 = vpop.f32.mrb[111].mxu1 }
 0xa40   : > { %8355 = vst [vmem:[#allocation26_spill] sm:$0xff] %v6540_v39  ;;  %v2522_v54 = vmax.f32 %v2520_v53, %v6540_v39 }
 0xa44   : > { %v6543_v36 = vpop.f32.mrb[112].mxu1 }
 0xa45   : > { %v2486_v12 = vmax.f32 %v2484_v2, %v6543_v36  ;;  %v6546_v25 = vpop.f32.mrb[113].mxu1 }
 0xa46   : > { %8356 = vst [vmem:[#allocation28_spill] sm:$0xff] %v6546_v25  ;;  %v2523_v6 = vmax.f32 %v2521_v46, %v6546_v25  ;;  %v6549_v4 = vpop.f32.mrb[114].mxu1 }
 0xa47   : > { %v2487_v24 = vmax.f32 %v2485_v29, %v6549_v4  ;;  %v6552_v56 = vpop.f32.mrb[115].mxu1 }
 0xa48   : > { %8357 = vst [vmem:[#allocation13_spill] sm:$0xff] %v6552_v56  ;;  %v2524_v61 = vmax.f32 %v2522_v54, %v6552_v56 }
 0xa4c   : > { %v6555_v7 = vpop.f32.mrb[116].mxu1 }
 0xa4d   : > { %v2488_v41 = vmax.f32 %v2486_v12, %v6555_v7  ;;  %v6558_v51 = vpop.f32.mrb[117].mxu1 }
 0xa4e   : > { %8358 = vst [vmem:[#allocation15_spill] sm:$0xff] %v6558_v51  ;;  %v2525_v37 = vmax.f32 %v2523_v6, %v6558_v51  ;;  %v6561_v11 = vpop.f32.mrb[118].mxu1 }
 0xa4f   : > { %v2489_v19 = vmax.f32 %v2487_v24, %v6561_v11  ;;  %v6564_v49 = vpop.f32.mrb[119].mxu1 }
 0xa50   : > { %8359 = vst [vmem:[#allocation17_spill] sm:$0xff] %v6564_v49  ;;  %v2526_v16 = vmax.f32 %v2524_v61, %v6564_v49 }
 0xa54   : > { %v6567_v53 = vpop.f32.mrb[120].mxu1 }
 0xa55   : > { %v2490_v2 = vmax.f32 %v2488_v41, %v6567_v53  ;;  %v6570_v46 = vpop.f32.mrb[121].mxu1 }
 0xa56   : > { %8360 = vst [vmem:[#allocation19_spill] sm:$0xff] %v6570_v46  ;;  %v2527_v29 = vmax.f32 %v2525_v37, %v6570_v46  ;;  %v6573_v54 = vpop.f32.mrb[122].mxu1 }
 0xa57   : > { %v2491_v12 = vmax.f32 %v2489_v19, %v6573_v54  ;;  %v6576_v6 = vpop.f32.mrb[123].mxu1 }
 0xa58   : > { %8361 = vst [vmem:[#allocation23_spill] sm:$0xff] %v6576_v6  ;;  %v2528_v24 = vmax.f32 %v2526_v16, %v6576_v6 }
 0xa5c   : > { %v6579_v59 = vpop.f32.mrb[124].mxu1 }
 0xa5d   : > { %v2492_v61 = vmax.f32 %v2490_v2, %v6579_v59  ;;  %v6582_v8 = vpop.f32.mrb[125].mxu1 }
 0xa5e   : > { %8362 = vst [vmem:[#allocation39_spill] sm:$0xff] %v6582_v8  ;;  %v2529_v41 = vmax.f32 %v2527_v29, %v6582_v8  ;;  %v6585_v30 = vpop.f32.mrb[126].mxu1 }
 0xa5f   : > { %v2493_v37 = vmax.f32 %v2491_v12, %v6585_v30  ;;  %v6588_v63 = vpop.f32.mrb[127].mxu1 }
 0xa60   : > { %8363 = vst [vmem:[#allocation51_spill] sm:$0xff] %v6588_v63  ;;  %v2530_v19 = vmax.f32 %v2528_v24, %v6588_v63 }
 0xa64   : > { %v6591_v58 = vpop.f32.mrb[128].mxu1 }
 0xa65   : > { %v2494_v16 = vmax.f32 %v2492_v61, %v6591_v58  ;;  %v6594_v28 = vpop.f32.mrb[129].mxu1 }
 0xa66   : > { %8364 = vst [vmem:[#allocation21_spill] sm:$0xff] %v6594_v28  ;;  %v2531_v2 = vmax.f32 %v2529_v41, %v6594_v28  ;;  %v6597_v1 = vpop.f32.mrb[130].mxu1 }
 0xa67   : > { %v2495_v29 = vmax.f32 %v2493_v37, %v6597_v1  ;;  %v6600_v8 = vpop.f32.mrb[131].mxu1 }
 0xa68   : > { %8365 = vst [vmem:[#allocation25_spill] sm:$0xff] %v6600_v8  ;;  %v2532_v12 = vmax.f32 %v2530_v19, %v6600_v8 }
 0xa6c   : > { %v6603_v6 = vpop.f32.mrb[132].mxu1 }
 0xa6d   : > { %v2496_v24 = vmax.f32 %v2494_v16, %v6603_v6  ;;  %v6606_v63 = vpop.f32.mrb[133].mxu1 }
 0xa6e   : > { %8366 = vst [vmem:[#allocation27_spill] sm:$0xff] %v6606_v63  ;;  %v2533_v61 = vmax.f32 %v2531_v2, %v6606_v63  ;;  %v6609_v46 = vpop.f32.mrb[134].mxu1 }
 0xa6f   : > { %v2497_v41 = vmax.f32 %v2495_v29, %v6609_v46  ;;  %v6612_v28 = vpop.f32.mrb[135].mxu1 }
 0xa70   : > { %8367 = vst [vmem:[#allocation6_spill] sm:$0xff] %v6612_v28  ;;  %v2534_v37 = vmax.f32 %v2532_v12, %v6612_v28 }
 0xa74   : > { %v6615_v49 = vpop.f32.mrb[136].mxu1 }
 0xa75   : > { %v2498_v19 = vmax.f32 %v2496_v24, %v6615_v49  ;;  %v6618_v8 = vpop.f32.mrb[137].mxu1 }
 0xa76   : > { %8368 = vst [vmem:[#allocation55_spill] sm:$0xff] %v6618_v8  ;;  %v2535_v16 = vmax.f32 %v2533_v61, %v6618_v8  ;;  %v6621_v51 = vpop.f32.mrb[138].mxu1 }
 0xa77   : > { %v2499_v2 = vmax.f32 %v2497_v41, %v6621_v51  ;;  %v6624_v63 = vpop.f32.mrb[139].mxu1 }
 0xa78   : > { %8369 = vst [vmem:[#allocation10_spill] sm:$0xff] %v6624_v63  ;;  %v2536_v29 = vmax.f32 %v2534_v37, %v6624_v63 }
 0xa79   : > { %v2500_v56 = vmax.f32 %v2498_v19, %v2499_v2 }
 0xa7a   : > { %v2537_v25 = vmax.f32 %v2535_v16, %v2536_v29 }
 0xa7b   : > { %v2501_v39 = vrot.slane %v2500_v56, 4 }
 0xa7c   : > { %v2538_v12 = vrot.slane %v2537_v25, 4 }
 0xa7d   : > { %v2502_v28 = vmax.f32 %v2500_v56, %v2501_v39 }
 0xa7e   : > { %v2539_v27 = vmax.f32 %v2537_v25, %v2538_v12 }
 0xa7f   : > { %v2503_v17 = vrot.slane %v2502_v28, 2 }
 0xa80   : > { %v2540_v24 = vrot.slane %v2539_v27, 2 }
 0xa81   : > { %v2504_v9 = vmax.f32 %v2502_v28, %v2503_v17  ;;  %v8389_v17 = vld [vmem:[#allocation55_spill] sm:$0xff] }
 0xa82   : > { %v2541_v5 = vmax.f32 %v2539_v27, %v2540_v24 }
 0xa83   : > { %v2505_v15 = vrot.slane %v2504_v9, 1 }
 0xa84   : > { %v2542_v61 = vrot.slane %v2541_v5, 1 }
 0xa85   : > { %v6627_v8 = vmax.f32 %v2504_v9, %v2505_v15 }
 0xa86   : > { %v6629_v32 = vmax.f32 %v2541_v5, %v2542_v61 }
 0xa87   : > { %v2544_v41 = vsub.f32 %v6435_v22, %v6627_v8  ;;  %v2546_v37 = vsub.f32 %v6439_v33, %v6627_v8  ;;  %v2548_v39 = vsub.f32 %v6443_v0, %v6627_v8  ;;  %v2550_v25 = vsub.f32 %v6451_v20, %v6627_v8 }
 0xa88   : > { %v2552_v28 = vsub.f32 %v6459_v35, %v6627_v8  ;;  %v2554_v15 = vsub.f32 %v6465_v13, %v6627_v8  ;;  %v2556_v5 = vsub.f32 %v6471_v57, %v6627_v8  ;;  %v2558_v22 = vsub.f32 %v6477_v31, %v6627_v8 }
 0xa89   : > { %v2560_v33 = vsub.f32 %v6483_v50, %v6627_v8  ;;  %v2562_v0 = vsub.f32 %v6489_v40, %v6627_v8  ;;  %v2564_v20 = vsub.f32 %v6495_v26, %v6627_v8  ;;  %v2566_v35 = vsub.f32 %v6501_v21, %v6627_v8 }
 0xa8a   : > { %v2568_v13 = vsub.f32 %v6507_v42, %v6627_v8  ;;  %v2570_v57 = vsub.f32 %v6513_v34, %v6627_v8  ;;  %v2572_v31 = vsub.f32 %v6519_v44, %v6627_v8  ;;  %v2574_v50 = vsub.f32 %v6525_v23, %v6627_v8 }
 0xa8b   : > { %v2576_v40 = vsub.f32 %v6531_v10, %v6627_v8  ;;  %v2578_v26 = vsub.f32 %v6537_v62, %v6627_v8  ;;  %v2580_v21 = vsub.f32 %v6543_v36, %v6627_v8  ;;  %v2582_v42 = vsub.f32 %v6549_v4, %v6627_v8 }
 0xa8c   : > { %v2584_v34 = vsub.f32 %v6555_v7, %v6627_v8  ;;  %v2586_v44 = vsub.f32 %v6561_v11, %v6627_v8  ;;  %v2588_v9 = vsub.f32 %v6567_v53, %v6627_v8  ;;  %v2590_v23 = vsub.f32 %v6573_v54, %v6627_v8 }
 0xa8d   : > { %v2608_v11 = vmul.f32 1.442695, %v2544_v41  ;;  %v2612_v53 = vmul.f32 1.442695, %v2546_v37  ;;  %v2616_v54 = vmul.f32 1.442695, %v2548_v39 }
 0xa8e   : > { %v2620_v16 = vmul.f32 1.442695, %v2550_v25  ;;  %v2624_v29 = vmul.f32 1.442695, %v2552_v28  ;;  %v2628_v12 = vmul.f32 1.442695, %v2554_v15 }
 0xa8f   : > { %4284 = vpow2.f32 %v2608_v11  ;;  %v2632_v24 = vmul.f32 1.442695, %v2556_v5  ;;  %v2636_v61 = vmul.f32 1.442695, %v2558_v22  ;;  %v2640_v56 = vmul.f32 1.442695, %v2560_v33 }
 0xa90   : > { %4286 = vpow2.f32 %v2612_v53  ;;  %v2644_v7 = vmul.f32 1.442695, %v2562_v0  ;;  %v2648_v41 = vmul.f32 1.442695, %v2564_v20  ;;  %v2652_v37 = vmul.f32 1.442695, %v2566_v35 }
 0xa91   : > { %4288 = vpow2.f32 %v2616_v54  ;;  %v2656_v39 = vmul.f32 1.442695, %v2568_v13  ;;  %v2660_v19 = vmul.f32 1.442695, %v2570_v57  ;;  %v2664_v25 = vmul.f32 1.442695, %v2572_v31 }
 0xa92   : > { %4290 = vpow2.f32 %v2620_v16  ;;  %v2668_v4 = vmul.f32 1.442695, %v2574_v50  ;;  %v2672_v2 = vmul.f32 1.442695, %v2576_v40  ;;  %v2676_v11 = vmul.f32 1.442695, %v2578_v26 }
 0xa93   : > { %4292 = vpow2.f32 %v2624_v29  ;;  %v2680_v28 = vmul.f32 1.442695, %v2580_v21  ;;  %v2684_v15 = vmul.f32 1.442695, %v2582_v42  ;;  %v2688_v53 = vmul.f32 1.442695, %v2584_v34 }
 0xa94   : > { %4294 = vpow2.f32 %v2628_v12  ;;  %v6699_v5 = vmul.f32 1.442695, %v2586_v44  ;;  %v6701_v22 = vmul.f32 1.442695, %v2588_v9  ;;  %v6703_v33 = vmul.f32 1.442695, %v2590_v23 }
 0xa95   : > { %4296 = vpow2.f32 %v2632_v24  ;;  %v8370_v34 = vld [vmem:[#allocation14_spill] sm:$0xff]  ;;  %v8373_v12 = vld [vmem:[#allocation20_spill] sm:$0xff]  ;;  %v8378_v24 = vld [vmem:[#allocation13_spill] sm:$0xff] }
 0xa96   : > { %4298 = vpow2.f32 %v2636_v61  ;;  %v8372_v54 = vld [vmem:[#allocation18_spill] sm:$0xff]  ;;  %v8377_v21 = vld [vmem:[#allocation28_spill] sm:$0xff]  ;;  %v8379_v50 = vld [vmem:[#allocation15_spill] sm:$0xff] }
 0xa97   : > { %4300 = vpow2.f32 %v2640_v56  ;;  %v8371_v56 = vld [vmem:[#allocation16_spill] sm:$0xff]  ;;  %v8374_v61 = vld [vmem:[#allocation22_spill] sm:$0xff]  ;;  %v8380_v31 = vld [vmem:[#allocation17_spill] sm:$0xff] }
 0xa98   : > { %4302 = vpow2.f32 %v2644_v7  ;;  %v8376_v42 = vld [vmem:[#allocation26_spill] sm:$0xff]  ;;  %v8381_v16 = vld [vmem:[#allocation19_spill] sm:$0xff] }
 0xa99   : > { %v6713_v57 = vpop.eup %4284  ;;  %4304 = vpow2.f32 %v2648_v41  ;;  %v8382_v35 = vld [vmem:[#allocation23_spill] sm:$0xff] }
 0xa9a   : > { %v6721_v26 = vpop.eup %4286  ;;  %4306 = vpow2.f32 %v2652_v37  ;;  %v8375_v37 = vld [vmem:[#allocation24_spill] sm:$0xff]  ;;  %v8383_v41 = vld [vmem:[#allocation39_spill] sm:$0xff] }
 0xa9b   : > { %v6729_v9 = vpop.eup %4288  ;;  %4308 = vpow2.f32 %v2656_v39  ;;  %v2736_v23 = vadd.f32 %v6721_v26, %v6713_v57  ;;  %v8384_v0 = vld [vmem:[#allocation51_spill] sm:$0xff]  ;;  %v8388_v39 = vld [vmem:[#allocation6_spill] sm:$0xff] }
 0xa9c   : > { %v6737_v29 = vpop.eup %4290  ;;  %4310 = vpow2.f32 %v2660_v19  ;;  %v8386_v19 = vld [vmem:[#allocation25_spill] sm:$0xff] }
 0xa9d   : > { %v6745_v44 = vpop.eup %4292  ;;  %4312 = vpow2.f32 %v2664_v25  ;;  %v2737_v7 = vadd.f32 %v6729_v9, %v2736_v23 }
 0xa9e   : > { %v6752_v40 = vpop.eup %4294  ;;  %4314 = vpow2.f32 %v2668_v4 }
 0xa9f   : > { %v6760_v13 = vpop.eup %4296  ;;  %4316 = vpow2.f32 %v2672_v2  ;;  %v2738_v23 = vadd.f32 %v6737_v29, %v2737_v7 }
 0xaa0   : > { %v6767_v20 = vpop.eup %4298  ;;  %4318 = vpow2.f32 %v2676_v11 }
 0xaa1   : > { %v6775_v62 = vpop.eup %4300  ;;  %4320 = vpow2.f32 %v2680_v28  ;;  %v2739_v7 = vadd.f32 %v6745_v44, %v2738_v23  ;;  %v8390_v23 = vsub.f32 %v6579_v59, %v6627_v8 }
 0xaa2   : > { %v6782_v10 = vpop.eup %4302  ;;  %4322 = vpow2.f32 %v2684_v15  ;;  %v8391_v15 = vsub.f32 %v6585_v30, %v6627_v8 }
 0xaa3   : > { %v6790_v36 = vpop.eup %4304  ;;  %4324 = vpow2.f32 %v2688_v53  ;;  %v2704_v4 = vmul.f32 1.442695, %v8390_v23  ;;  %v2740_v11 = vadd.f32 %v6752_v40, %v2739_v7  ;;  %v8392_v53 = vsub.f32 %v6591_v58, %v6627_v8 }
 0xaa4   : > { %v6796_v27 = vpop.eup %4306  ;;  %4326 = vpow2.f32 %v6699_v5  ;;  %v2708_v2 = vmul.f32 1.442695, %v8391_v15  ;;  %v8393_v5 = vsub.f32 %v6597_v1, %v6627_v8  ;;  %v8397_v1 = vsub.f32 %v6615_v49, %v6627_v8 }
 0xaa5   : > { %v6802_v25 = vpop.eup %4308  ;;  %4328 = vpow2.f32 %v6701_v22  ;;  %v2712_v28 = vmul.f32 1.442695, %v8392_v53  ;;  %v2741_v59 = vadd.f32 %v6760_v13, %v2740_v11  ;;  %v8394_v22 = vsub.f32 %v6603_v6, %v6627_v8 }
 0xaa6   : > { %v6809_v23 = vpop.eup %4310  ;;  %4330 = vpow2.f32 %v6703_v33  ;;  %v2716_v7 = vmul.f32 1.442695, %v8393_v5  ;;  %v8395_v11 = vsub.f32 %v6609_v46, %v6627_v8 }
 0xaa7   : > { %v6815_v30 = vpop.eup %4312  ;;  %4332 = vpow2.f32 %v2704_v4  ;;  %v2720_v15 = vmul.f32 1.442695, %v8394_v22  ;;  %v2742_v58 = vadd.f32 %v6767_v20, %v2741_v59  ;;  %v2728_v4 = vmul.f32 1.442695, %v8397_v1 }
 0xaa8   : > { %v6821_v53 = vpop.eup %4314  ;;  %4334 = vpow2.f32 %v2708_v2  ;;  %v2724_v33 = vmul.f32 1.442695, %v8395_v11  ;;  %v8398_v59 = vsub.f32 %v6621_v51, %v6627_v8  ;;  %v8401_v8 = vsub.f32 %v6447_v60, %v6629_v32 }
 0xaa9   : > { %v6826_v63 = vpop.eup %4316  ;;  %4336 = vpow2.f32 %v2712_v28  ;;  %v2743_v5 = vadd.f32 %v6775_v62, %v2742_v58  ;;  %v8399_v28 = vsub.f32 %v6437_v18, %v6629_v32  ;;  %v8400_v58 = vsub.f32 %v6441_v3, %v6629_v32 }
 0xaaa   : > { %8396 = vst [vmem:[#allocation11_spill] sm:$0xff] %v6826_v63  ;;  %v6832_v6 = vpop.eup %4318  ;;  %4338 = vpow2.f32 %v2716_v7  ;;  %v2732_v2 = vmul.f32 1.442695, %v8398_v59  ;;  %v2618_v51 = vmul.f32 1.442695, %v8401_v8  ;;  %v8402_v18 = vsub.f32 %v6455_v45, %v6629_v32 }
 0xaab   : > { %v6837_v22 = vpop.eup %4320  ;;  %4340 = vpow2.f32 %v2720_v15  ;;  %v2744_v46 = vadd.f32 %v6782_v10, %v2743_v5  ;;  %v2610_v11 = vmul.f32 1.442695, %v8399_v28  ;;  %v2614_v7 = vmul.f32 1.442695, %v8400_v58 }
 0xaac   : > { %v6843_v49 = vpop.eup %4322  ;;  %4342 = vpow2.f32 %v2724_v33  ;;  %v2622_v5 = vmul.f32 1.442695, %v8402_v18  ;;  %v8403_v33 = vsub.f32 %v6462_v43, %v6629_v32  ;;  %v8404_v3 = vsub.f32 %v6468_v14, %v6629_v32 }
 0xaad   : > { %v6851_v1 = vpop.eup %4324  ;;  %4344 = vpow2.f32 %v2728_v4  ;;  %v2745_v15 = vadd.f32 %v6790_v36, %v2744_v46  ;;  %v8405_v4 = vsub.f32 %v6474_v48, %v6629_v32  ;;  %v8406_v46 = vsub.f32 %v6480_v52, %v6629_v32 }
 0xaae   : > { %v2626_v59 = vmul.f32 1.442695, %v8403_v33  ;;  %v6860_v28 = vpop.eup %4326  ;;  %4346 = vpow2.f32 %v2732_v2  ;;  %v2630_v60 = vmul.f32 1.442695, %v8404_v3  ;;  %v8407_v2 = vsub.f32 %v6486_v38, %v6629_v32 }
 0xaaf   : > { %v2634_v58 = vmul.f32 1.442695, %v8405_v4  ;;  %v2638_v45 = vmul.f32 1.442695, %v8406_v46  ;;  %v6871_v8 = vpop.eup %4328  ;;  %v2746_v43 = vadd.f32 %v6796_v27, %v2745_v15  ;;  %4348 = vpow2.f32 %v2610_v11 }
 0xab0   : > { %v2642_v18 = vmul.f32 1.442695, %v8407_v2  ;;  %v8408_v14 = vsub.f32 %v6492_v47, %v6629_v32  ;;  %v6880_v3 = vpop.eup %4330  ;;  %4350 = vpow2.f32 %v2614_v7 }
 0xab1   : > { %v6888_v15 = vpop.eup %4332  ;;  %v2747_v38 = vadd.f32 %v6802_v25, %v2746_v43  ;;  %4352 = vpow2.f32 %v2618_v51 }
 0xab2   : > { %v2646_v33 = vmul.f32 1.442695, %v8408_v14  ;;  %v6895_v4 = vpop.eup %4334  ;;  %4354 = vpow2.f32 %v2622_v5  ;;  %v8409_v5 = vsub.f32 %v6498_v55, %v6629_v32  ;;  %v8410_v14 = vsub.f32 %v8370_v34, %v6629_v32 }
 0xab3   : > { %v6903_v43 = vpop.eup %4336  ;;  %v2748_v51 = vadd.f32 %v6809_v23, %v2747_v38  ;;  %4356 = vpow2.f32 %v2626_v59 }
 0xab4   : > { %v6910_v47 = vpop.eup %4338  ;;  %4358 = vpow2.f32 %v2630_v60  ;;  %v2650_v7 = vmul.f32 1.442695, %v8409_v5  ;;  %v2654_v2 = vmul.f32 1.442695, %v8410_v14 }
 0xab5   : > { %v6918_v38 = vpop.eup %4340  ;;  %v2749_v59 = vadd.f32 %v6815_v30, %v2748_v51  ;;  %4360 = vpow2.f32 %v2634_v58  ;;  %v8411_v58 = vsub.f32 %v8371_v56, %v6629_v32  ;;  %v8416_v56 = vsub.f32 %v8376_v42, %v6629_v32 }
 0xab6   : > { %v6926_v11 = vpop.eup %4342  ;;  %4362 = vpow2.f32 %v2638_v45  ;;  %v8412_v45 = vsub.f32 %v8372_v54, %v6629_v32  ;;  %v8415_v54 = vsub.f32 %v8375_v37, %v6629_v32  ;;  %v8419_v42 = vsub.f32 %v8379_v50, %v6629_v32 }
 0xab7   : > { %v6931_v46 = vpop.eup %4344  ;;  %v2750_v52 = vadd.f32 %v6821_v53, %v2749_v59  ;;  %4364 = vpow2.f32 %v2642_v18  ;;  %v2658_v55 = vmul.f32 1.442695, %v8411_v58  ;;  %v8413_v18 = vsub.f32 %v8373_v12, %v6629_v32 }
 0xab8   : > { %v6939_v5 = vpop.eup %4346  ;;  %4366 = vpow2.f32 %v2646_v33  ;;  %v2662_v34 = vmul.f32 1.442695, %v8412_v45  ;;  %v8414_v33 = vsub.f32 %v8374_v61, %v6629_v32  ;;  %v2674_v45 = vmul.f32 1.442695, %v8415_v54 }
 0xab9   : > { %v4349_v14 = vpop.eup %4348  ;;  %v2751_v60 = vadd.f32 %v6826_v63, %v2750_v52  ;;  %4368 = vpow2.f32 %v2650_v7  ;;  %v2666_v59 = vmul.f32 1.442695, %v8413_v18  ;;  %v8417_v61 = vsub.f32 %v8377_v21, %v6629_v32 }
 0xaba   : > { %v4351_v58 = vpop.eup %4350  ;;  %4370 = vpow2.f32 %v2654_v2  ;;  %v2670_v51 = vmul.f32 1.442695, %v8414_v33  ;;  %v2678_v2 = vmul.f32 1.442695, %v8416_v56  ;;  %v2690_v56 = vmul.f32 1.442695, %v8419_v42 }
 0xabb   : > { %v4353_v48 = vpop.eup %4352  ;;  %v2752_v52 = vadd.f32 %v6832_v6, %v2751_v60  ;;  %4372 = vpow2.f32 %v2658_v55  ;;  %v2773_v7 = vadd.f32 %v4351_v58, %v4349_v14  ;;  %v2811_v12 = vpack.c.bf16 %v4351_v58, %v4349_v14 }
 0xabc   : > { %v4355_v18 = vpop.eup %4354  ;;  %4374 = vpow2.f32 %v2662_v34  ;;  %v2682_v33 = vmul.f32 1.442695, %v8417_v61  ;;  %v8418_v34 = vsub.f32 %v8378_v24, %v6629_v32  ;;  %v8420_v21 = vpack.c.bf16 %v6721_v26, %v6713_v57 }
 0xabd   : > { %v4357_v63 = vpop.eup %4356  ;;  %v2753_v37 = vadd.f32 %v6837_v22, %v2752_v52  ;;  %4376 = vpow2.f32 %v2666_v59  ;;  %v2774_v54 = vadd.f32 %v4353_v48, %v2773_v7  ;;  %2842 = vmatprep.subr.bf16.mxu0 %v2811_v12  ;;  %v2813_v60 = vpack.c.bf16 %v4355_v18, %v4353_v48 }
 0xabe   : > { %v4359_v55 = vpop.eup %4358  ;;  %4378 = vpow2.f32 %v2670_v51  ;;  %v2686_v14 = vmul.f32 1.442695, %v8418_v34  ;;  %2843 = vmatpush1.bf16.msra.mxu0 %v8420_v21  ;;  %v8421_v24 = vsub.f32 %v8380_v31, %v6629_v32  ;;  %v8422_v50 = vsub.f32 %v8381_v16, %v6629_v32  ;;  %v8427_v21 = vld [vmem:[#allocation21_spill] sm:$0xff] }
 0xabf   : > { %v4361_v58 = vpop.eup %4360  ;;  %v2754_v59 = vadd.f32 %v6843_v49, %v2753_v37  ;;  %4380 = vpow2.f32 %v2674_v45  ;;  %v2775_v52 = vadd.f32 %v4355_v18, %v2774_v54  ;;  %2844 = vmatprep.subr.bf16.mxu0 %v2813_v60  ;;  %v2815_v48 = vpack.c.bf16 %v4359_v55, %v4357_v63 }
 0xac0   : > { %v4363_v51 = vpop.eup %4362  ;;  %4382 = vpow2.f32 %v2678_v2  ;;  %v2694_v7 = vmul.f32 1.442695, %v8421_v24  ;;  %v2698_v12 = vmul.f32 1.442695, %v8422_v50  ;;  %v8423_v18 = vsub.f32 %v8382_v35, %v6629_v32 }
 0xac1   : > { %v4365_v61 = vpop.eup %4364  ;;  %v2755_v57 = vadd.f32 %v6851_v1, %v2754_v59  ;;  %4384 = vpow2.f32 %v2682_v33  ;;  %v2776_v26 = vadd.f32 %v4357_v63, %v2775_v52  ;;  %v2817_v37 = vpack.c.bf16 %v4363_v51, %v4361_v58 }
 0xac2   : > { %v4367_v45 = vpop.eup %4366  ;;  %4386 = vpow2.f32 %v2686_v14  ;;  %v2702_v2 = vmul.f32 1.442695, %v8423_v18  ;;  %v8424_v31 = vsub.f32 %v8383_v41, %v6629_v32  ;;  %v8425_v16 = vpack.c.bf16 %v6737_v29, %v6729_v9 }
 0xac3   : > { %v4369_v60 = vpop.eup %4368  ;;  %v2756_v34 = vadd.f32 %v6860_v28, %v2755_v57  ;;  %4388 = vpow2.f32 %v2690_v56  ;;  %v2777_v63 = vadd.f32 %v4359_v55, %v2776_v26  ;;  %v2819_v33 = vpack.c.bf16 %v4367_v45, %v4365_v61 }
 0xac4   : > { %v2706_v54 = vmul.f32 1.442695, %v8424_v31  ;;  %2845 = vmatpush1.bf16.msra.mxu0 %v8425_v16  ;;  %v4371_v14 = vpop.eup %4370  ;;  %4390 = vpow2.f32 %v2694_v7  ;;  %v8426_v35 = vsub.f32 %v8384_v0, %v6629_v32  ;;  %v8428_v41 = vsub.f32 %v8427_v21, %v6629_v32  ;;  %v8430_v7 = vld [vmem:[#allocation27_spill] sm:$0xff] }
 0xac5   : > { %2846 = vmatprep.subr.bf16.mxu0 %v2815_v48  ;;  %v4373_v52 = vpop.eup %4372  ;;  %v2757_v9 = vadd.f32 %v6871_v8, %v2756_v34  ;;  %4392 = vpow2.f32 %v2698_v12  ;;  %v2778_v29 = vadd.f32 %v4361_v58, %v2777_v63  ;;  %v2821_v24 = vpack.c.bf16 %v4371_v14, %v4369_v60 }
 0xac6   : > { %v2710_v42 = vmul.f32 1.442695, %v8426_v35  ;;  %v2714_v59 = vmul.f32 1.442695, %v8428_v41  ;;  %v4375_v56 = vpop.eup %4374  ;;  %4394 = vpow2.f32 %v2702_v2  ;;  %v8429_v55 = vsub.f32 %v8386_v19, %v6629_v32 }
 0xac7   : > { %v8431_v0 = vsub.f32 %v8430_v7, %v6629_v32  ;;  %v8432_v57 = vpack.c.bf16 %v6752_v40, %v6745_v44  ;;  %v4377_v26 = vpop.eup %4376  ;;  %v2758_v18 = vadd.f32 %v6880_v3, %v2757_v9  ;;  %4396 = vpow2.f32 %v2706_v54 }
 0xac8   : > { %v2718_v48 = vmul.f32 1.442695, %v8429_v55  ;;  %v2779_v58 = vadd.f32 %v4363_v51, %v2778_v29  ;;  %v2823_v12 = vpack.c.bf16 %v4375_v56, %v4373_v52  ;;  %v4379_v2 = vpop.eup %4378  ;;  %4398 = vpow2.f32 %v2710_v42  ;;  %v8435_v51 = vld [vmem:[#allocation10_spill] sm:$0xff] }
 0xac9   : > { %v2722_v50 = vmul.f32 1.442695, %v8431_v0  ;;  %2847 = vmatpush1.bf16.msra.mxu0 %v8432_v57  ;;  %v8433_v19 = vsub.f32 %v8388_v39, %v6629_v32  ;;  %v8434_v16 = vsub.f32 %v8389_v17, %v6629_v32  ;;  %v4381_v63 = vpop.eup %4380  ;;  %v2759_v40 = vadd.f32 %v6888_v15, %v2758_v18 }
 0xaca   : > { %2848 = vmatprep.subr.bf16.mxu0 %v2817_v37  ;;  %4400 = vpow2.f32 %v2714_v59  ;;  %v2780_v44 = vadd.f32 %v4365_v61, %v2779_v58  ;;  %v2825_v35 = vpack.c.bf16 %v4379_v2, %v4377_v26  ;;  %v4383_v54 = vpop.eup %4382  ;;  %v8436_v37 = vsub.f32 %v8435_v51, %v6629_v32 }
 0xacb   : > { %v2726_v31 = vmul.f32 1.442695, %v8433_v19  ;;  %v2730_v34 = vmul.f32 1.442695, %v8434_v16  ;;  %4402 = vpow2.f32 %v2718_v48  ;;  %v8437_v39 = vpack.c.bf16 %v6767_v20, %v6760_v13  ;;  %v4385_v21 = vpop.eup %4384 }
 0xacc   : > { %v2734_v42 = vmul.f32 1.442695, %v8436_v37  ;;  %v2760_v17 = vadd.f32 %v6895_v4, %v2759_v40  ;;  %4404 = vpow2.f32 %v2722_v50  ;;  %v2781_v41 = vadd.f32 %v4367_v45, %v2780_v44  ;;  %v4387_v59 = vpop.eup %4386 }
 0xacd   : > { %2849 = vmatpush1.bf16.msra.mxu0 %v8437_v39  ;;  %v2827_v9 = vpack.c.bf16 %v4383_v54, %v4381_v63  ;;  %4406 = vpow2.f32 %v2726_v31  ;;  %v4389_v61 = vpop.eup %4388  ;;  %v2829_v32 = vpack.c.bf16 %v4387_v59, %v4385_v21  ;;  %v8438_v20 = vpack.c.bf16 %v6782_v10, %v6775_v62 }
 0xace   : > { %2850 = vmatprep.subr.bf16.mxu0 %v2819_v33  ;;  %v2761_v29 = vadd.f32 %v6903_v43, %v2760_v17  ;;  %4408 = vpow2.f32 %v2730_v34  ;;  %v2782_v55 = vadd.f32 %v4369_v60, %v2781_v41  ;;  %v4391_v48 = vpop.eup %4390  ;;  %v8439_v19 = vpack.c.bf16 %v6796_v27, %v6790_v36 }
 0xacf   : > { %4410 = vpow2.f32 %v2734_v42  ;;  %v4393_v13 = vpop.eup %4392  ;;  %v2831_v33 = vpack.c.bf16 %v4391_v48, %v4389_v61  ;;  %v8441_v17 = vpack.c.bf16 %v6821_v53, %v6815_v30  ;;  %v8445_v30 = vpack.c.bf16 %v6860_v28, %v6851_v1 }
 0xad0   : > { %v2762_v7 = vadd.f32 %v6910_v47, %v2761_v29  ;;  %v2783_v45 = vadd.f32 %v4371_v14, %v2782_v55  ;;  %v4395_v0 = vpop.eup %4394  ;;  %v8448_v1 = vpack.c.bf16 %v6910_v47, %v6903_v43  ;;  %v8453_v47 = vld [vmem:[#allocation40_spill] sm:$0xff] }
 0xad1   : > { %2851 = vmatpush1.bf16.msra.mxu0 %v8438_v20  ;;  %v4397_v50 = vpop.eup %4396  ;;  %v2833_v58 = vpack.c.bf16 %v4395_v0, %v4393_v13  ;;  %v2189_v43 = vpack.c.bf16 %v8453_v47, %v8453_v47 }
 0xad2   : > { %2852 = vmatprep.subr.bf16.mxu0 %v2821_v24  ;;  %v2763_v57 = vadd.f32 %v6918_v38, %v2762_v7  ;;  %v2784_v18 = vadd.f32 %v4373_v52, %v2783_v45  ;;  %v4399_v60 = vpop.eup %4398  ;;  %v8440_v52 = vpack.c.bf16 %v6809_v23, %v6802_v25  ;;  %v8442_v25 = vld [vmem:[#allocation11_spill] sm:$0xff]  ;;  %v8452_v45 = vpack.c.bf16 %v6939_v5, %v6931_v46 }
 0xad3   : > { %v2835_v16 = vpack.c.bf16 %v4399_v60, %v4397_v50  ;;  %v8443_v23 = vpack.c.bf16 %v6832_v6, %v8442_v25  ;;  %v8446_v6 = vpack.c.bf16 %v6880_v3, %v6871_v8  ;;  %v8450_v3 = vld [vmem:[#allocation53_spill] sm:$0xff] }
 0xad4   : > { %v4401_v31 = vpop.eup %4400  ;;  %v2764_v10 = vadd.f32 %v6926_v11, %v2763_v57  ;;  %v2785_v62 = vadd.f32 %v4375_v56, %v2784_v18  ;;  %v8460_v57 = vld [vmem:[#allocation43_spill] sm:$0xff]  ;;  %v8461_v18 = vld [vmem:[#allocation44_spill] sm:$0xff] }
 0xad5   : > { %2853 = vmatpush1.bf16.msra.mxu0 %v8439_v19  ;;  %v4403_v14 = vpop.eup %4402 }
 0xad6   : > { %2854 = vmatprep.subr.bf16.mxu0 %v2823_v12  ;;  %v4405_v24 = vpop.eup %4404  ;;  %v2765_v34 = vadd.f32 %v6931_v46, %v2764_v10  ;;  %v2786_v40 = vadd.f32 %v4377_v26, %v2785_v62  ;;  %v2837_v44 = vpack.c.bf16 %v4403_v14, %v4401_v31  ;;  %v8457_v46 = vld [vmem:[#allocation47_spill] sm:$0xff] }
 0xad7   : > { %v4407_v51 = vpop.eup %4406 }
 0xad8   : > { %v4409_v37 = vpop.eup %4408  ;;  %v7037_v27 = vadd.f32 %v6939_v5, %v2765_v34  ;;  %v2787_v36 = vadd.f32 %v4379_v2, %v2786_v40  ;;  %v2839_v56 = vpack.c.bf16 %v4407_v51, %v4405_v24  ;;  %v8444_v2 = vpack.c.bf16 %v6843_v49, %v6837_v22  ;;  %v8458_v5 = vld [vmem:[#allocation50_spill] sm:$0xff] }
 0xad9   : > { %2855 = vmatpush1.bf16.msra.mxu0 %v8440_v52  ;;  %v4411_v12 = vpop.eup %4410  ;;  %v8447_v22 = vpack.c.bf16 %v6895_v4, %v6888_v15 }
 0xada   : > { %2856 = vmatprep.subr.bf16.mxu0 %v2825_v35  ;;  %v2788_v42 = vadd.f32 %v4381_v63, %v2787_v36  ;;  %v2841_v39 = vpack.c.bf16 %v4411_v12, %v4409_v37  ;;  %v2767_v34 = vrot.slane %v7037_v27, 4 }
 0xadc   : > { %v2789_v26 = vadd.f32 %v4383_v54, %v2788_v42 }
 0xadd   : > { %2857 = vmatpush1.bf16.msra.mxu0 %v8441_v17 }
 0xade   : > { %2858 = vmatprep.subr.bf16.mxu0 %v2827_v9  ;;  %v2790_v41 = vadd.f32 %v4385_v21, %v2789_v26 }
 0xae0   : > { %v2791_v29 = vadd.f32 %v4387_v59, %v2790_v41 }
 0xae1   : > { %2859 = vmatpush1.bf16.msra.mxu0 %v8443_v23 }
 0xae2   : > { %2860 = vmatprep.subr.bf16.mxu0 %v2829_v32  ;;  %v2792_v55 = vadd.f32 %v4389_v61, %v2791_v29  ;;  %v622_v61 = vpop.permute.xlu1 %621  ;;  %v8449_v32 = vld [vmem:[#allocation52_spill] sm:$0xff] }
 0xae3   : > { %v761_v8 = vadd.f32 %v8449_v32, %v622_v61 }
 0xae4   : > { %v2793_v63 = vadd.f32 %v4391_v48, %v2792_v55  ;;  %v763_v48 = vadd.f32 %v8450_v3, %v622_v61 }
 0xae5   : > { %2861 = vmatpush1.bf16.msra.mxu0 %v8444_v2  ;;  %v2889_v4 = vpack.c.bf16 %v761_v8, %v761_v8 }
 0xae6   : > { %2862 = vmatprep.subr.bf16.mxu0 %v2831_v33  ;;  %v2794_v35 = vadd.f32 %v4393_v13, %v2793_v63  ;;  %v8451_v13 = vpack.c.bf16 %v6926_v11, %v6918_v38  ;;  %v2890_v7 = vpack.c.bf16 %v763_v48, %v763_v48  ;;  %v8455_v11 = vld [vmem:[#allocation45_spill] sm:$0xff]  ;;  %v8456_v38 = vld [vmem:[#allocation46_spill] sm:$0xff] }
 0xae7   : > { %v2976_v33 = vsel %vm862_vm1, %v2889_v4, 0 }
 0xae8   : > { %v2795_v53 = vadd.f32 %v4395_v0, %v2794_v35  ;;  %v8454_v0 = vmov 0  }
 0xae9   : > { %2863 = vmatpush1.bf16.msra.mxu0 %v8445_v30 }
 0xaea   : > { %2864 = vmatprep.subr.bf16.mxu0 %v2833_v58  ;;  %v2796_v54 = vadd.f32 %v4397_v50, %v2795_v53  ;;  %v8459_v50 = vld [vmem:[#allocation42_spill] sm:$0xff]  ;;  %v8462_v58 = vld [vmem:[#allocation48_spill] sm:$0xff] }
 0xaec   : > { %v2797_v21 = vadd.f32 %v4399_v60, %v2796_v54  ;;  %v2919_v60 = vpop.trf.xlu1 }
 0xaed   : > { %2865 = vmatpush1.bf16.msra.mxu0 %v8446_v6 }
 0xaee   : > { %2866 = vmatprep.subr.bf16.mxu0 %v2835_v16  ;;  %v2798_v9 = vadd.f32 %v4401_v31, %v2797_v21 }
 0xaf0   : > { %v2799_v49 = vadd.f32 %v4403_v14, %v2798_v9  ;;  %v2920_v19 = vpop.trf.xlu1 }
 0xaf1   : > { %2867 = vmatpush1.bf16.msra.mxu0 %v8447_v22 }
 0xaf2   : > { %2868 = vmatprep.subr.bf16.mxu0 %v2837_v44  ;;  %v2800_v59 = vadd.f32 %v4405_v24, %v2799_v49  ;;  %v2768_v44 = vadd.f32 %v2767_v34, %v7037_v27 }
 0xaf4   : > { %v2801_v28 = vadd.f32 %v4407_v51, %v2800_v59  ;;  %v2921_v31 = vpop.trf.xlu1  ;;  %v2769_v52 = vrot.slane %v2768_v44, 2 }
 0xaf5   : > { %2869 = vmatpush1.bf16.msra.mxu0 %v8448_v1 }
 0xaf6   : > { %2870 = vmatprep.subr.bf16.mxu0 %v2839_v56  ;;  %v2802_v20 = vadd.f32 %v4409_v37, %v2801_v28  ;;  %v2770_v36 = vadd.f32 %v2769_v52, %v2768_v44 }
 0xaf8   : > { %v2803_v15 = vadd.f32 %v4411_v12, %v2802_v20  ;;  %v2922_v10 = vpop.trf.xlu1  ;;  %v2771_v12 = vrot.slane %v2770_v36, 1 }
 0xaf9   : > { %2871 = vmatpush1.bf16.msra.mxu0 %v8451_v13 }
 0xafa   : > { %2872 = vmatprep.subr.bf16.mxu0 %v2841_v39  ;;  %v2804_v40 = vrot.slane %v2803_v15, 4  ;;  %v2772_v39 = vadd.f32 %v2771_v12, %v2770_v36 }
 0xafc   : > { %v2923_v62 = vpop.trf.xlu1  ;;  %v2805_v51 = vadd.f32 %v2804_v40, %v2803_v15  ;;  %4412 = vrcp.f32 %v2772_v39 }
 0xafd   : > { %2873 = vmatpush1.bf16.msra.mxu0 %v8452_v45 }
 0xafe   : > { %3872 = vmatprep.subr.msk.bf16.mxu0 %vm862_vm1, %v2890_v7  ;;  %v2806_v37 = vrot.slane %v2805_v51, 2 }
 0xb00   : > { %2875 = vmatmul.mubr.bf16.vlgmr.msra.gmra.mrb[92].mxu0 %v2189_v43  ;;  %v2924_v16 = vpop.trf.xlu1  ;;  %v2807_v56 = vadd.f32 %v2806_v37, %v2805_v51 }
 0xb01   : > { %2982 = vmatpush1.bf16.msra.mxu0 %v2976_v33  ;;  %3013 = vmatprep.mubr.bf16.mxu0 %v8454_v0 }
 0xb02   : > { %v2808_v42 = vrot.slane %v2807_v56, 1 }
 0xb04   : > { %v2925_v14 = vpop.trf.xlu1  ;;  %v2809_v17 = vadd.f32 %v2808_v42, %v2807_v56 }
 0xb06   : > { %4414 = vrcp.f32 %v2809_v17  ;;  %v4413_v26 = vpop.eup %4412 }
 0xb08   : > { %3873 = vmatmul.mubr.msk.bf16.vlgmr.msra.gmra.mrb[96].mxu0 %vm813_vm2, %v8455_v11  ;;  %v2926_v24 = vpop.trf.xlu1 }
 0xb09   : > { %3023 = vmatprep.mubr.bf16.mxu0 %v8454_v0 }
 0xb10   : > { %3874 = vmatmul.mubr.msk.bf16.gmra.mrb[100].mxu0 %vm813_vm2, %v8456_v38  ;;  %v4415_v25 = vpop.eup %4414 }
 0xb11   : > { %3033 = vmatprep.mubr.bf16.mxu0 %v8454_v0 }
 0xb18   : > { %3875 = vmatmul.mubr.msk.bf16.gmra.mrb[104].mxu0 %vm813_vm2, %v8457_v46 }
 0xb19   : > { %3043 = vmatprep.mubr.bf16.mxu0 %v8454_v0 }
 0xb20   : > { %3876 = vmatmul.mubr.msk.bf16.gmra.mrb[108].mxu0 %vm813_vm2, %v8458_v5 }
 0xb21   : > { %3053 = vmatprep.mubr.bf16.mxu0 %v8454_v0 }
 0xb28   : > { %3877 = vmatmul.mubr.msk.bf16.gmra.mrb[112].mxu0 %vm813_vm2, %v8459_v50 }
 0xb29   : > { %3063 = vmatprep.mubr.bf16.mxu0 %v8454_v0 }
 0xb30   : > { %3878 = vmatmul.mubr.msk.bf16.gmra.mrb[116].mxu0 %vm813_vm2, %v8460_v57 }
 0xb31   : > { %3073 = vmatprep.mubr.bf16.mxu0 %v8454_v0 }
 0xb38   : > { %3879 = vmatmul.mubr.msk.bf16.gmra.mrb[120].mxu0 %vm813_vm2, %v8461_v18 }
 0xb39   : > { %3083 = vmatprep.mubr.bf16.mxu0 %v8454_v0 }
 0xb40   : > { %3880 = vmatmul.mubr.msk.bf16.gmra.mrb[124].mxu0 %vm813_vm2, %v8462_v58 }
 0xb41   : > { %3093 = vmatprep.mubr.bf16.mxu0 %v8454_v0 }
 0xb48   : > { %3881 = vmatmul.mubr.msk.bf16.gmra.mrb[128].mxu0 %vm813_vm2, %v2919_v60 }
 0xb49   : > { %3103 = vmatprep.mubr.bf16.mxu0 %v8454_v0 }
 0xb50   : > { %3882 = vmatmul.mubr.msk.bf16.gmra.mrb[132].mxu0 %vm813_vm2, %v2920_v19 }
 0xb51   : > { %3113 = vmatprep.mubr.bf16.mxu0 %v8454_v0 }
 0xb58   : > { %3883 = vmatmul.mubr.msk.bf16.gmra.mrb[136].mxu0 %vm813_vm2, %v2921_v31 }
 0xb59   : > { %3123 = vmatprep.mubr.bf16.mxu0 %v8454_v0 }
 0xb60   : > { %3884 = vmatmul.mubr.msk.bf16.gmra.mrb[140].mxu0 %vm813_vm2, %v2922_v10 }
 0xb61   : > { %3133 = vmatprep.mubr.bf16.mxu0 %v8454_v0 }
 0xb68   : > { %3885 = vmatmul.mubr.msk.bf16.gmra.mrb[144].mxu0 %vm813_vm2, %v2923_v62 }
 0xb69   : > { %3143 = vmatprep.mubr.bf16.mxu0 %v8454_v0 }
 0xb70   : > { %3886 = vmatmul.mubr.msk.bf16.gmra.mrb[148].mxu0 %vm813_vm2, %v2924_v16 }
 0xb71   : > { %3153 = vmatprep.mubr.bf16.mxu0 %v8454_v0 }
 0xb78   : > { %3887 = vmatmul.mubr.msk.bf16.gmra.mrb[152].mxu0 %vm813_vm2, %v2925_v14 }
 0xb79   : > { %3163 = vmatprep.mubr.bf16.mxu0 %v8454_v0 }
 0xb80   : > { %3888 = vmatmul.mubr.msk.bf16.gmra.mrb[156].mxu0 %vm813_vm2, %v2926_v24 }
 0xbd3   : > { %v2876_v41 = vpop.f32.mrb[92].mxu0 }
 0xbd4   : > { %v7114_v23 = vmul.f32 %v4413_v26, %v2876_v41  ;;  %v2878_v29 = vpop.f32.mrb[93].mxu0 }
 0xbd5   : > { %v7116_v55 = vmul.f32 %v4415_v25, %v2878_v29  ;;  %v2880_v27 = vpop.f32.mrb[94].mxu0 }
 0xbd6   : > { %8463 = vst [vmem:[#allocation29_spill] sm:$0xff] %v7114_v23  ;;  %v2881_v2 = vpop.f32.mrb[95].mxu0 }
 0xbd7   : > { %8464 = vst [vmem:[#allocation9_spill] sm:$0xff] %v7116_v55 }
 0xbdb   : > { %v7118_v63 = vpop.f32.mrb[96].mxu0 }
 0xbdc   : > { %v7120_v35 = vpop.f32.mrb[97].mxu0 }
 0xbdd   : > { %v7122_v30 = vpop.f32.mrb[98].mxu0 }
 0xbde   : > { %v7124_v53 = vpop.f32.mrb[99].mxu0 }
 0xbe3   : > { %v7126_v54 = vpop.f32.mrb[100].mxu0 }
 0xbe4   : > { %v3174_v6 = vmax.f32 %v7118_v63, %v7126_v54  ;;  %v7130_v21 = vpop.f32.mrb[101].mxu0 }
 0xbe5   : > { %v3211_v9 = vmax.f32 %v7120_v35, %v7130_v21  ;;  %v7134_v22 = vpop.f32.mrb[102].mxu0 }
 0xbe6   : > { %v3175_v49 = vmax.f32 %v7122_v30, %v7134_v22  ;;  %v7138_v59 = vpop.f32.mrb[103].mxu0 }
 0xbe7   : > { %v3212_v61 = vmax.f32 %v7124_v53, %v7138_v59 }
 0xbeb   : > { %v7142_v1 = vpop.f32.mrb[104].mxu0 }
 0xbec   : > { %v3176_v28 = vmax.f32 %v3174_v6, %v7142_v1  ;;  %v7145_v32 = vpop.f32.mrb[105].mxu0 }
 0xbed   : > { %v3213_v8 = vmax.f32 %v3211_v9, %v7145_v32  ;;  %v7148_v3 = vpop.f32.mrb[106].mxu0 }
 0xbee   : > { %v3177_v48 = vmax.f32 %v3175_v49, %v7148_v3  ;;  %v7151_v20 = vpop.f32.mrb[107].mxu0 }
 0xbef   : > { %v3214_v13 = vmax.f32 %v3212_v61, %v7151_v20 }
 0xbf3   : > { %v7154_v15 = vpop.f32.mrb[108].mxu0 }
 0xbf4   : > { %v3178_v4 = vmax.f32 %v3176_v28, %v7154_v15  ;;  %v7157_v7 = vpop.f32.mrb[109].mxu0 }
 0xbf5   : > { %v3215_v45 = vmax.f32 %v3213_v8, %v7157_v7  ;;  %v7160_v47 = vpop.f32.mrb[110].mxu0 }
 0xbf6   : > { %v3179_v43 = vmax.f32 %v3177_v48, %v7160_v47  ;;  %v7163_v33 = vpop.f32.mrb[111].mxu0 }
 0xbf7   : > { %v3216_v11 = vmax.f32 %v3214_v13, %v7163_v33 }
 0xbfb   : > { %v7166_v38 = vpop.f32.mrb[112].mxu0 }
 0xbfc   : > { %v3180_v46 = vmax.f32 %v3178_v4, %v7166_v38  ;;  %v7169_v5 = vpop.f32.mrb[113].mxu0 }
 0xbfd   : > { %v3217_v50 = vmax.f32 %v3215_v45, %v7169_v5  ;;  %v7172_v57 = vpop.f32.mrb[114].mxu0 }
 0xbfe   : > { %v3181_v18 = vmax.f32 %v3179_v43, %v7172_v57  ;;  %v7175_v58 = vpop.f32.mrb[115].mxu0 }
 0xbff   : > { %v3218_v60 = vmax.f32 %v3216_v11, %v7175_v58 }
 0xc03   : > { %v7178_v19 = vpop.f32.mrb[116].mxu0 }
 0xc04   : > { %v3182_v31 = vmax.f32 %v3180_v46, %v7178_v19  ;;  %v7181_v10 = vpop.f32.mrb[117].mxu0 }
 0xc05   : > { %v3219_v62 = vmax.f32 %v3217_v50, %v7181_v10  ;;  %v7184_v16 = vpop.f32.mrb[118].mxu0 }
 0xc06   : > { %v3183_v14 = vmax.f32 %v3181_v18, %v7184_v16  ;;  %v7187_v24 = vpop.f32.mrb[119].mxu0 }
 0xc07   : > { %8465 = vst [vmem:[#allocation54_spill] sm:$0xff] %v7187_v24  ;;  %v3220_v34 = vmax.f32 %v3218_v60, %v7187_v24 }
 0xc0b   : > { %v7190_v40 = vpop.f32.mrb[120].mxu0 }
 0xc0c   : > { %v3184_v44 = vmax.f32 %v3182_v31, %v7190_v40  ;;  %v7193_v51 = vpop.f32.mrb[121].mxu0 }
 0xc0d   : > { %8466 = vst [vmem:[#allocation57_spill] sm:$0xff] %v7193_v51  ;;  %v3221_v52 = vmax.f32 %v3219_v62, %v7193_v51  ;;  %v7196_v37 = vpop.f32.mrb[122].mxu0 }
 0xc0e   : > { %v3185_v36 = vmax.f32 %v3183_v14, %v7196_v37  ;;  %v7199_v56 = vpop.f32.mrb[123].mxu0 }
 0xc0f   : > { %8467 = vst [vmem:[#allocation59_spill] sm:$0xff] %v7199_v56  ;;  %v3222_v12 = vmax.f32 %v3220_v34, %v7199_v56 }
 0xc13   : > { %v7202_v42 = vpop.f32.mrb[124].mxu0 }
 0xc14   : > { %v3186_v39 = vmax.f32 %v3184_v44, %v7202_v42  ;;  %v7205_v17 = vpop.f32.mrb[125].mxu0 }
 0xc15   : > { %8468 = vst [vmem:[#allocation61_spill] sm:$0xff] %v7205_v17  ;;  %v3223_v26 = vmax.f32 %v3221_v52, %v7205_v17  ;;  %v7208_v41 = vpop.f32.mrb[126].mxu0 }
 0xc16   : > { %v3187_v25 = vmax.f32 %v3185_v36, %v7208_v41  ;;  %v7211_v29 = vpop.f32.mrb[127].mxu0 }
 0xc17   : > { %8469 = vst [vmem:[#allocation63_spill] sm:$0xff] %v7211_v29  ;;  %v3224_v27 = vmax.f32 %v3222_v12, %v7211_v29 }
 0xc1b   : > { %v7214_v2 = vpop.f32.mrb[128].mxu0 }
 0xc1c   : > { %v3188_v6 = vmax.f32 %v3186_v39, %v7214_v2  ;;  %v7217_v9 = vpop.f32.mrb[129].mxu0 }
 0xc1d   : > { %8470 = vst [vmem:[#allocation31_spill] sm:$0xff] %v7217_v9  ;;  %v3225_v49 = vmax.f32 %v3223_v26, %v7217_v9  ;;  %v7220_v61 = vpop.f32.mrb[130].mxu0 }
 0xc1e   : > { %v3189_v28 = vmax.f32 %v3187_v25, %v7220_v61  ;;  %v7223_v8 = vpop.f32.mrb[131].mxu0 }
 0xc1f   : > { %8471 = vst [vmem:[#allocation33_spill] sm:$0xff] %v7223_v8  ;;  %v3226_v48 = vmax.f32 %v3224_v27, %v7223_v8 }
 0xc23   : > { %v7226_v13 = vpop.f32.mrb[132].mxu0 }
 0xc24   : > { %v3190_v4 = vmax.f32 %v3188_v6, %v7226_v13  ;;  %v7229_v45 = vpop.f32.mrb[133].mxu0 }
 0xc25   : > { %8472 = vst [vmem:[#allocation37_spill] sm:$0xff] %v7229_v45  ;;  %v3227_v43 = vmax.f32 %v3225_v49, %v7229_v45  ;;  %v7232_v11 = vpop.f32.mrb[134].mxu0 }
 0xc26   : > { %v3191_v46 = vmax.f32 %v3189_v28, %v7232_v11  ;;  %v7235_v50 = vpop.f32.mrb[135].mxu0 }
 0xc27   : > { %8473 = vst [vmem:[#allocation56_spill] sm:$0xff] %v7235_v50  ;;  %v3228_v18 = vmax.f32 %v3226_v48, %v7235_v50 }
 0xc2b   : > { %v7238_v60 = vpop.f32.mrb[136].mxu0 }
 0xc2c   : > { %v3192_v31 = vmax.f32 %v3190_v4, %v7238_v60  ;;  %v7241_v62 = vpop.f32.mrb[137].mxu0 }
 0xc2d   : > { %8474 = vst [vmem:[#allocation58_spill] sm:$0xff] %v7241_v62  ;;  %v3229_v14 = vmax.f32 %v3227_v43, %v7241_v62  ;;  %v7244_v34 = vpop.f32.mrb[138].mxu0 }
 0xc2e   : > { %v3193_v44 = vmax.f32 %v3191_v46, %v7244_v34  ;;  %v7247_v52 = vpop.f32.mrb[139].mxu0 }
 0xc2f   : > { %8475 = vst [vmem:[#allocation60_spill] sm:$0xff] %v7247_v52  ;;  %v3230_v36 = vmax.f32 %v3228_v18, %v7247_v52 }
 0xc33   : > { %v7250_v12 = vpop.f32.mrb[140].mxu0 }
 0xc34   : > { %v3194_v39 = vmax.f32 %v3192_v31, %v7250_v12  ;;  %v7253_v26 = vpop.f32.mrb[141].mxu0 }
 0xc35   : > { %8476 = vst [vmem:[#allocation62_spill] sm:$0xff] %v7253_v26  ;;  %v3231_v25 = vmax.f32 %v3229_v14, %v7253_v26  ;;  %v7256_v27 = vpop.f32.mrb[142].mxu0 }
 0xc36   : > { %v3195_v6 = vmax.f32 %v3193_v44, %v7256_v27  ;;  %v7259_v49 = vpop.f32.mrb[143].mxu0 }
 0xc37   : > { %8477 = vst [vmem:[#allocation30_spill] sm:$0xff] %v7259_v49  ;;  %v3232_v28 = vmax.f32 %v3230_v36, %v7259_v49 }
 0xc3b   : > { %v7262_v48 = vpop.f32.mrb[144].mxu0 }
 0xc3c   : > { %v3196_v4 = vmax.f32 %v3194_v39, %v7262_v48  ;;  %v7265_v43 = vpop.f32.mrb[145].mxu0 }
 0xc3d   : > { %8478 = vst [vmem:[#allocation32_spill] sm:$0xff] %v7265_v43  ;;  %v3233_v46 = vmax.f32 %v3231_v25, %v7265_v43  ;;  %v7268_v18 = vpop.f32.mrb[146].mxu0 }
 0xc3e   : > { %v3197_v31 = vmax.f32 %v3195_v6, %v7268_v18  ;;  %v7271_v14 = vpop.f32.mrb[147].mxu0 }
 0xc3f   : > { %8479 = vst [vmem:[#allocation36_spill] sm:$0xff] %v7271_v14  ;;  %v3234_v44 = vmax.f32 %v3232_v28, %v7271_v14 }
 0xc43   : > { %v7274_v55 = vpop.f32.mrb[148].mxu0 }
 0xc44   : > { %v3198_v36 = vmax.f32 %v3196_v4, %v7274_v55  ;;  %v7277_v23 = vpop.f32.mrb[149].mxu0 }
 0xc45   : > { %8480 = vst [vmem:[#allocation49_spill] sm:$0xff] %v7277_v23  ;;  %v3235_v39 = vmax.f32 %v3233_v46, %v7277_v23  ;;  %v7280_v0 = vpop.f32.mrb[150].mxu0 }
 0xc46   : > { %v3199_v25 = vmax.f32 %v3197_v31, %v7280_v0  ;;  %v7283_v43 = vpop.f32.mrb[151].mxu0 }
 0xc47   : > { %8481 = vst [vmem:[#allocation41_spill] sm:$0xff] %v7283_v43  ;;  %v3236_v6 = vmax.f32 %v3234_v44, %v7283_v43 }
 0xc4b   : > { %v7286_v49 = vpop.f32.mrb[152].mxu0 }
 0xc4c   : > { %v3200_v28 = vmax.f32 %v3198_v36, %v7286_v49  ;;  %v7289_v14 = vpop.f32.mrb[153].mxu0 }
 0xc4d   : > { %8482 = vst [vmem:[#allocation38_spill] sm:$0xff] %v7289_v14  ;;  %v3237_v4 = vmax.f32 %v3235_v39, %v7289_v14  ;;  %v7292_v26 = vpop.f32.mrb[154].mxu0 }
 0xc4e   : > { %v3201_v46 = vmax.f32 %v3199_v25, %v7292_v26  ;;  %v7295_v23 = vpop.f32.mrb[155].mxu0 }
 0xc4f   : > { %8483 = vst [vmem:[#allocation14_spill] sm:$0xff] %v7295_v23  ;;  %v3238_v31 = vmax.f32 %v3236_v6, %v7295_v23 }
 0xc53   : > { %v7298_v52 = vpop.f32.mrb[156].mxu0 }
 0xc54   : > { %v3202_v44 = vmax.f32 %v3200_v28, %v7298_v52  ;;  %v7301_v43 = vpop.f32.mrb[157].mxu0 }
 0xc55   : > { %8484 = vst [vmem:[#allocation16_spill] sm:$0xff] %v7301_v43  ;;  %v3239_v36 = vmax.f32 %v3237_v4, %v7301_v43  ;;  %v7304_v62 = vpop.f32.mrb[158].mxu0 }
 0xc56   : > { %v3203_v39 = vmax.f32 %v3201_v46, %v7304_v62  ;;  %v7307_v14 = vpop.f32.mrb[159].mxu0 }
 0xc57   : > { %8485 = vst [vmem:[#allocation18_spill] sm:$0xff] %v7307_v14  ;;  %v3240_v25 = vmax.f32 %v3238_v31, %v7307_v14 }
 0xc58   : > { %v3204_v50 = vmax.f32 %v3202_v44, %v3203_v39 }
 0xc59   : > { %v3241_v45 = vmax.f32 %v3239_v36, %v3240_v25 }
 0xc5a   : > { %v3205_v8 = vrot.slane %v3204_v50, 4 }
 0xc5b   : > { %v3242_v6 = vrot.slane %v3241_v45, 4 }
 0xc5c   : > { %v3206_v23 = vmax.f32 %v3204_v50, %v3205_v8 }
 0xc5d   : > { %v3243_v9 = vmax.f32 %v3241_v45, %v3242_v6 }
 0xc5e   : > { %v3207_v29 = vrot.slane %v3206_v23, 2 }
 0xc5f   : > { %v3244_v28 = vrot.slane %v3243_v9, 2 }
 0xc60   : > { %v3208_v17 = vmax.f32 %v3206_v23, %v3207_v29  ;;  %v8505_v29 = vld [vmem:[#allocation16_spill] sm:$0xff] }
 0xc61   : > { %v3245_v56 = vmax.f32 %v3243_v9, %v3244_v28 }
 0xc62   : > { %v3209_v51 = vrot.slane %v3208_v17, 1 }
 0xc63   : > { %v3246_v4 = vrot.slane %v3245_v56, 1 }
 0xc64   : > { %v7310_v43 = vmax.f32 %v3208_v17, %v3209_v51 }
 0xc65   : > { %v7312_v24 = vmax.f32 %v3245_v56, %v3246_v4 }
 0xc66   : > { %v3248_v46 = vsub.f32 %v7118_v63, %v7310_v43  ;;  %v3250_v31 = vsub.f32 %v7122_v30, %v7310_v43  ;;  %v3252_v8 = vsub.f32 %v7126_v54, %v7310_v43  ;;  %v3254_v45 = vsub.f32 %v7134_v22, %v7310_v43 }
 0xc67   : > { %v3256_v23 = vsub.f32 %v7142_v1, %v7310_v43  ;;  %v3258_v51 = vsub.f32 %v7148_v3, %v7310_v43  ;;  %v3260_v56 = vsub.f32 %v7154_v15, %v7310_v43  ;;  %v3262_v63 = vsub.f32 %v7160_v47, %v7310_v43 }
 0xc68   : > { %v3264_v30 = vsub.f32 %v7166_v38, %v7310_v43  ;;  %v3266_v54 = vsub.f32 %v7172_v57, %v7310_v43  ;;  %v3268_v22 = vsub.f32 %v7178_v19, %v7310_v43  ;;  %v3270_v1 = vsub.f32 %v7184_v16, %v7310_v43 }
 0xc69   : > { %v3272_v3 = vsub.f32 %v7190_v40, %v7310_v43  ;;  %v3274_v15 = vsub.f32 %v7196_v37, %v7310_v43  ;;  %v3276_v47 = vsub.f32 %v7202_v42, %v7310_v43  ;;  %v3278_v38 = vsub.f32 %v7208_v41, %v7310_v43 }
 0xc6a   : > { %v3280_v57 = vsub.f32 %v7214_v2, %v7310_v43  ;;  %v3282_v19 = vsub.f32 %v7220_v61, %v7310_v43  ;;  %v3284_v16 = vsub.f32 %v7226_v13, %v7310_v43  ;;  %v3286_v40 = vsub.f32 %v7232_v11, %v7310_v43 }
 0xc6b   : > { %v3288_v37 = vsub.f32 %v7238_v60, %v7310_v43  ;;  %v3290_v42 = vsub.f32 %v7244_v34, %v7310_v43  ;;  %v3292_v17 = vsub.f32 %v7250_v12, %v7310_v43  ;;  %v3294_v41 = vsub.f32 %v7256_v27, %v7310_v43 }
 0xc6c   : > { %v3312_v34 = vmul.f32 1.442695, %v3248_v46  ;;  %v3316_v12 = vmul.f32 1.442695, %v3250_v31  ;;  %v3320_v27 = vmul.f32 1.442695, %v3252_v8 }
 0xc6d   : > { %v3324_v36 = vmul.f32 1.442695, %v3254_v45  ;;  %v3328_v25 = vmul.f32 1.442695, %v3256_v23  ;;  %v3332_v6 = vmul.f32 1.442695, %v3258_v51 }
 0xc6e   : > { %4416 = vpow2.f32 %v3312_v34  ;;  %v3336_v28 = vmul.f32 1.442695, %v3260_v56  ;;  %v3340_v4 = vmul.f32 1.442695, %v3262_v63  ;;  %v3344_v50 = vmul.f32 1.442695, %v3264_v30 }
 0xc6f   : > { %4418 = vpow2.f32 %v3316_v12  ;;  %v3348_v60 = vmul.f32 1.442695, %v3266_v54  ;;  %v3352_v46 = vmul.f32 1.442695, %v3268_v22  ;;  %v3356_v31 = vmul.f32 1.442695, %v3270_v1 }
 0xc70   : > { %4420 = vpow2.f32 %v3320_v27  ;;  %v3360_v8 = vmul.f32 1.442695, %v3272_v3  ;;  %v3364_v44 = vmul.f32 1.442695, %v3274_v15  ;;  %v3368_v45 = vmul.f32 1.442695, %v3276_v47 }
 0xc71   : > { %4422 = vpow2.f32 %v3324_v36  ;;  %v3372_v11 = vmul.f32 1.442695, %v3278_v38  ;;  %v3376_v39 = vmul.f32 1.442695, %v3280_v57  ;;  %v3380_v34 = vmul.f32 1.442695, %v3282_v19 }
 0xc72   : > { %4424 = vpow2.f32 %v3328_v25  ;;  %v3384_v23 = vmul.f32 1.442695, %v3284_v16  ;;  %v3388_v51 = vmul.f32 1.442695, %v3286_v40  ;;  %v3392_v12 = vmul.f32 1.442695, %v3288_v37 }
 0xc73   : > { %4426 = vpow2.f32 %v3332_v6  ;;  %v7382_v56 = vmul.f32 1.442695, %v3290_v42  ;;  %v7384_v63 = vmul.f32 1.442695, %v3292_v17  ;;  %v7386_v30 = vmul.f32 1.442695, %v3294_v41 }
 0xc74   : > { %4428 = vpow2.f32 %v3336_v28  ;;  %v8486_v37 = vld [vmem:[#allocation54_spill] sm:$0xff]  ;;  %v8488_v27 = vld [vmem:[#allocation59_spill] sm:$0xff]  ;;  %v8489_v6 = vld [vmem:[#allocation61_spill] sm:$0xff] }
 0xc75   : > { %4430 = vpow2.f32 %v3340_v4  ;;  %v8490_v4 = vld [vmem:[#allocation63_spill] sm:$0xff]  ;;  %v8492_v40 = vld [vmem:[#allocation33_spill] sm:$0xff]  ;;  %v8494_v28 = vld [vmem:[#allocation56_spill] sm:$0xff] }
 0xc76   : > { %4432 = vpow2.f32 %v3344_v50  ;;  %v8487_v50 = vld [vmem:[#allocation57_spill] sm:$0xff]  ;;  %v8495_v38 = vld [vmem:[#allocation58_spill] sm:$0xff]  ;;  %v8496_v47 = vld [vmem:[#allocation60_spill] sm:$0xff] }
 0xc77   : > { %4434 = vpow2.f32 %v3348_v60  ;;  %v8493_v16 = vld [vmem:[#allocation37_spill] sm:$0xff]  ;;  %v8497_v36 = vld [vmem:[#allocation62_spill] sm:$0xff]  ;;  %v8500_v54 = vld [vmem:[#allocation36_spill] sm:$0xff] }
 0xc78   : > { %v7396_v15 = vpop.eup %4416  ;;  %4436 = vpow2.f32 %v3352_v46  ;;  %v8498_v1 = vld [vmem:[#allocation30_spill] sm:$0xff]  ;;  %v8499_v46 = vld [vmem:[#allocation32_spill] sm:$0xff] }
 0xc79   : > { %v7404_v19 = vpop.eup %4418  ;;  %4438 = vpow2.f32 %v3356_v31  ;;  %v8491_v31 = vld [vmem:[#allocation31_spill] sm:$0xff] }
 0xc7a   : > { %v7412_v17 = vpop.eup %4420  ;;  %4440 = vpow2.f32 %v3360_v8  ;;  %v3440_v41 = vadd.f32 %v7404_v19, %v7396_v15  ;;  %v8504_v8 = vld [vmem:[#allocation14_spill] sm:$0xff] }
 0xc7b   : > { %v7420_v25 = vpop.eup %4422  ;;  %4442 = vpow2.f32 %v3364_v44  ;;  %v8502_v44 = vld [vmem:[#allocation41_spill] sm:$0xff] }
 0xc7c   : > { %v7428_v42 = vpop.eup %4424  ;;  %4444 = vpow2.f32 %v3368_v45  ;;  %v3441_v60 = vadd.f32 %v7412_v17, %v3440_v41 }
 0xc7d   : > { %v7435_v57 = vpop.eup %4426  ;;  %4446 = vpow2.f32 %v3372_v11 }
 0xc7e   : > { %v7443_v3 = vpop.eup %4428  ;;  %4448 = vpow2.f32 %v3376_v39  ;;  %v3442_v41 = vadd.f32 %v7420_v25, %v3441_v60 }
 0xc7f   : > { %v7450_v22 = vpop.eup %4430  ;;  %4450 = vpow2.f32 %v3380_v34 }
 0xc80   : > { %v7458_v61 = vpop.eup %4432  ;;  %4452 = vpow2.f32 %v3384_v23  ;;  %v3443_v60 = vadd.f32 %v7428_v42, %v3442_v41  ;;  %v8506_v41 = vsub.f32 %v7262_v48, %v7310_v43 }
 0xc81   : > { %v7465_v2 = vpop.eup %4434  ;;  %4454 = vpow2.f32 %v3388_v51  ;;  %v8507_v51 = vsub.f32 %v7268_v18, %v7310_v43 }
 0xc82   : > { %v7473_v13 = vpop.eup %4436  ;;  %4456 = vpow2.f32 %v3392_v12  ;;  %v3408_v11 = vmul.f32 1.442695, %v8506_v41  ;;  %v3444_v34 = vadd.f32 %v7435_v57, %v3443_v60  ;;  %v8508_v12 = vsub.f32 %v7274_v55, %v7310_v43 }
 0xc83   : > { %v7479_v9 = vpop.eup %4438  ;;  %4458 = vpow2.f32 %v7382_v56  ;;  %v3412_v39 = vmul.f32 1.442695, %v8507_v51  ;;  %v8509_v56 = vsub.f32 %v7280_v0, %v7310_v43  ;;  %v8513_v0 = vsub.f32 %v7298_v52, %v7310_v43 }
 0xc84   : > { %v7485_v45 = vpop.eup %4440  ;;  %4460 = vpow2.f32 %v7384_v63  ;;  %v3416_v23 = vmul.f32 1.442695, %v8508_v12  ;;  %v3445_v48 = vadd.f32 %v7443_v3, %v3444_v34  ;;  %v8510_v63 = vsub.f32 %v7286_v49, %v7310_v43 }
 0xc85   : > { %v7492_v41 = vpop.eup %4442  ;;  %4462 = vpow2.f32 %v7386_v30  ;;  %v3420_v60 = vmul.f32 1.442695, %v8509_v56  ;;  %v8511_v34 = vsub.f32 %v7292_v26, %v7310_v43 }
 0xc86   : > { %v7498_v18 = vpop.eup %4444  ;;  %4464 = vpow2.f32 %v3408_v11  ;;  %v3424_v51 = vmul.f32 1.442695, %v8510_v63  ;;  %v3446_v55 = vadd.f32 %v7450_v22, %v3445_v48  ;;  %v3432_v11 = vmul.f32 1.442695, %v8513_v0 }
 0xc87   : > { %v7504_v12 = vpop.eup %4446  ;;  %4466 = vpow2.f32 %v3412_v39  ;;  %v3428_v30 = vmul.f32 1.442695, %v8511_v34  ;;  %v8514_v48 = vsub.f32 %v7304_v62, %v7310_v43  ;;  %v8517_v62 = vsub.f32 %v7130_v21, %v7312_v24 }
 0xc88   : > { %v7509_v14 = vpop.eup %4448  ;;  %4468 = vpow2.f32 %v3416_v23  ;;  %v3447_v56 = vadd.f32 %v7458_v61, %v3446_v55  ;;  %v8515_v23 = vsub.f32 %v7120_v35, %v7312_v24  ;;  %v8516_v55 = vsub.f32 %v7124_v53, %v7312_v24 }
 0xc89   : > { %8512 = vst [vmem:[#allocation20_spill] sm:$0xff] %v7509_v14  ;;  %v7515_v49 = vpop.eup %4450  ;;  %4470 = vpow2.f32 %v3420_v60  ;;  %v3436_v39 = vmul.f32 1.442695, %v8514_v48  ;;  %v3322_v43 = vmul.f32 1.442695, %v8517_v62  ;;  %v8518_v35 = vsub.f32 %v7138_v59, %v7312_v24 }
 0xc8a   : > { %v7520_v63 = vpop.eup %4452  ;;  %4472 = vpow2.f32 %v3424_v51  ;;  %v3448_v26 = vadd.f32 %v7465_v2, %v3447_v56  ;;  %v3314_v34 = vmul.f32 1.442695, %v8515_v23  ;;  %v3318_v60 = vmul.f32 1.442695, %v8516_v55 }
 0xc8b   : > { %v7526_v52 = vpop.eup %4454  ;;  %4474 = vpow2.f32 %v3428_v30  ;;  %v3326_v56 = vmul.f32 1.442695, %v8518_v35  ;;  %v8519_v30 = vsub.f32 %v7145_v32, %v7312_v24  ;;  %v8520_v53 = vsub.f32 %v7151_v20, %v7312_v24 }
 0xc8c   : > { %v7534_v0 = vpop.eup %4456  ;;  %4476 = vpow2.f32 %v3432_v11  ;;  %v3449_v51 = vadd.f32 %v7473_v13, %v3448_v26  ;;  %v8521_v11 = vsub.f32 %v7157_v7, %v7312_v24  ;;  %v8522_v26 = vsub.f32 %v7163_v33, %v7312_v24 }
 0xc8d   : > { %v3330_v48 = vmul.f32 1.442695, %v8519_v30  ;;  %v7543_v23 = vpop.eup %4458  ;;  %4478 = vpow2.f32 %v3436_v39  ;;  %v3334_v21 = vmul.f32 1.442695, %v8520_v53  ;;  %v8523_v39 = vsub.f32 %v7169_v5, %v7312_v24 }
 0xc8e   : > { %v3338_v55 = vmul.f32 1.442695, %v8521_v11  ;;  %v3342_v59 = vmul.f32 1.442695, %v8522_v26  ;;  %v7554_v62 = vpop.eup %4460  ;;  %v3450_v32 = vadd.f32 %v7479_v9, %v3449_v51  ;;  %4480 = vpow2.f32 %v3314_v34 }
 0xc8f   : > { %v3346_v35 = vmul.f32 1.442695, %v8523_v39  ;;  %v8524_v20 = vsub.f32 %v7175_v58, %v7312_v24  ;;  %v7563_v53 = vpop.eup %4462  ;;  %4482 = vpow2.f32 %v3318_v60 }
 0xc90   : > { %v7571_v51 = vpop.eup %4464  ;;  %v3451_v5 = vadd.f32 %v7485_v45, %v3450_v32  ;;  %4484 = vpow2.f32 %v3322_v43 }
 0xc91   : > { %v3350_v30 = vmul.f32 1.442695, %v8524_v20  ;;  %v7578_v11 = vpop.eup %4466  ;;  %4486 = vpow2.f32 %v3326_v56  ;;  %v8525_v56 = vsub.f32 %v7181_v10, %v7312_v24  ;;  %v8526_v20 = vsub.f32 %v8486_v37, %v7312_v24 }
 0xc92   : > { %v7586_v32 = vpop.eup %4468  ;;  %v3452_v43 = vadd.f32 %v7492_v41, %v3451_v5  ;;  %4488 = vpow2.f32 %v3330_v48 }
 0xc93   : > { %v7593_v58 = vpop.eup %4470  ;;  %4490 = vpow2.f32 %v3334_v21  ;;  %v3354_v60 = vmul.f32 1.442695, %v8525_v56  ;;  %v3358_v39 = vmul.f32 1.442695, %v8526_v20 }
 0xc94   : > { %v7601_v5 = vpop.eup %4472  ;;  %v3453_v48 = vadd.f32 %v7498_v18, %v3452_v43  ;;  %4492 = vpow2.f32 %v3338_v55  ;;  %v8527_v55 = vsub.f32 %v8487_v50, %v7312_v24  ;;  %v8532_v50 = vsub.f32 %v8492_v40, %v7312_v24 }
 0xc95   : > { %v7609_v34 = vpop.eup %4474  ;;  %4494 = vpow2.f32 %v3342_v59  ;;  %v8528_v59 = vsub.f32 %v8488_v27, %v7312_v24  ;;  %v8531_v27 = vsub.f32 %v8491_v31, %v7312_v24  ;;  %v8535_v40 = vsub.f32 %v8495_v38, %v7312_v24 }
 0xc96   : > { %v7614_v26 = vpop.eup %4476  ;;  %v3454_v33 = vadd.f32 %v7504_v12, %v3453_v48  ;;  %4496 = vpow2.f32 %v3346_v35  ;;  %v3362_v10 = vmul.f32 1.442695, %v8527_v55  ;;  %v8529_v35 = vsub.f32 %v8489_v6, %v7312_v24 }
 0xc97   : > { %v7622_v56 = vpop.eup %4478  ;;  %4498 = vpow2.f32 %v3350_v30  ;;  %v3366_v37 = vmul.f32 1.442695, %v8528_v59  ;;  %v8530_v30 = vsub.f32 %v8490_v4, %v7312_v24  ;;  %v3378_v59 = vmul.f32 1.442695, %v8531_v27 }
 0xc98   : > { %v4481_v20 = vpop.eup %4480  ;;  %v3455_v21 = vadd.f32 %v7509_v14, %v3454_v33  ;;  %4500 = vpow2.f32 %v3354_v60  ;;  %v3370_v48 = vmul.f32 1.442695, %v8529_v35  ;;  %v8533_v4 = vsub.f32 %v8493_v16, %v7312_v24 }
 0xc99   : > { %v4483_v55 = vpop.eup %4482  ;;  %4502 = vpow2.f32 %v3358_v39  ;;  %v3374_v43 = vmul.f32 1.442695, %v8530_v30  ;;  %v3382_v39 = vmul.f32 1.442695, %v8532_v50  ;;  %v3394_v50 = vmul.f32 1.442695, %v8535_v40 }
 0xc9a   : > { %v4485_v7 = vpop.eup %4484  ;;  %v3456_v33 = vadd.f32 %v7515_v49, %v3455_v21  ;;  %4504 = vpow2.f32 %v3362_v10  ;;  %v3477_v60 = vadd.f32 %v4483_v55, %v4481_v20  ;;  %v3515_v6 = vpack.c.bf16 %v4483_v55, %v4481_v20 }
 0xc9b   : > { %v4487_v35 = vpop.eup %4486  ;;  %4506 = vpow2.f32 %v3366_v37  ;;  %v3386_v30 = vmul.f32 1.442695, %v8533_v4  ;;  %v8534_v37 = vsub.f32 %v8494_v28, %v7312_v24  ;;  %v8536_v16 = vpack.c.bf16 %v7404_v19, %v7396_v15 }
 0xc9c   : > { %v4489_v14 = vpop.eup %4488  ;;  %v3457_v31 = vadd.f32 %v7520_v63, %v3456_v33  ;;  %4508 = vpow2.f32 %v3370_v48  ;;  %v3478_v27 = vadd.f32 %v4485_v7, %v3477_v60  ;;  %3546 = vmatprep.subr.bf16.mxu1 %v3515_v6  ;;  %v3517_v21 = vpack.c.bf16 %v4487_v35, %v4485_v7 }
 0xc9d   : > { %v4491_v10 = vpop.eup %4490  ;;  %4510 = vpow2.f32 %v3374_v43  ;;  %v3390_v20 = vmul.f32 1.442695, %v8534_v37  ;;  %3547 = vmatpush1.bf16.msra.mxu1 %v8536_v16  ;;  %v8537_v28 = vsub.f32 %v8496_v47, %v7312_v24  ;;  %v8538_v38 = vsub.f32 %v8497_v36, %v7312_v24  ;;  %v8543_v16 = vld [vmem:[#allocation49_spill] sm:$0xff] }
 0xc9e   : > { %v4493_v55 = vpop.eup %4492  ;;  %v3458_v48 = vadd.f32 %v7526_v52, %v3457_v31  ;;  %4512 = vpow2.f32 %v3378_v59  ;;  %v3479_v33 = vadd.f32 %v4487_v35, %v3478_v27  ;;  %3548 = vmatprep.subr.bf16.mxu1 %v3517_v21  ;;  %v3519_v7 = vpack.c.bf16 %v4491_v10, %v4489_v14 }
 0xc9f   : > { %v4495_v43 = vpop.eup %4494  ;;  %4514 = vpow2.f32 %v3382_v39  ;;  %v3398_v60 = vmul.f32 1.442695, %v8537_v28  ;;  %v3402_v6 = vmul.f32 1.442695, %v8538_v38  ;;  %v8539_v35 = vsub.f32 %v8498_v1, %v7312_v24 }
 0xca0   : > { %v4497_v4 = vpop.eup %4496  ;;  %v3459_v15 = vadd.f32 %v7534_v0, %v3458_v48  ;;  %4516 = vpow2.f32 %v3386_v30  ;;  %v3480_v19 = vadd.f32 %v4489_v14, %v3479_v33  ;;  %v3521_v31 = vpack.c.bf16 %v4495_v43, %v4493_v55 }
 0xca1   : > { %v4499_v59 = vpop.eup %4498  ;;  %4518 = vpow2.f32 %v3390_v20  ;;  %v3406_v39 = vmul.f32 1.442695, %v8539_v35  ;;  %v8540_v47 = vsub.f32 %v8499_v46, %v7312_v24  ;;  %v8541_v36 = vpack.c.bf16 %v7420_v25, %v7412_v17 }
 0xca2   : > { %v4501_v21 = vpop.eup %4500  ;;  %v3460_v37 = vadd.f32 %v7543_v23, %v3459_v15  ;;  %4520 = vpow2.f32 %v3394_v50  ;;  %v3481_v14 = vadd.f32 %v4491_v10, %v3480_v19  ;;  %v3523_v30 = vpack.c.bf16 %v4499_v59, %v4497_v4 }
 0xca3   : > { %v3410_v27 = vmul.f32 1.442695, %v8540_v47  ;;  %3549 = vmatpush1.bf16.msra.mxu1 %v8541_v36  ;;  %v4503_v20 = vpop.eup %4502  ;;  %4522 = vpow2.f32 %v3398_v60  ;;  %v8542_v1 = vsub.f32 %v8500_v54, %v7312_v24  ;;  %v8544_v46 = vsub.f32 %v8543_v16, %v7312_v24  ;;  %v8546_v60 = vld [vmem:[#allocation38_spill] sm:$0xff] }
 0xca4   : > { %3550 = vmatprep.subr.bf16.mxu1 %v3519_v7  ;;  %v4505_v33 = vpop.eup %4504  ;;  %v3461_v17 = vadd.f32 %v7554_v62, %v3460_v37  ;;  %4524 = vpow2.f32 %v3402_v6  ;;  %v3482_v25 = vadd.f32 %v4493_v55, %v3481_v14  ;;  %v3525_v28 = vpack.c.bf16 %v4503_v20, %v4501_v21 }
 0xca5   : > { %v3414_v40 = vmul.f32 1.442695, %v8542_v1  ;;  %v3418_v48 = vmul.f32 1.442695, %v8544_v46  ;;  %v4507_v50 = vpop.eup %4506  ;;  %4526 = vpow2.f32 %v3406_v39  ;;  %v8545_v10 = vsub.f32 %v8502_v44, %v7312_v24 }
 0xca6   : > { %v8547_v54 = vsub.f32 %v8546_v60, %v7312_v24  ;;  %v8548_v15 = vpack.c.bf16 %v7435_v57, %v7428_v42  ;;  %v4509_v19 = vpop.eup %4508  ;;  %v3462_v35 = vadd.f32 %v7563_v53, %v3461_v17  ;;  %4528 = vpow2.f32 %v3410_v27 }
 0xca7   : > { %v3422_v7 = vmul.f32 1.442695, %v8545_v10  ;;  %v3483_v55 = vadd.f32 %v4495_v43, %v3482_v25  ;;  %v3527_v6 = vpack.c.bf16 %v4507_v50, %v4505_v33  ;;  %v4511_v39 = vpop.eup %4510  ;;  %4530 = vpow2.f32 %v3414_v40  ;;  %v8551_v43 = vld [vmem:[#allocation18_spill] sm:$0xff] }
 0xca8   : > { %v3426_v38 = vmul.f32 1.442695, %v8547_v54  ;;  %3551 = vmatpush1.bf16.msra.mxu1 %v8548_v15  ;;  %v8549_v44 = vsub.f32 %v8504_v8, %v7312_v24  ;;  %v8550_v36 = vsub.f32 %v8505_v29, %v7312_v24  ;;  %v4513_v14 = vpop.eup %4512  ;;  %v3463_v57 = vadd.f32 %v7571_v51, %v3462_v35 }
 0xca9   : > { %3552 = vmatprep.subr.bf16.mxu1 %v3521_v31  ;;  %4532 = vpow2.f32 %v3418_v48  ;;  %v3484_v42 = vadd.f32 %v4497_v4, %v3483_v55  ;;  %v3529_v1 = vpack.c.bf16 %v4511_v39, %v4509_v19  ;;  %v4515_v27 = vpop.eup %4514  ;;  %v8552_v31 = vsub.f32 %v8551_v43, %v7312_v24 }
 0xcaa   : > { %v3430_v47 = vmul.f32 1.442695, %v8549_v44  ;;  %v3434_v37 = vmul.f32 1.442695, %v8550_v36  ;;  %4534 = vpow2.f32 %v3422_v7  ;;  %v8553_v8 = vpack.c.bf16 %v7450_v22, %v7443_v3  ;;  %v4517_v16 = vpop.eup %4516 }
 0xcab   : > { %v3438_v40 = vmul.f32 1.442695, %v8552_v31  ;;  %v3464_v29 = vadd.f32 %v7578_v11, %v3463_v57  ;;  %4536 = vpow2.f32 %v3426_v38  ;;  %v3485_v46 = vadd.f32 %v4499_v59, %v3484_v42  ;;  %v4519_v48 = vpop.eup %4518 }
 0xcac   : > { %3553 = vmatpush1.bf16.msra.mxu1 %v8553_v8  ;;  %v3531_v17 = vpack.c.bf16 %v4515_v27, %v4513_v14  ;;  %4538 = vpow2.f32 %v3430_v47  ;;  %v4521_v4 = vpop.eup %4520  ;;  %v3533_v24 = vpack.c.bf16 %v4519_v48, %v4517_v16  ;;  %v8554_v22 = vpack.c.bf16 %v7465_v2, %v7458_v61 }
 0xcad   : > { %3554 = vmatprep.subr.bf16.mxu1 %v3523_v30  ;;  %v3465_v25 = vadd.f32 %v7586_v32, %v3464_v29  ;;  %4540 = vpow2.f32 %v3434_v37  ;;  %v3486_v10 = vadd.f32 %v4501_v21, %v3485_v46  ;;  %v4523_v7 = vpop.eup %4522  ;;  %v8555_v44 = vpack.c.bf16 %v7479_v9, %v7473_v13 }
 0xcae   : > { %4542 = vpow2.f32 %v3438_v40  ;;  %v4525_v3 = vpop.eup %4524  ;;  %v3535_v30 = vpack.c.bf16 %v4523_v7, %v4521_v4  ;;  %v8557_v29 = vpack.c.bf16 %v7504_v12, %v7498_v18  ;;  %v8561_v18 = vpack.c.bf16 %v7543_v23, %v7534_v0 }
 0xcaf   : > { %v3466_v60 = vadd.f32 %v7593_v58, %v3465_v25  ;;  %v3487_v59 = vadd.f32 %v4503_v20, %v3486_v10  ;;  %v4527_v54 = vpop.eup %4526  ;;  %v8558_v25 = vld [vmem:[#allocation20_spill] sm:$0xff]  ;;  %v8564_v0 = vpack.c.bf16 %v7593_v58, %v7586_v32  ;;  %v8571_v32 = vld [vmem:[#allocation7_spill] sm:$0xff] }
 0xcb0   : > { %3555 = vmatpush1.bf16.msra.mxu1 %v8554_v22  ;;  %v4529_v38 = vpop.eup %4528  ;;  %v3537_v55 = vpack.c.bf16 %v4527_v54, %v4525_v3  ;;  %v8569_v22 = vld [vmem:[#allocation12_spill] sm:$0xff] }
 0xcb1   : > { %3556 = vmatprep.subr.bf16.mxu1 %v3525_v28  ;;  %v3467_v15 = vadd.f32 %v7601_v5, %v3466_v60  ;;  %v3488_v35 = vadd.f32 %v4505_v33, %v3487_v59  ;;  %v4531_v21 = vpop.eup %4530  ;;  %v8556_v33 = vpack.c.bf16 %v7492_v41, %v7485_v45  ;;  %v8559_v45 = vpack.c.bf16 %v7515_v49, %v8558_v25  ;;  %v4548_v25 = vld [vmem:[%s4712_s13] sm:$0xff] }
 0xcb2   : > { %v3539_v36 = vpack.c.bf16 %v4531_v21, %v4529_v38  ;;  %v8562_v49 = vpack.c.bf16 %v7563_v53, %v7554_v62  ;;  %v8565_v62 = vpack.c.bf16 %v7609_v34, %v7601_v5 }
 0xcb3   : > { %v4533_v47 = vpop.eup %4532  ;;  %v3468_v2 = vadd.f32 %v7609_v34, %v3467_v15  ;;  %v3489_v61 = vadd.f32 %v4507_v50, %v3488_v35  ;;  %v8574_v34 = vmov 0  }
 0xcb4   : > { %3557 = vmatpush1.bf16.msra.mxu1 %v8555_v44  ;;  %v4535_v20 = vpop.eup %4534 }
 0xcb5   : > { %3558 = vmatprep.subr.bf16.mxu1 %v3527_v6  ;;  %v4537_v28 = vpop.eup %4536  ;;  %v3469_v37 = vadd.f32 %v7614_v26, %v3468_v2  ;;  %v3490_v57 = vadd.f32 %v4509_v19, %v3489_v61  ;;  %v3541_v42 = vpack.c.bf16 %v4535_v20, %v4533_v47 }
 0xcb6   : > { %v4539_v43 = vpop.eup %4538 }
 0xcb7   : > { %v4541_v31 = vpop.eup %4540  ;;  %v3470_v9 = vadd.f32 %v7622_v56, %v3469_v37  ;;  %v3491_v13 = vadd.f32 %v4511_v39, %v3490_v57  ;;  %v3543_v40 = vpack.c.bf16 %v4539_v43, %v4537_v28  ;;  %v8560_v39 = vpack.c.bf16 %v7526_v52, %v7520_v63  ;;  %v8575_v57 = vld [vmem:[#allocation29_spill] sm:$0xff] }
 0xcb8   : > { %3559 = vmatpush1.bf16.msra.mxu1 %v8556_v33  ;;  %v4543_v50 = vpop.eup %4542  ;;  %v8563_v63 = vpack.c.bf16 %v7578_v11, %v7571_v51  ;;  %v8566_v51 = vpack.c.bf16 %v7622_v56, %v7614_v26  ;;  %v8567_v11 = vld [vmem:[#allocation34_spill] sm:$0xff]  ;;  %v8576_v33 = vld [vmem:[#allocation9_spill] sm:$0xff] }
 0xcb9   : > { %3560 = vmatprep.subr.bf16.mxu1 %v3529_v1  ;;  %v3492_v6 = vadd.f32 %v4513_v14, %v3491_v13  ;;  %v3545_v8 = vpack.c.bf16 %v4543_v50, %v4541_v31  ;;  %v3471_v5 = vrot.slane %v3470_v9, 4  ;;  %v4011_v13 = vld [vmem:[%s7844_s4 + $0x8] sm:$0xff]  }
 0xcbb   : > { %v3493_v19 = vadd.f32 %v4515_v27, %v3492_v6 }
 0xcbc   : > { %3561 = vmatpush1.bf16.msra.mxu1 %v8557_v29  ;;  %v3621_v29 = vpop.permute.xlu0 %3620 }
 0xcbd   : > { %3562 = vmatprep.subr.bf16.mxu1 %v3531_v17  ;;  %v3494_v46 = vadd.f32 %v4517_v16, %v3493_v19 }
 0xcbf   : > { %v3495_v41 = vadd.f32 %v4519_v48, %v3494_v46 }
 0xcc0   : > { %3563 = vmatpush1.bf16.msra.mxu1 %v8559_v45 }
 0xcc1   : > { %3564 = vmatprep.subr.bf16.mxu1 %v3533_v24  ;;  %v3496_v10 = vadd.f32 %v4521_v4, %v3495_v41  ;;  %v2893_v24 = vpack.c.bf16 %v8567_v11, %v8567_v11  ;;  %v4553_v11 = vld [vmem:[%s4712_s13 + $0x28] sm:$0xff] }
 0xcc3   : > { %v3497_v14 = vadd.f32 %v4523_v7, %v3496_v10  ;;  %v8568_v7 = vld [vmem:[#allocation8_spill] sm:$0xff] }
 0xcc4   : > { %3565 = vmatpush1.bf16.msra.mxu1 %v8560_v39  ;;  %v8570_v58 = vpack.c.bf16 %v8568_v7, %v8569_v22  ;;  %v4549_v39 = vld [vmem:[%s4712_s13 + $0x8] sm:$0xff]  ;;  %v4554_v22 = vld [vmem:[%s4712_s13 + $0x30] sm:$0xff] }
 0xcc5   : > { %3566 = vmatprep.subr.bf16.mxu1 %v3535_v30  ;;  %v3498_v1 = vadd.f32 %v4525_v3, %v3497_v14  ;;  %v8572_v3 = vld [vmem:[#allocation35_spill] sm:$0xff]  ;;  %v3472_v30 = vadd.f32 %v3471_v5, %v3470_v9  ;;  %v4010_v9 = vld [vmem:[%s7844_s4] sm:$0xff]  }
 0xcc6   : > { %v8573_v60 = vpack.c.bf16 %v8571_v32, %v8572_v3  ;;  %v4555_v32 = vld [vmem:[%s4712_s13 + $0x38] sm:$0xff] }
 0xcc7   : > { %v3499_v12 = vadd.f32 %v4527_v54, %v3498_v1  ;;  %v3473_v26 = vrot.slane %v3472_v30, 2 }
 0xcc8   : > { %3567 = vmatpush1.bf16.msra.mxu1 %v8561_v18  ;;  %v4550_v18 = vld [vmem:[%s4712_s13 + $0x10] sm:$0xff] }
 0xcc9   : > { %3568 = vmatprep.subr.bf16.mxu1 %v3537_v55  ;;  %v3500_v27 = vadd.f32 %v4529_v38, %v3499_v12  ;;  %v3474_v38 = vadd.f32 %v3473_v26, %v3472_v30 }
 0xccb   : > { %v3501_v16 = vadd.f32 %v4531_v21, %v3500_v27  ;;  %v3475_v35 = vrot.slane %v3474_v38, 1  ;;  %v4551_v27 = vld [vmem:[%s4712_s13 + $0x18] sm:$0xff] }
 0xccc   : > { %3569 = vmatpush1.bf16.msra.mxu1 %v8562_v49 }
 0xccd   : > { %3570 = vmatprep.subr.bf16.mxu1 %v3539_v36  ;;  %v3502_v17 = vadd.f32 %v4533_v47, %v3501_v16  ;;  %v3476_v21 = vadd.f32 %v3475_v35, %v3474_v38 }
 0xccf   : > { %v3503_v52 = vadd.f32 %v4535_v20, %v3502_v17  ;;  %4544 = vrcp.f32 %v3476_v21 }
 0xcd0   : > { %3571 = vmatpush1.bf16.msra.mxu1 %v8563_v63 }
 0xcd1   : > { %3572 = vmatprep.subr.bf16.mxu1 %v3541_v42  ;;  %v3504_v48 = vadd.f32 %v4537_v28, %v3503_v52 }
 0xcd3   : > { %v3505_v23 = vadd.f32 %v4539_v43, %v3504_v48  ;;  %v3631_v48 = vpop.permute.xlu0 %3630 }
 0xcd4   : > { %3573 = vmatpush1.bf16.msra.mxu1 %v8564_v0 }
 0xcd5   : > { %3574 = vmatprep.subr.bf16.mxu1 %v3543_v40  ;;  %v3506_v4 = vadd.f32 %v4541_v31, %v3505_v23  ;;  %v3616_v40 = vpop.permute.xlu1 %3615 }
 0xcd7   : > { %v3507_v53 = vadd.f32 %v4543_v50, %v3506_v4  ;;  %v4552_v4 = vld [vmem:[%s4712_s13 + $0x20] sm:$0xff] }
 0xcd8   : > { %3575 = vmatpush1.bf16.msra.mxu1 %v8565_v62 }
 0xcd9   : > { %3576 = vmatprep.subr.bf16.mxu1 %v3545_v8  ;;  %v3508_v59 = vrot.slane %v3507_v53, 4  ;;  %v4545_v47 = vpop.eup %4544  ;;  %v3626_v16 = vpop.permute.xlu1 %3625 }
 0xcdb   : > { %v3509_v54 = vadd.f32 %v3508_v59, %v3507_v53 }
 0xcdc   : > { %3577 = vmatpush1.bf16.msra.mxu1 %v8566_v51 }
 0xcdd   : > { %3649 = vmatprep.subr.bf16.mxu1 %v8570_v58  ;;  %v3510_v56 = vrot.slane %v3509_v54, 2 }
 0xcdf   : > { %3579 = vmatmul.mubr.bf16.vlgmr.msra.gmra.mrb[140].mxu1 %v2893_v24  ;;  %v3511_v15 = vadd.f32 %v3510_v56, %v3509_v54 }
 0xce0   : > { %3650 = vmatpush1.bf16.msra.mxu1 %v8573_v60  ;;  %3681 = vmatprep.mubr.bf16.mxu1 %v8574_v34 }
 0xce1   : > { %v3512_v55 = vrot.slane %v3511_v15, 1 }
 0xce3   : > { %v3513_v44 = vadd.f32 %v3512_v55, %v3511_v15 }
 0xce5   : > { %4546 = vrcp.f32 %v3513_v44 }
 0xcef   : > { %v4547_v61 = vpop.eup %4546 }
 0xdb2   : > { %v3580_v2 = vpop.f32.mrb[140].mxu1 }
 0xdb3   : > { %v3589_v36 = vmul.f32 %v4545_v47, %v3580_v2  ;;  %v3582_v20 = vpop.f32.mrb[141].mxu1 }
 0xdb4   : > { %v3590_v28 = vmul.f32 %v4547_v61, %v3582_v20  ;;  %v3584_v37 = vpop.f32.mrb[142].mxu1 }
 0xdb5   : > { %v3607_v42 = vpack.c.bf16 %v3589_v36, %v8575_v57  ;;  %v3585_v43 = vpop.f32.mrb[143].mxu1 }
 0xdb6   : > { %v3608_v31 = vpack.c.bf16 %v3590_v28, %v8576_v33 }
 0xdb8   : > { %3651 = vmatprep.subr.bf16.mxu1 %v3608_v31 }
 0xdb9   : > { %3652 = vmatpush1.bf16.msra.mxu1 %v3607_v42 }
 0xdbc   : > { %3891 = vmatmul.mubr.msk.bf16.vlgmr.msra.gmra.mrb[144].mxu1 %vm279_vm0, %v4010_v9 }
 0xdbd   : > { %3691 = vmatprep.mubr.bf16.mxu1 %v8574_v34 }
 0xdc4   : > { %3892 = vmatmul.mubr.msk.bf16.gmra.mrb[148].mxu1 %vm279_vm0, %v4011_v13 }
 0xe8f   : > { %v3683_v50 = vpop.f32.mrb[144].mxu1 }
 0xe90   : > { %v3684_v6 = vadd.f32 %v3683_v50, %v3616_v40  ;;  %v3685_v8 = vpop.f32.mrb[145].mxu1 }
 0xe91   : > { %v3686_v19 = vadd.f32 %v3685_v8, %v3616_v40  ;;  %v3687_v46 = vpop.f32.mrb[146].mxu1 }
 0xe92   : > { %v3702_v45 = vadd.f32 %v4548_v25, %v3684_v6  ;;  %v3688_v41 = vadd.f32 %v3687_v46, %v3621_v29  ;;  %v3689_v10 = vpop.f32.mrb[147].mxu1 }
 0xe93   : > { %v3703_v14 = vadd.f32 %v4549_v39, %v3686_v19  ;;  %v3690_v1 = vadd.f32 %v3689_v10, %v3621_v29 }
 0xe94   : > { %3710 = vst [vmem:[%s7772_s16] sm:$0xff] %v3702_v45  ;;  %v3704_v12 = vadd.f32 %v4550_v18, %v3688_v41 }
 0xe95   : > { %3711 = vst [vmem:[%s7772_s16 + $0x8] sm:$0xff] %v3703_v14  ;;  %v3705_v49 = vadd.f32 %v4551_v27, %v3690_v1 }
 0xe96   : > { %3712 = vst [vmem:[%s7772_s16 + $0x10] sm:$0xff] %v3704_v12 }
 0xe97   : > { %3713 = vst [vmem:[%s7772_s16 + $0x18] sm:$0xff] %v3705_v49  ;;  %v3693_v17 = vpop.f32.mrb[148].mxu1 }
 0xe98   : > { %v3694_v63 = vadd.f32 %v3693_v17, %v3626_v16  ;;  %v3695_v52 = vpop.f32.mrb[149].mxu1 }
 0xe99   : > { %v3696_v0 = vadd.f32 %v3695_v52, %v3626_v16  ;;  %v3697_v23 = vpop.f32.mrb[150].mxu1 }
 0xe9a   : > { %v3706_v62 = vadd.f32 %v4552_v4, %v3694_v63  ;;  %v3698_v53 = vadd.f32 %v3697_v23, %v3631_v48  ;;  %v3699_v51 = vpop.f32.mrb[151].mxu1 }
 0xe9b   : > { %v3707_v24 = vadd.f32 %v4553_v11, %v3696_v0  ;;  %v3700_v7 = vadd.f32 %v3699_v51, %v3631_v48 }
 0xe9c   : > { %3714 = vst [vmem:[%s7772_s16 + $0x20] sm:$0xff] %v3706_v62  ;;  %v3708_v58 = vadd.f32 %v4554_v22, %v3698_v53 }
 0xe9d   : > { %3715 = vst [vmem:[%s7772_s16 + $0x28] sm:$0xff] %v3707_v24  ;;  %v3709_v3 = vadd.f32 %v4555_v32, %v3700_v7 }
 0xe9e   : > { %3716 = vst [vmem:[%s7772_s16 + $0x30] sm:$0xff] %v3708_v58 }
 0xe9f   : > { %3717 = vst [vmem:[%s7772_s16 + $0x38] sm:$0xff] %v3709_v3 }
 0xea0   : > { %4569 = shalt.err (!%p4566_p3)
}
 0xea1   : > { %s4570_s13 = scalar_lea.hbm %s7789_s26, 1024  ;;  %s4574_s14 = scalar_lea.hbm %s7846_s6, 2048 }
 0xea2   : > { %p4571_p4 = scmp.ne.s32.totalorder %s7789_s26, %s4570_s13  ;;  %p4575_p9 = scmp.lt.u32.totalorder %s7789_s26, %s7846_s6 }
 0xea3   : > { %p4576_p10 = scmp.lt.u32.totalorder %s4574_s14, %s4570_s13  ;;  %p4578_p12 = scmp.lt.u32.totalorder %s4570_s13, %s7789_s26 }
 0xea4   : > { %p4572_p7 = pnand %p4571_p4, %p4697_p5 }
 0xea5   : > { %p4577_p11 = por %p4576_p10, %p4575_p9 }
 0xea6   : > { %p4573_p8 = pneg %p4572_p7 }
 0xea7   : > { %p4579_p13 = por %p4578_p12, %p4577_p11 }
 0xea9   : > { %p4580_p0 = pnand %p4579_p13, %p4573_p8 }
 0xeab   : > { %4583 = shalt.err (!%p4580_p0)
}
 0xeac   : > { %s4622_s17 = smov 256   ;;  %s4623_s19 = smov 16  }
 0xead   : > { %3960 = dma.vmem_to_hbm [thread:$0]  (%p4697_p5), %s7791_s18, 1024, %s7789_s26, %s7799_s25, %s4622_s17, %s4622_s17, %s4623_s19  }
 0xeae PF: > { %p3966_p1 = scmp.ge.s32.totalorder %s4618_s24, 2  ;;  %s3747_s20 = sand.u32 1, %s4606_s21  }
 0xeaf   : > { %s3748_s28 = scalar_lea.sflag [#allocation4], %s3747_s20 }
 0xeb0   : > { %p3963_p2 = pnand %p3966_p1, %p4701_p6 }
 0xeb2   : > { %4601 = dma.done.wait (!%p3963_p2), %s3748_s28, 1024  }
 0xeb3   : > { %4603 = vsyncadd (!%p3963_p2), %s3748_s28, 4294966272  ;;  %p16_p3 = scmp.ge.s32.totalorder %s4684_s27, 4   ;;  %s8577_s21 = smov %s4610_s22 }
 0xeb4   : > { %s8578_s22 = smov %s4614_s23  ;;  %s8579_s23 = smov %s4695_s30 }
 0xeb5   : > { %s8580_s24 = smov %s4684_s27  ;;  %18 = sbr.rel (!%p16_p3) target bundleno = 3 (0x3), region = 79 }
 0xebc   :  { %3753 = vsyncpa [#allocation4], 1 }
 0xebd   :  { %3755 = vsyncpa [#allocation4 + $0x1], 1 }

</bundles_post_ra>
